<compile_context>
chip_gen: v5e
topology: v5e:2x2
jax: 0.10.0
libtpu: 0.0.40
codegen_flags: <defaults>
</compile_context>

<pallas_src>
import jax
import jax.numpy as jnp
from jax.experimental import pallas as pl
from jax.experimental.pallas import tpu as pltpu

EMB = 256          # per-modality embedding dim (fixed by the module: 256*2 concat)
CAT = 2 * EMB      # 512
OUT_LANES = 128    # lane-dense padding of the final Linear(512, 1)


def _ensemble_kernel(video_ref, audio_ref, w1_ref, b1_ref, w2_ref, b2_ref,
                     wh_ref, bh_ref, wo_ref, bo_ref, out_ref, h_ref):
    """One (batch_tile, layer) grid step.

    layer == 0      : modality projections + first 512x512 hidden layer (split-K,
                      no concat), result written to the f32 VMEM scratch `h_ref`.
    layer  > 0      : h = h @ wh[l] + bh[l]   (per-layer weight block streamed in)
    layer == last   : lane-dense padded final Linear -> out_ref.
    """
    l = pl.program_id(1)
    last = pl.num_programs(1) - 1
    bf16 = jnp.bfloat16
    f32 = jnp.float32

    @pl.when(l == 0)
    def _():
        v = (jnp.dot(video_ref[...].astype(bf16), w1_ref[...],
                     preferred_element_type=f32) + b1_ref[...])
        a = (jnp.dot(audio_ref[...].astype(bf16), w2_ref[...],
                     preferred_element_type=f32) + b2_ref[...])
        # First hidden Linear(512, 512) with the contraction split in two:
        # mathematically identical to concat([v, a]) @ W, no lane concat needed.
        w0 = wh_ref[0]                              # (512, 512) bf16
        h = jnp.dot(v.astype(bf16), w0[:EMB, :], preferred_element_type=f32)
        h = h + jnp.dot(a.astype(bf16), w0[EMB:, :], preferred_element_type=f32)
        h_ref[...] = h + bh_ref[0]

    @pl.when(l > 0)
    def _():
        h_ref[...] = (jnp.dot(h_ref[...].astype(bf16), wh_ref[0],
                              preferred_element_type=f32) + bh_ref[0])

    @pl.when(l == last)
    def _():
        out = (jnp.dot(h_ref[...].astype(bf16), wo_ref[...],
                       preferred_element_type=f32) + bo_ref[...])
        out_ref[...] = out.astype(out_ref.dtype)


def ensemble_forward(video, audio, params, *, block_b=128):
    """Whole EnsembleModel forward as one pipelined Pallas call.

    block_b: batch tile (rows per grid step). 128 matches the v5e MXU; use 256
    on v6e/v7x for full 256x256 systolic occupancy at large batch.
    """
    w1, b1, w2, b2, wh, bh, wo, bo = (
        params[k] for k in ("w1", "b1", "w2", "b2", "wh", "bh", "wo", "bo"))
    B, Dv = video.shape
    Da = audio.shape[1]
    L = wh.shape[0]

    # Pad batch to a multiple of the tile so every grid step is full-sized.
    n_tiles = pl.cdiv(B, block_b)
    B_pad = n_tiles * block_b
    if B_pad != B:
        video = jnp.pad(video, ((0, B_pad - B), (0, 0)))
        audio = jnp.pad(audio, ((0, B_pad - B), (0, 0)))

    # Lane-dense output path: pad the (512, 1) head to (512, 128) columns
    # (column 0 is the real head, the rest are zero) -> unmasked full-lane store.
    wo_pad = jnp.zeros((CAT, OUT_LANES), wo.dtype).at[:, :1].set(wo)
    bo_pad = jnp.zeros((1, OUT_LANES), bo.dtype).at[:, :1].set(bo)

    out_padded = pl.pallas_call(
        _ensemble_kernel,
        out_shape=jax.ShapeDtypeStruct((B_pad, OUT_LANES), jnp.float32),
        grid_spec=pltpu.PrefetchScalarGridSpec(
            num_scalar_prefetch=0,
            grid=(n_tiles, L),
            in_specs=[
                # batch-tiled activations (resident across the layer axis)
                pl.BlockSpec((block_b, Dv), lambda i, l: (i, 0)),
                pl.BlockSpec((block_b, Da), lambda i, l: (i, 0)),
                # projection weights / biases (constant block -> fetched once)
                pl.BlockSpec((Dv, EMB), lambda i, l: (0, 0)),
                pl.BlockSpec((1, EMB), lambda i, l: (0, 0)),
                pl.BlockSpec((Da, EMB), lambda i, l: (0, 0)),
                pl.BlockSpec((1, EMB), lambda i, l: (0, 0)),
                # hidden stack: one layer's weight/bias per grid step (pipelined DMA)
                pl.BlockSpec((1, CAT, CAT), lambda i, l: (l, 0, 0)),
                pl.BlockSpec((1, 1, CAT), lambda i, l: (l, 0, 0)),
                # padded output head (constant block)
                pl.BlockSpec((CAT, OUT_LANES), lambda i, l: (0, 0)),
                pl.BlockSpec((1, OUT_LANES), lambda i, l: (0, 0)),
            ],
            out_specs=pl.BlockSpec((block_b, OUT_LANES), lambda i, l: (i, 0)),
            scratch_shapes=[pltpu.VMEM((block_b, CAT), jnp.float32)],
        ),
        compiler_params=pltpu.CompilerParams(
            dimension_semantics=("parallel", "arbitrary")),
    )(video, audio, w1, b1, w2, b2, wh, bh, wo_pad, bo_pad)

    return out_padded[:B, :1]


def init_params(key, dv, da, deep=False):
    """nn.Linear-style init (U(-1/sqrt(fan_in), +1/sqrt(fan_in))).

    Weights are stored pre-transposed as (in, out) and cast to bf16; biases
    stay f32 (matmuls accumulate in f32 inside the kernel).
    """
    L = 5 if deep else 1  # regressor2: 5 hidden 512x512 Linears; regressor: 1
    keys = jax.random.split(key, 3 + L)

    def lin(k, fan_in, fan_out):
        bound = 1.0 / float(fan_in) ** 0.5
        kw, kb = jax.random.split(k)
        w = jax.random.uniform(kw, (fan_in, fan_out), jnp.float32, -bound, bound)
        b = jax.random.uniform(kb, (1, fan_out), jnp.float32, -bound, bound)
        return w.astype(jnp.bfloat16), b

    w1, b1 = lin(keys[0], dv, EMB)    # stand-in model1
    w2, b2 = lin(keys[1], da, EMB)    # stand-in model2

    whs, bhs = [], []
    for i in range(L):
        w, b = lin(keys[2 + i], CAT, CAT)
        whs.append(w)
        bhs.append(b)
    wh = jnp.stack(whs, axis=0)                      # (L, 512, 512) bf16
    bh = jnp.stack(bhs, axis=0)                      # (L, 1, 512)   f32

    wo, bo = lin(keys[2 + L], CAT, 1)                # final Linear(512, 1)

    return {"w1": w1, "b1": b1, "w2": w2, "b2": b2,
            "wh": wh, "bh": bh, "wo": wo, "bo": bo}


def _reference(video, audio, params):
    """Plain-JAX reference performing the same (bf16-weight, f32-accum) math."""
    bf16, f32 = jnp.bfloat16, jnp.float32
    v = jnp.dot(video.astype(bf16), params["w1"],
                preferred_element_type=f32) + params["b1"]
    a = jnp.dot(audio.astype(bf16), params["w2"],
                preferred_element_type=f32) + params["b2"]
    wh, bh = params["wh"], params["bh"]
    h = (jnp.dot(v.astype(bf16), wh[0, :EMB, :], preferred_element_type=f32)
         + jnp.dot(a.astype(bf16), wh[0, EMB:, :], preferred_element_type=f32)
         + bh[0])
    for l in range(1, wh.shape[0]):
        h = jnp.dot(h.astype(bf16), wh[l], preferred_element_type=f32) + bh[l]
    return jnp.dot(h.astype(bf16), params["wo"],
                   preferred_element_type=f32) + params["bo"]


if __name__ == "__main__":
    key = jax.random.PRNGKey(0)
    k_v, k_a, k_p = jax.random.split(key, 3)

    B, Dv, Da = 2, 128, 128
    video = jax.random.normal(k_v, (B, Dv), jnp.float32)
    audio = jax.random.normal(k_a, (B, Da), jnp.float32)

    # Exercise both the shallow path (self.regressor) and the deep path
    # (self.regressor2, 5 pipelined hidden-layer grid steps).
    for deep in (False, True):
        params = init_params(k_p, Dv, Da, deep=deep)
        out = jax.block_until_ready(ensemble_forward(video, audio, params))
        ref = _reference(video, audio, params)
        assert out.shape == (B, 1)
        assert jnp.allclose(out, ref, atol=2e-3, rtol=2e-3), (deep, out, ref)

    print("KERNEL_OK")
</pallas_src>

<mosaic_0001>
module attributes {stable_mosaic.version = 11 : i64} {
  func.func @_ensemble_kernel(%arg0: i32, %arg1: i32, %arg2: memref<128x128xf32, #tpu.memory_space<vmem>>, %arg3: memref<128x128xf32, #tpu.memory_space<vmem>>, %arg4: memref<128x256xbf16, #tpu.memory_space<vmem>>, %arg5: memref<1x256xf32, #tpu.memory_space<vmem>>, %arg6: memref<128x256xbf16, #tpu.memory_space<vmem>>, %arg7: memref<1x256xf32, #tpu.memory_space<vmem>>, %arg8: memref<1x512x512xbf16, #tpu.memory_space<vmem>>, %arg9: memref<1x1x512xf32, #tpu.memory_space<vmem>>, %arg10: memref<512x128xbf16, #tpu.memory_space<vmem>>, %arg11: memref<1x128xf32, #tpu.memory_space<vmem>>, %arg12: memref<128x128xf32, #tpu.memory_space<vmem>>, %arg13: memref<128x512xf32, #tpu.memory_space<vmem>>) attributes {dimension_semantics = [#tpu.dimension_semantics<parallel>, #tpu.dimension_semantics<arbitrary>], iteration_bounds = array<i64: 1, 1>, scalar_prefetch = 0 : i64, scratch_operands = 1 : i64, tpu.core_type = #tpu.core_type<tc>, window_params = [{transform_indices = @transform_0, window_bounds = array<i64: 128, 128>}, {transform_indices = @transform_1, window_bounds = array<i64: 128, 128>}, {pipeline_mode = #tpu.pipeline_mode<synchronous>, transform_indices = @transform_2, window_bounds = array<i64: 128, 256>}, {pipeline_mode = #tpu.pipeline_mode<synchronous>, transform_indices = @transform_3, window_bounds = array<i64: 1, 256>}, {pipeline_mode = #tpu.pipeline_mode<synchronous>, transform_indices = @transform_4, window_bounds = array<i64: 128, 256>}, {pipeline_mode = #tpu.pipeline_mode<synchronous>, transform_indices = @transform_5, window_bounds = array<i64: 1, 256>}, {transform_indices = @transform_6, window_bounds = array<i64: 1, 512, 512>}, {transform_indices = @transform_7, window_bounds = array<i64: 1, 1, 512>}, {pipeline_mode = #tpu.pipeline_mode<synchronous>, transform_indices = @transform_8, window_bounds = array<i64: 512, 128>}, {pipeline_mode = #tpu.pipeline_mode<synchronous>, transform_indices = @transform_9, window_bounds = array<i64: 1, 128>}, {transform_indices = @transform_10, window_bounds = array<i64: 128, 128>}]} {
    %c0_i32 = arith.constant 0 : i32
    %0 = arith.cmpi eq, %arg1, %c0_i32 : i32
    %1 = arith.extui %0 : i1 to i32
    %c0_i32_0 = arith.constant 0 : i32
    %2 = arith.cmpi ne, %1, %c0_i32_0 : i32
    scf.if %2 {
      %c0 = arith.constant 0 : index
      %c0_5 = arith.constant 0 : index
      %9 = vector.load %arg2[%c0, %c0_5] : memref<128x128xf32, #tpu.memory_space<vmem>>, vector<128x128xf32>
      %10 = arith.truncf %9 : vector<128x128xf32> to vector<128x128xbf16>
      %c0_6 = arith.constant 0 : index
      %c0_7 = arith.constant 0 : index
      %11 = vector.load %arg4[%c0_6, %c0_7] : memref<128x256xbf16, #tpu.memory_space<vmem>>, vector<128x256xbf16>
      %cst = arith.constant dense<0.000000e+00> : vector<128x256xf32>
      %12 = tpu.matmul %10, %11, %cst {dimension_numbers = #tpu.dot_dimension_numbers<[1], [0], [0], [1], [0, 0, 1, 1], [], []>} : vector<128x128xbf16>, vector<128x256xbf16>, vector<128x256xf32> -> vector<128x256xf32>
      %c0_8 = arith.constant 0 : index
      %c0_9 = arith.constant 0 : index
      %13 = vector.load %arg5[%c0_8, %c0_9] : memref<1x256xf32, #tpu.memory_space<vmem>>, vector<1x256xf32>
      %14 = vector.broadcast %13 : vector<1x256xf32> to vector<128x256xf32>
      %15 = arith.addf %12, %14 : vector<128x256xf32>
      %c0_10 = arith.constant 0 : index
      %c0_11 = arith.constant 0 : index
      %16 = vector.load %arg3[%c0_10, %c0_11] : memref<128x128xf32, #tpu.memory_space<vmem>>, vector<128x128xf32>
      %17 = arith.truncf %16 : vector<128x128xf32> to vector<128x128xbf16>
      %c0_12 = arith.constant 0 : index
      %c0_13 = arith.constant 0 : index
      %18 = vector.load %arg6[%c0_12, %c0_13] : memref<128x256xbf16, #tpu.memory_space<vmem>>, vector<128x256xbf16>
      %cst_14 = arith.constant dense<0.000000e+00> : vector<128x256xf32>
      %19 = tpu.matmul %17, %18, %cst_14 {dimension_numbers = #tpu.dot_dimension_numbers<[1], [0], [0], [1], [0, 0, 1, 1], [], []>} : vector<128x128xbf16>, vector<128x256xbf16>, vector<128x256xf32> -> vector<128x256xf32>
      %c0_15 = arith.constant 0 : index
      %c0_16 = arith.constant 0 : index
      %20 = vector.load %arg7[%c0_15, %c0_16] : memref<1x256xf32, #tpu.memory_space<vmem>>, vector<1x256xf32>
      %21 = vector.broadcast %20 : vector<1x256xf32> to vector<128x256xf32>
      %22 = arith.addf %19, %21 : vector<128x256xf32>
      %c0_17 = arith.constant 0 : index
      %c0_18 = arith.constant 0 : index
      %c0_19 = arith.constant 0 : index
      %23 = vector.load %arg8[%c0_17, %c0_18, %c0_19] : memref<1x512x512xbf16, #tpu.memory_space<vmem>>, vector<1x512x512xbf16>
      %24 = vector.shape_cast %23 : vector<1x512x512xbf16> to vector<512x512xbf16>
      %25 = arith.truncf %15 : vector<128x256xf32> to vector<128x256xbf16>
      %26 = vector.extract_strided_slice %24 {offsets = [0, 0], sizes = [256, 512], strides = [1, 1]} : vector<512x512xbf16> to vector<256x512xbf16>
      %cst_20 = arith.constant dense<0.000000e+00> : vector<128x512xf32>
      %27 = tpu.matmul %25, %26, %cst_20 {dimension_numbers = #tpu.dot_dimension_numbers<[1], [0], [0], [1], [0, 0, 1, 1], [], []>} : vector<128x256xbf16>, vector<256x512xbf16>, vector<128x512xf32> -> vector<128x512xf32>
      %28 = arith.truncf %22 : vector<128x256xf32> to vector<128x256xbf16>
      %29 = vector.extract_strided_slice %24 {offsets = [256, 0], sizes = [256, 512], strides = [1, 1]} : vector<512x512xbf16> to vector<256x512xbf16>
      %cst_21 = arith.constant dense<0.000000e+00> : vector<128x512xf32>
      %30 = tpu.matmul %28, %29, %cst_21 {dimension_numbers = #tpu.dot_dimension_numbers<[1], [0], [0], [1], [0, 0, 1, 1], [], []>} : vector<128x256xbf16>, vector<256x512xbf16>, vector<128x512xf32> -> vector<128x512xf32>
      %31 = arith.addf %27, %30 : vector<128x512xf32>
      %c0_22 = arith.constant 0 : index
      %c0_23 = arith.constant 0 : index
      %c0_24 = arith.constant 0 : index
      %32 = vector.load %arg9[%c0_22, %c0_23, %c0_24] : memref<1x1x512xf32, #tpu.memory_space<vmem>>, vector<1x1x512xf32>
      %33 = vector.shape_cast %32 : vector<1x1x512xf32> to vector<1x512xf32>
      %34 = vector.broadcast %33 : vector<1x512xf32> to vector<128x512xf32>
      %35 = arith.addf %31, %34 : vector<128x512xf32>
      %c0_25 = arith.constant 0 : index
      %c0_26 = arith.constant 0 : index
      %36 = vector.load %arg13[%c0_25, %c0_26] : memref<128x512xf32, #tpu.memory_space<vmem>>, vector<128x512xf32>
      tpu.vector_store %arg13[%c0_25, %c0_26], %35 {strides = array<i32>} : memref<128x512xf32, #tpu.memory_space<vmem>>, vector<128x512xf32>,
    } else {
    }
    %c0_i32_1 = arith.constant 0 : i32
    %3 = arith.cmpi sgt, %arg1, %c0_i32_1 : i32
    %4 = arith.extui %3 : i1 to i32
    %c0_i32_2 = arith.constant 0 : i32
    %5 = arith.cmpi ne, %4, %c0_i32_2 : i32
    scf.if %5 {
      %c0 = arith.constant 0 : index
      %c0_5 = arith.constant 0 : index
      %9 = vector.load %arg13[%c0, %c0_5] : memref<128x512xf32, #tpu.memory_space<vmem>>, vector<128x512xf32>
      %10 = arith.truncf %9 : vector<128x512xf32> to vector<128x512xbf16>
      %c0_6 = arith.constant 0 : index
      %c0_7 = arith.constant 0 : index
      %c0_8 = arith.constant 0 : index
      %11 = vector.load %arg8[%c0_6, %c0_7, %c0_8] : memref<1x512x512xbf16, #tpu.memory_space<vmem>>, vector<1x512x512xbf16>
      %12 = vector.shape_cast %11 : vector<1x512x512xbf16> to vector<512x512xbf16>
      %cst = arith.constant dense<0.000000e+00> : vector<128x512xf32>
      %13 = tpu.matmul %10, %12, %cst {dimension_numbers = #tpu.dot_dimension_numbers<[1], [0], [0], [1], [0, 0, 1, 1], [], []>} : vector<128x512xbf16>, vector<512x512xbf16>, vector<128x512xf32> -> vector<128x512xf32>
      %c0_9 = arith.constant 0 : index
      %c0_10 = arith.constant 0 : index
      %c0_11 = arith.constant 0 : index
      %14 = vector.load %arg9[%c0_9, %c0_10, %c0_11] : memref<1x1x512xf32, #tpu.memory_space<vmem>>, vector<1x1x512xf32>
      %15 = vector.shape_cast %14 : vector<1x1x512xf32> to vector<1x512xf32>
      %16 = vector.broadcast %15 : vector<1x512xf32> to vector<128x512xf32>
      %17 = arith.addf %13, %16 : vector<128x512xf32>
      %c0_12 = arith.constant 0 : index
      %c0_13 = arith.constant 0 : index
      %18 = vector.load %arg13[%c0_12, %c0_13] : memref<128x512xf32, #tpu.memory_space<vmem>>, vector<128x512xf32>
      tpu.vector_store %arg13[%c0_12, %c0_13], %17 {strides = array<i32>} : memref<128x512xf32, #tpu.memory_space<vmem>>, vector<128x512xf32>,
    } else {
    }
    %c0_i32_3 = arith.constant 0 : i32
    %6 = arith.cmpi eq, %arg1, %c0_i32_3 : i32
    %7 = arith.extui %6 : i1 to i32
    %c0_i32_4 = arith.constant 0 : i32
    %8 = arith.cmpi ne, %7, %c0_i32_4 : i32
    scf.if %8 {
      %c0 = arith.constant 0 : index
      %c0_5 = arith.constant 0 : index
      %9 = vector.load %arg13[%c0, %c0_5] : memref<128x512xf32, #tpu.memory_space<vmem>>, vector<128x512xf32>
      %10 = arith.truncf %9 : vector<128x512xf32> to vector<128x512xbf16>
      %c0_6 = arith.constant 0 : index
      %c0_7 = arith.constant 0 : index
      %11 = vector.load %arg10[%c0_6, %c0_7] : memref<512x128xbf16, #tpu.memory_space<vmem>>, vector<512x128xbf16>
      %cst = arith.constant dense<0.000000e+00> : vector<128x128xf32>
      %12 = tpu.matmul %10, %11, %cst {dimension_numbers = #tpu.dot_dimension_numbers<[1], [0], [0], [1], [0, 0, 1, 1], [], []>} : vector<128x512xbf16>, vector<512x128xbf16>, vector<128x128xf32> -> vector<128x128xf32>
      %c0_8 = arith.constant 0 : index
      %c0_9 = arith.constant 0 : index
      %13 = vector.load %arg11[%c0_8, %c0_9] : memref<1x128xf32, #tpu.memory_space<vmem>>, vector<1x128xf32>
      %14 = vector.broadcast %13 : vector<1x128xf32> to vector<128x128xf32>
      %15 = arith.addf %12, %14 : vector<128x128xf32>
      %c0_10 = arith.constant 0 : index
      %c0_11 = arith.constant 0 : index
      %16 = vector.load %arg12[%c0_10, %c0_11] : memref<128x128xf32, #tpu.memory_space<vmem>>, vector<128x128xf32>
      tpu.vector_store %arg12[%c0_10, %c0_11], %15 {strides = array<i32>} : memref<128x128xf32, #tpu.memory_space<vmem>>, vector<128x128xf32>,
    } else {
    }
    return
  }
  func.func @transform_0(%arg0: i32, %arg1: i32) -> (i32, i32) {
    %c0_i32 = arith.constant 0 : i32
    %c0_i32_0 = arith.constant 0 : i32
    return %arg0, %c0_i32 : i32, i32
  }
  func.func @transform_1(%arg0: i32, %arg1: i32) -> (i32, i32) {
    %c0_i32 = arith.constant 0 : i32
    %c0_i32_0 = arith.constant 0 : i32
    return %arg0, %c0_i32 : i32, i32
  }
  func.func @transform_2(%arg0: i32, %arg1: i32) -> (i32, i32) {
    %c0_i32 = arith.constant 0 : i32
    %c0_i32_0 = arith.constant 0 : i32
    %c0_i32_1 = arith.constant 0 : i32
    return %c0_i32, %c0_i32_0 : i32, i32
  }
  func.func @transform_3(%arg0: i32, %arg1: i32) -> (i32, i32) {
    %c0_i32 = arith.constant 0 : i32
    %c0_i32_0 = arith.constant 0 : i32
    %c0_i32_1 = arith.constant 0 : i32
    return %c0_i32, %c0_i32_0 : i32, i32
  }
  func.func @transform_4(%arg0: i32, %arg1: i32) -> (i32, i32) {
    %c0_i32 = arith.constant 0 : i32
    %c0_i32_0 = arith.constant 0 : i32
    %c0_i32_1 = arith.constant 0 : i32
    return %c0_i32, %c0_i32_0 : i32, i32
  }
  func.func @transform_5(%arg0: i32, %arg1: i32) -> (i32, i32) {
    %c0_i32 = arith.constant 0 : i32
    %c0_i32_0 = arith.constant 0 : i32
    %c0_i32_1 = arith.constant 0 : i32
    return %c0_i32, %c0_i32_0 : i32, i32
  }
  func.func @transform_6(%arg0: i32, %arg1: i32) -> (i32, i32, i32) {
    %c0_i32 = arith.constant 0 : i32
    %c0_i32_0 = arith.constant 0 : i32
    %c0_i32_1 = arith.constant 0 : i32
    return %arg1, %c0_i32, %c0_i32_0 : i32, i32, i32
  }
  func.func @transform_7(%arg0: i32, %arg1: i32) -> (i32, i32, i32) {
    %c0_i32 = arith.constant 0 : i32
    %c0_i32_0 = arith.constant 0 : i32
    %c0_i32_1 = arith.constant 0 : i32
    return %arg1, %c0_i32, %c0_i32_0 : i32, i32, i32
  }
  func.func @transform_8(%arg0: i32, %arg1: i32) -> (i32, i32) {
    %c0_i32 = arith.constant 0 : i32
    %c0_i32_0 = arith.constant 0 : i32
    %c0_i32_1 = arith.constant 0 : i32
    return %c0_i32, %c0_i32_0 : i32, i32
  }
  func.func @transform_9(%arg0: i32, %arg1: i32) -> (i32, i32) {
    %c0_i32 = arith.constant 0 : i32
    %c0_i32_0 = arith.constant 0 : i32
    %c0_i32_1 = arith.constant 0 : i32
    return %c0_i32, %c0_i32_0 : i32, i32
  }
  func.func @transform_10(%arg0: i32, %arg1: i32) -> (i32, i32) {
    %c0_i32 = arith.constant 0 : i32
    %c0_i32_0 = arith.constant 0 : i32
    return %arg0, %c0_i32 : i32, i32
  }
}

</mosaic_0001>

<bundles_post_ra>
// kernel: tpu_custom_call.1
= control target key start
LH: loop header
LB: loop body
LE: loop exit
PB: predicated region body
PF: predicated region fallthrough
CT: control target
= control target key end

     0   :  { %15 = vsyncpa [#allocation4], 0  ;;  %s7362_s0 = inlined_call_operand.hbm [shape: f32[128,128], index: 0, kind: input, shape index: {}]   ;;  %s7363_s1 = inlined_call_operand.hbm [shape: f32[128,128], index: 1, kind: input, shape index: {}]   ;;  %s7364_s2 = inlined_call_operand.hbm [shape: bf16[128,256], index: 2, kind: input, shape index: {}]   ;;  %s7365_s3 = inlined_call_operand.vmem [shape: f32[1,256], index: 3, kind: input, shape index: {}]   ;;  %s7366_s4 = inlined_call_operand.hbm [shape: bf16[128,256], index: 4, kind: input, shape index: {}]   ;;  %s7367_s5 = inlined_call_operand.hbm [shape: f32[1,256], index: 5, kind: input, shape index: {}]   ;;  %s7368_s6 = inlined_call_operand.hbm [shape: bf16[1,512,512], index: 6, kind: input, shape index: {}]   ;;  %s7369_s7 = inlined_call_operand.vmem [shape: f32[1,1,512], index: 7, kind: input, shape index: {}]   ;;  %s7370_s8 = inlined_call_operand.hbm [shape: bf16[512,128], index: 8, kind: input, shape index: {}]   ;;  %s7371_s9 = inlined_call_operand.vmem [shape: f32[1,128], index: 9, kind: input, shape index: {}]   ;;  %s7372_s10 = inlined_call_operand.hbm [shape: f32[128,128], index: 10, kind: output, shape index: {}]  }
   0x1   :  { %16 = vsyncpa [#allocation7], 0 }
   0x2   :  { %17 = vsyncpa [#allocation10], 0 }
   0x3   :  { %18 = vsyncpa [#allocation13], 0 }
   0x4   :  { %19 = vsyncpa [#allocation5], 0  ;;  %s37_s15 = sshll.u32 %s7363_s1, 4  ;;  %s6453_s16 = smov [#allocation6]   ;;  %s38_s15 = int_to_ptr.hbm [resolvable:$true] %s37_s15 }
   0x5   :  { %s39_s17 = sshll.u32 %s6453_s16, 4  ;;  %s65_s20 = sshll.u32 %s7366_s4, 4  ;;  %s40_s17 = int_to_ptr.vmem [resolvable:$true] %s39_s17  ;;  %s66_s20 = int_to_ptr.hbm [resolvable:$true] %s65_s20 }
   0x6   :  { %s6454_s21 = smov 128   ;;  %s6455_s22 = smov 8  }
   0x7   :  { %45 = dma.hbm_to_vmem [thread:$0]  %s38_s15, 2048, %s40_s17, [#allocation7], %s6454_s21, %s6454_s21, %s6455_s22  }
   0x8   :  { %s6456_s23 = smov [#allocation9]   ;;  %s89_s1 = sshll.u32 %s7368_s6, 4  ;;  %s90_s1 = int_to_ptr.hbm [resolvable:$true] %s89_s1 }
   0x9   :  { %s67_s24 = sshll.u32 %s6456_s23, 4  ;;  %s6457_s4 = smov [#allocation12]   ;;  %s68_s24 = int_to_ptr.vmem [resolvable:$true] %s67_s24 }
   0xa   :  { %73 = dma.hbm_to_vmem [thread:$0]  %s66_s20, 2048, %s68_s24, [#allocation10], %s6454_s21, %s6454_s21, %s6455_s22  }
   0xb   :  { %s91_s27 = sshll.u32 %s6457_s4, 4  ;;  %s24_s30 = sshll.u32 %s7362_s0, 4  ;;  %s92_s27 = int_to_ptr.vmem [resolvable:$true] %s91_s27  ;;  %s25_s30 = int_to_ptr.hbm [resolvable:$true] %s24_s30 }
   0xc   :  { %s6458_s11 = smov 256   ;;  %s6459_s12 = smov 16  }
   0xd   :  { %97 = dma.hbm_to_vmem [thread:$0]  %s90_s1, 16384, %s92_s27, [#allocation13], %s6458_s11, %s6458_s11, %s6459_s12  }
   0xe   :  { %s6460_s13 = smov [#allocation3]   ;;  %s50_s16 = sshll.u32 %s7364_s2, 4  ;;  %s51_s16 = int_to_ptr.hbm [resolvable:$true] %s50_s16 }
   0xf   :  { %s26_s14 = sshll.u32 %s6460_s13, 4  ;;  %s79_s0 = sshll.u32 %s7367_s5, 4  ;;  %s27_s14 = int_to_ptr.vmem [resolvable:$true] %s26_s14  ;;  %s80_s0 = int_to_ptr.hbm [resolvable:$true] %s79_s0 }
  0x10   :  { %32 = dma.hbm_to_vmem [thread:$0]  %s25_s30, 2048, %s27_s14, [#allocation4], %s6454_s21, %s6454_s21, %s6455_s22  }
  0x11   :  { %s6461_s19 = smov [#allocation8]   ;;  %s6462_s23 = smov [#allocation11]  }
  0x12   :  { %s52_s20 = sshll.u32 %s6461_s19, 4  ;;  %s81_s2 = sshll.u32 %s6462_s23, 4  ;;  %s53_s20 = int_to_ptr.vmem [resolvable:$true] %s52_s20  ;;  %s82_s2 = int_to_ptr.vmem [resolvable:$true] %s81_s2 }
  0x13   :  { %58 = dma.hbm_to_vmem [thread:$0]  %s51_s16, 2048, %s53_s20, [#allocation7], %s6454_s21, %s6454_s21, %s6455_s22  }
  0x14   :  { %s104_s26 = sshll.u32 %s7370_s8, 4  ;;  %s6463_s1 = smov [#allocation14]   ;;  %s105_s26 = int_to_ptr.hbm [resolvable:$true] %s104_s26 }
  0x15   :  { %84 = dma.hbm_to_vmem [thread:$0]  %s80_s0, 32, %s82_s2, [#allocation10]  }
  0x16   :  { %s106_s4 = sshll.u32 %s6463_s1, 4  ;;  %s6464_s5 = smov 64   ;;  %s107_s4 = int_to_ptr.vmem [resolvable:$true] %s106_s4 }
  0x17   :  { %s6465_s27 = smov 4  }
  0x18   :  { %112 = dma.hbm_to_vmem [thread:$0]  %s105_s26, 4096, %s107_s4, [#allocation13], %s6464_s5, %s6464_s5, %s6465_s27  }
  0x19   :  { %6443 = dma.done.wait [#allocation4], 2048  }
  0x1a   :  { %6444 = vsyncadd [#allocation4], 4294965248 }
  0x1b   :  { %6445 = dma.done.wait [#allocation7], 4096  }
  0x1c   :  { %6446 = vsyncadd [#allocation7], 4294963200 }
  0x1d   :  { %6447 = dma.done.wait [#allocation10], 2080  }
  0x1e   :  { %6448 = vsyncadd [#allocation10], 4294965216 }
  0x1f   :  { %6449 = dma.done.wait [#allocation13], 20480  }
  0x20   :  { %6450 = vsyncadd [#allocation13], 4294946816  ;;  %v4758_v0 = vld [vmem:[#allocation9 + $0x70] sm:$0xf]  ;;  %v5947_v1 = vld [vmem:[#allocation9 + $0x74] sm:$0xf0] }
  0x21   :  { %v5946_v2 = vld [vmem:[#allocation9 + $0x74] sm:$0xf]  ;;  %v4759_v3 = vor.u32 %v5947_v1, %v4758_v0  ;;  %v4760_v4 = vld [vmem:[#allocation9 + $0x78] sm:$0xf0]  ;;  %v4750_v5 = vld [vmem:[#allocation9 + $0x60] sm:$0xf] }
  0x22   :  { %v5945_v6 = vld [vmem:[#allocation9 + $0x64] sm:$0xf0]  ;;  %v4763_v7 = vor.u32 %v5946_v2, %v4760_v4  ;;  %v5944_v8 = vld [vmem:[#allocation9 + $0x64] sm:$0xf]  ;;  %v4752_v9 = vld [vmem:[#allocation9 + $0x68] sm:$0xf0] }
  0x23   :  { %497 = vmatpush.bf16.msra.mxu2 %v4759_v3  ;;  %v4751_v10 = vor.u32 %v5945_v6, %v4750_v5  ;;  %v4742_v11 = vld [vmem:[#allocation9 + $0x50] sm:$0xf]  ;;  %v4755_v12 = vor.u32 %v5944_v8, %v4752_v9  ;;  %v5943_v13 = vld [vmem:[#allocation9 + $0x54] sm:$0xf0]  ;;  %v5942_v16 = vld [vmem:[#allocation9 + $0x54] sm:$0xf] }
  0x24   :  { %546 = vmatpush.bf16.msra.mxu3 %v4763_v7  ;;  %v4694_v14 = vld [vmem:[#allocation8 + $0x70] sm:$0xf]  ;;  %v5931_v15 = vld [vmem:[#allocation8 + $0x74] sm:$0xf0]  ;;  %v4744_v17 = vld [vmem:[#allocation9 + $0x58] sm:$0xf0]  ;;  %v4743_v22 = vor.u32 %v5943_v13, %v4742_v11 }
  0x25   :  { %v4695_v18 = vor.u32 %v5931_v15, %v4694_v14  ;;  %v5930_v19 = vld [vmem:[#allocation8 + $0x74] sm:$0xf]  ;;  %v4696_v20 = vld [vmem:[#allocation8 + $0x78] sm:$0xf0]  ;;  %v4686_v21 = vld [vmem:[#allocation8 + $0x60] sm:$0xf]  ;;  %v4747_v27 = vor.u32 %v5942_v16, %v4744_v17 }
  0x26   :  { %v4734_v23 = vld [vmem:[#allocation9 + $0x40] sm:$0xf]  ;;  %v5941_v24 = vld [vmem:[#allocation9 + $0x44] sm:$0xf0]  ;;  %v4699_v25 = vor.u32 %v5930_v19, %v4696_v20  ;;  %v5940_v28 = vld [vmem:[#allocation9 + $0x44] sm:$0xf] }
  0x27   :  { %498 = vmatpush.bf16.msra.mxu2 %v4751_v10  ;;  %273 = vmatpush.bf16.msra.mxu0 %v4695_v18  ;;  %v5929_v26 = vld [vmem:[#allocation8 + $0x64] sm:$0xf0]  ;;  %v4736_v29 = vld [vmem:[#allocation9 + $0x48] sm:$0xf0]  ;;  %v5928_v31 = vld [vmem:[#allocation8 + $0x64] sm:$0xf]  ;;  %v4735_v36 = vor.u32 %v5941_v24, %v4734_v23 }
  0x28   :  { %547 = vmatpush.bf16.msra.mxu3 %v4755_v12  ;;  %v4687_v30 = vor.u32 %v5929_v26, %v4686_v21  ;;  %322 = vmatpush.bf16.msra.mxu1 %v4699_v25  ;;  %v4688_v32 = vld [vmem:[#allocation8 + $0x68] sm:$0xf0]  ;;  %v4678_v33 = vld [vmem:[#allocation8 + $0x50] sm:$0xf]  ;;  %v5927_v34 = vld [vmem:[#allocation8 + $0x54] sm:$0xf0]  ;;  %v4739_v41 = vor.u32 %v5940_v28, %v4736_v29 }
  0x29   :  { %v4691_v35 = vor.u32 %v5928_v31, %v4688_v32  ;;  %v4726_v37 = vld [vmem:[#allocation9 + $0x30] sm:$0xf]  ;;  %v4679_v38 = vor.u32 %v5927_v34, %v4678_v33  ;;  %v5926_v39 = vld [vmem:[#allocation8 + $0x54] sm:$0xf]  ;;  %v4680_v40 = vld [vmem:[#allocation8 + $0x58] sm:$0xf0] }
  0x2a   :  { %v5939_v42 = vld [vmem:[#allocation9 + $0x34] sm:$0xf0]  ;;  %v4670_v43 = vld [vmem:[#allocation8 + $0x40] sm:$0xf]  ;;  %v5925_v44 = vld [vmem:[#allocation8 + $0x44] sm:$0xf0]  ;;  %v4683_v47 = vor.u32 %v5926_v39, %v4680_v40 }
  0x2b   :  { %499 = vmatpush.bf16.msra.mxu2 %v4743_v22  ;;  %274 = vmatpush.bf16.msra.mxu0 %v4687_v30  ;;  %v5938_v45 = vld [vmem:[#allocation9 + $0x34] sm:$0xf]  ;;  %v4728_v46 = vld [vmem:[#allocation9 + $0x38] sm:$0xf0]  ;;  %v5924_v48 = vld [vmem:[#allocation8 + $0x44] sm:$0xf]  ;;  %v4727_v50 = vor.u32 %v5939_v42, %v4726_v37  ;;  %v4671_v52 = vor.u32 %v5925_v44, %v4670_v43 }
  0x2c   :  { %548 = vmatpush.bf16.msra.mxu3 %v4747_v27  ;;  %323 = vmatpush.bf16.msra.mxu1 %v4691_v35  ;;  %v4672_v49 = vld [vmem:[#allocation8 + $0x48] sm:$0xf0]  ;;  %v4718_v51 = vld [vmem:[#allocation9 + $0x20] sm:$0xf]  ;;  %v4731_v53 = vor.u32 %v5938_v45, %v4728_v46  ;;  %v5937_v54 = vld [vmem:[#allocation9 + $0x24] sm:$0xf0] }
  0x2d   :  { %v4662_v55 = vld [vmem:[#allocation8 + $0x30] sm:$0xf]  ;;  %v5923_v56 = vld [vmem:[#allocation8 + $0x34] sm:$0xf0]  ;;  %v5936_v57 = vld [vmem:[#allocation9 + $0x24] sm:$0xf]  ;;  %v4675_v59 = vor.u32 %v5924_v48, %v4672_v49  ;;  %v4719_v62 = vor.u32 %v5937_v54, %v4718_v51 }
  0x2e   :  { %v4720_v58 = vld [vmem:[#allocation9 + $0x28] sm:$0xf0]  ;;  %v5922_v60 = vld [vmem:[#allocation8 + $0x34] sm:$0xf]  ;;  %v4664_v61 = vld [vmem:[#allocation8 + $0x38] sm:$0xf0]  ;;  %v4663_v0 = vor.u32 %v5923_v56, %v4662_v55 }
  0x2f   :  { %500 = vmatpush.bf16.msra.mxu2 %v4735_v36  ;;  %275 = vmatpush.bf16.msra.mxu0 %v4679_v38  ;;  %v4710_v63 = vld [vmem:[#allocation9 + $0x10] sm:$0xf]  ;;  %v4723_v1 = vor.u32 %v5936_v57, %v4720_v58  ;;  %v5935_v2 = vld [vmem:[#allocation9 + $0x14] sm:$0xf0]  ;;  %v4654_v3 = vld [vmem:[#allocation8 + $0x20] sm:$0xf]  ;;  %v4667_v7 = vor.u32 %v5922_v60, %v4664_v61 }
  0x30   :  { %549 = vmatpush.bf16.msra.mxu3 %v4739_v41  ;;  %324 = vmatpush.bf16.msra.mxu1 %v4683_v47  ;;  %v5921_v4 = vld [vmem:[#allocation8 + $0x24] sm:$0xf0]  ;;  %v5934_v5 = vld [vmem:[#allocation9 + $0x14] sm:$0xf]  ;;  %v4712_v6 = vld [vmem:[#allocation9 + $0x18] sm:$0xf0]  ;;  %v4711_v10 = vor.u32 %v5935_v2, %v4710_v63 }
  0x31   :  { %v5920_v8 = vld [vmem:[#allocation8 + $0x24] sm:$0xf]  ;;  %v4656_v9 = vld [vmem:[#allocation8 + $0x28] sm:$0xf0]  ;;  %v4702_v11 = vld [vmem:[#allocation9] sm:$0xf]  ;;  %v4655_v14 = vor.u32 %v5921_v4, %v4654_v3  ;;  %v4715_v15 = vor.u32 %v5934_v5, %v4712_v6 }
  0x32   :  { %v5933_v12 = vld [vmem:[#allocation9 + $0x4] sm:$0xf0]  ;;  %v5932_v13 = vld [vmem:[#allocation9 + $0x4] sm:$0xf]  ;;  %v4704_v16 = vld [vmem:[#allocation9 + $0x8] sm:$0xf0]  ;;  %v4659_v19 = vor.u32 %v5920_v8, %v4656_v9 }
  0x33   :  { %501 = vmatpush.bf16.msra.mxu2 %v4727_v50  ;;  %276 = vmatpush.bf16.msra.mxu0 %v4671_v52  ;;  %v4646_v17 = vld [vmem:[#allocation8 + $0x10] sm:$0xf]  ;;  %v5919_v18 = vld [vmem:[#allocation8 + $0x14] sm:$0xf0]  ;;  %v5918_v20 = vld [vmem:[#allocation8 + $0x14] sm:$0xf]  ;;  %v4703_v26 = vor.u32 %v5933_v12, %v4702_v11  ;;  %v4707_v30 = vor.u32 %v5932_v13, %v4704_v16 }
  0x34   :  { %550 = vmatpush.bf16.msra.mxu3 %v4731_v53  ;;  %325 = vmatpush.bf16.msra.mxu1 %v4675_v59  ;;  %v6040_v21 = vld [vmem:[#allocation12 + $0x2e4] sm:$0xf]  ;;  %v4880_v22 = vld [vmem:[#allocation12 + $0x2f0] sm:$0xf0]  ;;  %v4648_v23 = vld [vmem:[#allocation8 + $0x18] sm:$0xf0]  ;;  %v4647_v29 = vor.u32 %v5919_v18, %v4646_v17 }
  0x35   :  { %v6072_v24 = vld [vmem:[#allocation12 + $0x3e4] sm:$0xf]  ;;  %v5008_v25 = vld [vmem:[#allocation12 + $0x3f0] sm:$0xf0]  ;;  %v4638_v31 = vld [vmem:[#allocation8] sm:$0xf]  ;;  %v4883_v33 = vor.u32 %v6040_v21, %v4880_v22  ;;  %v4651_v34 = vor.u32 %v5918_v20, %v4648_v23 }
  0x36   :  { %v371_v27 = vld [vmem:[#allocation6] sm:$0xff]  ;;  %v372_v28 = vld [vmem:[#allocation6 + $0x8] sm:$0xff]  ;;  %v5011_v35 = vor.u32 %v6072_v24, %v5008_v25  ;;  %v6042_v37 = vld [vmem:[#allocation12 + $0x2ec] sm:$0xf0]  ;;  %s4620_s14 = sshll.u32 %s7372_s10, 4  ;;  %s4621_s14 = int_to_ptr.hbm [resolvable:$true] %s4620_s14 }
  0x37   :  { %502 = vmatpush.bf16.msra.mxu2 %v4719_v62  ;;  %277 = vmatpush.bf16.msra.mxu0 %v4663_v0  ;;  %v5917_v32 = vld [vmem:[#allocation8 + $0x4] sm:$0xf0]  ;;  %v4878_v36 = vld [vmem:[#allocation12 + $0x2e0] sm:$0xf]  ;;  %v387_v38 = vpack.c.bf16 %v372_v28, %v371_v27  ;;  %v4640_v40 = vld [vmem:[#allocation8 + $0x8] sm:$0xf0] }
  0x38   :  { %551 = vmatpush.bf16.msra.mxu3 %v4723_v1  ;;  %326 = vmatpush.bf16.msra.mxu1 %v4667_v7  ;;  %v5916_v39 = vld [vmem:[#allocation8 + $0x4] sm:$0xf]  ;;  %v4639_v42 = vor.u32 %v5917_v32, %v4638_v31  ;;  %v148_v43 = vld [vmem:[#allocation3 + $0x8] sm:$0xff]  ;;  %v6074_v45 = vld [vmem:[#allocation12 + $0x3ec] sm:$0xf0]  ;;  %v4879_v46 = vor.u32 %v6042_v37, %v4878_v36 }
  0x39   :  { %v147_v41 = vld [vmem:[#allocation3] sm:$0xff]  ;;  %v4643_v47 = vor.u32 %v5916_v39, %v4640_v40  ;;  %v4864_v51 = vld [vmem:[#allocation12 + $0x2d0] sm:$0xf0]  ;;  %v6038_v56 = vld [vmem:[#allocation12 + $0x2cc] sm:$0xf0] }
  0x3a   :  { %v5006_v44 = vld [vmem:[#allocation12 + $0x3e0] sm:$0xf]  ;;  %v163_v48 = vpack.c.bf16 %v148_v43, %v147_v41  ;;  %v6036_v50 = vld [vmem:[#allocation12 + $0x2c4] sm:$0xf]  ;;  %v4992_v54 = vld [vmem:[#allocation12 + $0x3d0] sm:$0xf0] }
  0x3b   :  { %503 = vmatpush.bf16.msra.mxu2 %v4711_v10  ;;  %278 = vmatpush.bf16.msra.mxu0 %v4655_v14  ;;  %v5007_v49 = vor.u32 %v6074_v45, %v5006_v44  ;;  %v6068_v52 = vld [vmem:[#allocation12 + $0x3c4] sm:$0xf]  ;;  %v4867_v53 = vor.u32 %v6036_v50, %v4864_v51  ;;  %v4862_v55 = vld [vmem:[#allocation12 + $0x2c0] sm:$0xf]  ;;  %v6070_v60 = vld [vmem:[#allocation12 + $0x3cc] sm:$0xf0] }
  0x3c   :  { %552 = vmatpush.bf16.msra.mxu3 %v4715_v15  ;;  %327 = vmatpush.bf16.msra.mxu1 %v4659_v19  ;;  %v4995_v57 = vor.u32 %v6068_v52, %v4992_v54  ;;  %v4863_v58 = vor.u32 %v6038_v56, %v4862_v55  ;;  %v4990_v59 = vld [vmem:[#allocation12 + $0x3c0] sm:$0xf]  ;;  %v373_v62 = vld [vmem:[#allocation6 + $0x10] sm:$0xff]  ;;  %v374_v63 = vld [vmem:[#allocation6 + $0x18] sm:$0xff] }
  0x3d   :  { %v4991_v61 = vor.u32 %v6070_v60, %v4990_v59  ;;  %v388_v0 = vpack.c.bf16 %v374_v63, %v373_v62  ;;  %v149_v1 = vld [vmem:[#allocation3 + $0x10] sm:$0xff]  ;;  %v150_v2 = vld [vmem:[#allocation3 + $0x18] sm:$0xff]  ;;  %v6032_v4 = vld [vmem:[#allocation12 + $0x2a4] sm:$0xf] }
  0x3e   :  { %v164_v3 = vpack.c.bf16 %v150_v2, %v149_v1  ;;  %v4848_v5 = vld [vmem:[#allocation12 + $0x2b0] sm:$0xf0]  ;;  %v6064_v6 = vld [vmem:[#allocation12 + $0x3a4] sm:$0xf]  ;;  %v4846_v9 = vld [vmem:[#allocation12 + $0x2a0] sm:$0xf] }
  0x3f   :  { %504 = vmatpush.bf16.msra.mxu2 %v4703_v26  ;;  %279 = vmatpush.bf16.msra.mxu0 %v4647_v29  ;;  %v4851_v7 = vor.u32 %v6032_v4, %v4848_v5  ;;  %v4976_v8 = vld [vmem:[#allocation12 + $0x3b0] sm:$0xf0]  ;;  %v6034_v10 = vld [vmem:[#allocation12 + $0x2ac] sm:$0xf0]  ;;  %v4974_v13 = vld [vmem:[#allocation12 + $0x3a0] sm:$0xf] }
  0x40   :  { %553 = vmatpush.bf16.msra.mxu3 %v4707_v30  ;;  %328 = vmatpush.bf16.msra.mxu1 %v4651_v34  ;;  %v4979_v11 = vor.u32 %v6064_v6, %v4976_v8  ;;  %v4847_v12 = vor.u32 %v6034_v10, %v4846_v9  ;;  %v6066_v14 = vld [vmem:[#allocation12 + $0x3ac] sm:$0xf0]  ;;  %v375_v16 = vld [vmem:[#allocation6 + $0x20] sm:$0xff]  ;;  %v376_v17 = vld [vmem:[#allocation6 + $0x28] sm:$0xff] }
  0x41   :  { %v4975_v15 = vor.u32 %v6066_v14, %v4974_v13  ;;  %v389_v18 = vpack.c.bf16 %v376_v17, %v375_v16  ;;  %v151_v19 = vld [vmem:[#allocation3 + $0x20] sm:$0xff]  ;;  %v152_v20 = vld [vmem:[#allocation3 + $0x28] sm:$0xff]  ;;  %v4832_v23 = vld [vmem:[#allocation12 + $0x290] sm:$0xf0] }
  0x42   :  { %505 = vmatmul.bf16.vlgmr.msra.gmra.mxu2 %v387_v38  ;;  %v165_v21 = vpack.c.bf16 %v152_v20, %v151_v19  ;;  %v6028_v22 = vld [vmem:[#allocation12 + $0x284] sm:$0xf]  ;;  %v4960_v26 = vld [vmem:[#allocation12 + $0x390] sm:$0xf0]  ;;  %v4830_v27 = vld [vmem:[#allocation12 + $0x280] sm:$0xf] }
  0x43   :  { %1173 = vmatpush.bf16.msrb.mxu2 %v4883_v33  ;;  %554 = vmatmul.bf16.vlgmr.msra.gmra.mxu3 %v387_v38  ;;  %v6060_v24 = vld [vmem:[#allocation12 + $0x384] sm:$0xf]  ;;  %v4835_v25 = vor.u32 %v6028_v22, %v4832_v23  ;;  %v6030_v28 = vld [vmem:[#allocation12 + $0x28c] sm:$0xf0]  ;;  %v4958_v31 = vld [vmem:[#allocation12 + $0x380] sm:$0xf] }
  0x44   :  { %1222 = vmatpush.bf16.msrb.mxu3 %v5011_v35  ;;  %280 = vmatpush.bf16.msra.mxu0 %v4639_v42  ;;  %v4963_v29 = vor.u32 %v6060_v24, %v4960_v26  ;;  %v4831_v30 = vor.u32 %v6030_v28, %v4830_v27  ;;  %v6062_v32 = vld [vmem:[#allocation12 + $0x38c] sm:$0xf0]  ;;  %v378_v35 = vld [vmem:[#allocation6 + $0x38] sm:$0xff]  ;;  %v6024_v40 = vld [vmem:[#allocation12 + $0x264] sm:$0xf] }
  0x45   :  { %329 = vmatpush.bf16.msra.mxu1 %v4643_v47  ;;  %v4959_v33 = vor.u32 %v6062_v32, %v4958_v31  ;;  %v377_v34 = vld [vmem:[#allocation6 + $0x30] sm:$0xff]  ;;  %v154_v38 = vld [vmem:[#allocation3 + $0x38] sm:$0xff]  ;;  %v6056_v42 = vld [vmem:[#allocation12 + $0x364] sm:$0xf] }
  0x46   :  { %v390_v36 = vpack.c.bf16 %v378_v35, %v377_v34  ;;  %v153_v37 = vld [vmem:[#allocation3 + $0x30] sm:$0xff]  ;;  %v4814_v45 = vld [vmem:[#allocation12 + $0x260] sm:$0xf]  ;;  %v156_v56 = vld [vmem:[#allocation3 + $0x48] sm:$0xff] }
  0x47   :  { %281 = vmatmul.bf16.vlgmr.msra.gmra.mxu0 %v163_v48  ;;  %1174 = vmatpush.bf16.msrb.mxu2 %v4867_v53  ;;  %v166_v39 = vpack.c.bf16 %v154_v38, %v153_v37  ;;  %v4816_v41 = vld [vmem:[#allocation12 + $0x270] sm:$0xf0]  ;;  %v6058_v50 = vld [vmem:[#allocation12 + $0x36c] sm:$0xf0]  ;;  %v379_v52 = vld [vmem:[#allocation6 + $0x40] sm:$0xff] }
  0x48   :  { %1075 = vmatpush.bf16.msrb.mxu0 %v4879_v46  ;;  %1223 = vmatpush.bf16.msrb.mxu3 %v4995_v57  ;;  %v4819_v43 = vor.u32 %v6024_v40, %v4816_v41  ;;  %v4944_v44 = vld [vmem:[#allocation12 + $0x370] sm:$0xf0]  ;;  %v6026_v46 = vld [vmem:[#allocation12 + $0x26c] sm:$0xf0]  ;;  %v380_v53 = vld [vmem:[#allocation6 + $0x48] sm:$0xff] }
  0x49   :  { %1124 = vmatpush.bf16.msrb.mxu1 %v5007_v49  ;;  %v4947_v47 = vor.u32 %v6056_v42, %v4944_v44  ;;  %v4942_v49 = vld [vmem:[#allocation12 + $0x360] sm:$0xf]  ;;  %v391_v54 = vpack.c.bf16 %v380_v53, %v379_v52  ;;  %v4800_v59 = vld [vmem:[#allocation12 + $0x250] sm:$0xf0]  ;;  %v6052_v60 = vld [vmem:[#allocation12 + $0x344] sm:$0xf] }
  0x4a   :  { %330 = vmatmul.bf16.vlgmr.msra.gmra.mxu1 %v163_v48  ;;  %v4815_v48 = vor.u32 %v6026_v46, %v4814_v45  ;;  %v4943_v51 = vor.u32 %v6058_v50, %v4942_v49  ;;  %v155_v55 = vld [vmem:[#allocation3 + $0x40] sm:$0xff]  ;;  %v4928_v62 = vld [vmem:[#allocation12 + $0x350] sm:$0xf0]  ;;  %v6054_v4 = vld [vmem:[#allocation12 + $0x34c] sm:$0xf0] }
  0x4b   :  { %1175 = vmatpush.bf16.msrb.mxu2 %v4851_v7  ;;  %v167_v57 = vpack.c.bf16 %v156_v56, %v155_v55  ;;  %v4798_v63 = vld [vmem:[#allocation12 + $0x240] sm:$0xf]  ;;  %v4931_v1 = vor.u32 %v6052_v60, %v4928_v62  ;;  %v381_v6 = vld [vmem:[#allocation6 + $0x50] sm:$0xff]  ;;  %v382_v7 = vld [vmem:[#allocation6 + $0x58] sm:$0xff] }
  0x4c   :  { %1076 = vmatpush.bf16.msrb.mxu0 %v4863_v58  ;;  %1224 = vmatpush.bf16.msrb.mxu3 %v4979_v11  ;;  %v6020_v58 = vld [vmem:[#allocation12 + $0x244] sm:$0xf]  ;;  %v392_v8 = vpack.c.bf16 %v382_v7, %v381_v6  ;;  %v157_v9 = vld [vmem:[#allocation3 + $0x50] sm:$0xff]  ;;  %v158_v10 = vld [vmem:[#allocation3 + $0x58] sm:$0xff] }
  0x4d   :  { %1125 = vmatpush.bf16.msrb.mxu1 %v4991_v61  ;;  %v4803_v61 = vor.u32 %v6020_v58, %v4800_v59  ;;  %v168_v11 = vpack.c.bf16 %v158_v10, %v157_v9  ;;  %v4784_v13 = vld [vmem:[#allocation12 + $0x230] sm:$0xf0]  ;;  %v6048_v14 = vld [vmem:[#allocation12 + $0x324] sm:$0xf]  ;;  %v4782_v17 = vld [vmem:[#allocation12 + $0x220] sm:$0xf] }
  0x4e   :  { %v4912_v16 = vld [vmem:[#allocation12 + $0x330] sm:$0xf0]  ;;  %v6050_v22 = vld [vmem:[#allocation12 + $0x32c] sm:$0xf0]  ;;  %v6012_v24 = vld [vmem:[#allocation12 + $0x204] sm:$0xf] }
  0x4f   :  { %1176 = vmatpush.bf16.msrb.mxu2 %v4835_v25  ;;  %v4915_v19 = vor.u32 %v6048_v14, %v4912_v16  ;;  %v4768_v25 = vld [vmem:[#allocation12 + $0x210] sm:$0xf0]  ;;  %v6044_v26 = vld [vmem:[#allocation12 + $0x304] sm:$0xf]  ;;  %v6014_v37 = vld [vmem:[#allocation12 + $0x20c] sm:$0xf0] }
  0x50   :  { %1077 = vmatpush.bf16.msrb.mxu0 %v4847_v12  ;;  %1225 = vmatpush.bf16.msrb.mxu3 %v4963_v29  ;;  %v6016_v12 = vld [vmem:[#allocation12 + $0x224] sm:$0xf]  ;;  %v4771_v27 = vor.u32 %v6012_v24, %v4768_v25  ;;  %v4896_v28 = vld [vmem:[#allocation12 + $0x310] sm:$0xf0]  ;;  %v4894_v38 = vld [vmem:[#allocation12 + $0x300] sm:$0xf] }
  0x51   :  { %1126 = vmatpush.bf16.msrb.mxu1 %v4975_v15  ;;  %v4787_v15 = vor.u32 %v6016_v12, %v4784_v13  ;;  %v4899_v29 = vor.u32 %v6044_v26, %v4896_v28  ;;  %v384_v31 = vld [vmem:[#allocation6 + $0x68] sm:$0xff]  ;;  %v6046_v40 = vld [vmem:[#allocation12 + $0x30c] sm:$0xf0]  ;;  %v162_v46 = vld [vmem:[#allocation3 + $0x78] sm:$0xff] }
  0x52   :  { %510 = vmatmul.bf16.gmra.mxu2 %v388_v0  ;;  %v160_v34 = vld [vmem:[#allocation3 + $0x68] sm:$0xff]  ;;  %v4895_v41 = vor.u32 %v6046_v40, %v4894_v38  ;;  %v385_v42 = vld [vmem:[#allocation6 + $0x70] sm:$0xff]  ;;  %v4888_v49 = vld [vmem:[#allocation12 + $0x2f8] sm:$0xf0] }
  0x53   :  { %559 = vmatmul.bf16.gmra.mxu3 %v388_v0  ;;  %1177 = vmatpush.bf16.msrb.mxu2 %v4819_v43  ;;  %v6022_v0 = vld [vmem:[#allocation12 + $0x24c] sm:$0xf0]  ;;  %v386_v43 = vld [vmem:[#allocation6 + $0x78] sm:$0xff]  ;;  %v6073_v50 = vld [vmem:[#allocation12 + $0x3ec] sm:$0xf] }
  0x54   :  { %1078 = vmatpush.bf16.msrb.mxu0 %v4831_v30  ;;  %1226 = vmatpush.bf16.msrb.mxu3 %v4947_v47  ;;  %v4799_v2 = vor.u32 %v6022_v0, %v4798_v63  ;;  %v383_v30 = vld [vmem:[#allocation6 + $0x60] sm:$0xff]  ;;  %v394_v44 = vpack.c.bf16 %v386_v43, %v385_v42  ;;  %v161_v45 = vld [vmem:[#allocation3 + $0x70] sm:$0xff]  ;;  %v6043_v55 = vld [vmem:[#allocation12 + $0x2f4] sm:$0xf0] }
  0x55   :  { %1127 = vmatpush.bf16.msrb.mxu1 %v4959_v33  ;;  %v393_v32 = vpack.c.bf16 %v384_v31, %v383_v30  ;;  %v159_v33 = vld [vmem:[#allocation3 + $0x60] sm:$0xff]  ;;  %v170_v47 = vpack.c.bf16 %v162_v46, %v161_v45  ;;  %v5014_v56 = vld [vmem:[#allocation12 + $0x3e8] sm:$0xf]  ;;  %v6075_v58 = vld [vmem:[#allocation12 + $0x3f4] sm:$0xf0] }
  0x56   :  { %v169_v35 = vpack.c.bf16 %v160_v34, %v159_v33  ;;  %v5016_v52 = vld [vmem:[#allocation12 + $0x3f8] sm:$0xf0]  ;;  %v5015_v59 = vor.u32 %v6075_v58, %v5014_v56  ;;  %v6069_v63 = vld [vmem:[#allocation12 + $0x3cc] sm:$0xf]  ;;  %v4870_v7 = vld [vmem:[#allocation12 + $0x2c8] sm:$0xf] }
  0x57   :  { %286 = vmatmul.bf16.gmra.mxu0 %v164_v3  ;;  %1178 = vmatpush.bf16.msrb.mxu2 %v4803_v61  ;;  %v5019_v53 = vor.u32 %v6073_v50, %v5016_v52  ;;  %v6037_v61 = vld [vmem:[#allocation12 + $0x2cc] sm:$0xf]  ;;  %v4872_v62 = vld [vmem:[#allocation12 + $0x2d8] sm:$0xf0]  ;;  %v4998_v9 = vld [vmem:[#allocation12 + $0x3c8] sm:$0xf] }
  0x58   :  { %1079 = vmatpush.bf16.msrb.mxu0 %v4815_v48  ;;  %1227 = vmatpush.bf16.msrb.mxu3 %v4931_v1  ;;  %v6041_v48 = vld [vmem:[#allocation12 + $0x2ec] sm:$0xf]  ;;  %v4875_v0 = vor.u32 %v6037_v61, %v4872_v62  ;;  %v5000_v1 = vld [vmem:[#allocation12 + $0x3d8] sm:$0xf0]  ;;  %v4838_v62 = vld [vmem:[#allocation12 + $0x288] sm:$0xf] }
  0x59   :  { %1128 = vmatpush.bf16.msrb.mxu1 %v4943_v51  ;;  %v4891_v51 = vor.u32 %v6041_v48, %v4888_v49  ;;  %v6033_v26 = vld [vmem:[#allocation12 + $0x2ac] sm:$0xf]  ;;  %v4984_v30 = vld [vmem:[#allocation12 + $0x3b8] sm:$0xf0] }
  0x5a   :  { %335 = vmatmul.bf16.gmra.mxu1 %v164_v3  ;;  %v4926_v3 = vld [vmem:[#allocation12 + $0x340] sm:$0xf]  ;;  %v6065_v28 = vld [vmem:[#allocation12 + $0x3ac] sm:$0xf]  ;;  %v4968_v56 = vld [vmem:[#allocation12 + $0x398] sm:$0xf0] }
  0x5b   :  { %v4927_v5 = vor.u32 %v6054_v4, %v4926_v3  ;;  %1179 = vmatpush.bf16.msrb.mxu2 %v4787_v15  ;;  %v5003_v4 = vor.u32 %v6069_v63, %v5000_v1  ;;  %v4987_v33 = vor.u32 %v6065_v28, %v4984_v30  ;;  %v6029_v52 = vld [vmem:[#allocation12 + $0x28c] sm:$0xf]  ;;  %v6031_v63 = vld [vmem:[#allocation12 + $0x294] sm:$0xf0] }
  0x5c   :  { %1080 = vmatpush.bf16.msrb.mxu0 %v4799_v2  ;;  %1228 = vmatpush.bf16.msrb.mxu3 %v4915_v19  ;;  %v4839_v1 = vor.u32 %v6031_v63, %v4838_v62 }
  0x5d   :  { %1129 = vmatpush.bf16.msrb.mxu1 %v4927_v5  ;;  %v411_v5 = vld [vmem:[#allocation11] sm:$0x3] }
  0x5e   :  { %v6559_v13 = vperm.slane %v411_v5, 0  ;;  %v6561_v14 = vperm.slane %v411_v5, 1 }
  0x5f   :  { %1180 = vmatpush.bf16.msrb.mxu2 %v4771_v27  ;;  %v4856_v27 = vld [vmem:[#allocation12 + $0x2b8] sm:$0xf0] }
  0x60   :  { %1229 = vmatpush.bf16.msrb.mxu3 %v4899_v29  ;;  %v4859_v29 = vor.u32 %v6033_v26, %v4856_v27  ;;  %v4952_v27 = vld [vmem:[#allocation12 + $0x378] sm:$0xf0] }
  0x62   :  { %515 = vmatmul.bf16.gmra.mxu2 %v389_v18 }
  0x63   :  { %564 = vmatmul.bf16.gmra.mxu3 %v389_v18  ;;  %v6018_v18 = vld [vmem:[#allocation12 + $0x22c] sm:$0xf0]  ;;  %1369 = vmatpush.bf16.msra.mxu2 %v4891_v51 }
  0x64   :  { %v4783_v20 = vor.u32 %v6018_v18, %v4782_v17  ;;  %1418 = vmatpush.bf16.msra.mxu3 %v5019_v53  ;;  %v4840_v53 = vld [vmem:[#allocation12 + $0x298] sm:$0xf0] }
  0x66   :  { %1081 = vmatpush.bf16.msrb.mxu0 %v4783_v20 }
  0x67   :  { %291 = vmatmul.bf16.gmra.mxu0 %v165_v21  ;;  %1370 = vmatpush.bf16.msra.mxu2 %v4875_v0  ;;  %v4966_v0 = vld [vmem:[#allocation12 + $0x388] sm:$0xf] }
  0x68   :  { %1419 = vmatpush.bf16.msra.mxu3 %v5003_v4 }
  0x6a   :  { %340 = vmatmul.bf16.gmra.mxu1 %v165_v21  ;;  %v4910_v21 = vld [vmem:[#allocation12 + $0x320] sm:$0xf] }
  0x6b   :  { %v4911_v23 = vor.u32 %v6050_v22, %v4910_v21  ;;  %1371 = vmatpush.bf16.msra.mxu2 %v4859_v29 }
  0x6c   :  { %1420 = vmatpush.bf16.msra.mxu3 %v4987_v33  ;;  %v4822_v33 = vld [vmem:[#allocation12 + $0x268] sm:$0xf] }
  0x6d   :  { %1130 = vmatpush.bf16.msrb.mxu1 %v4911_v23 }
  0x71   :  { %1131 = vmatpush.bf16.msrb.mxu1 %v4895_v41 }
  0x72   :  { %520 = vmatmul.bf16.gmra.mxu2 %v390_v36 }
  0x73   :  { %569 = vmatmul.bf16.gmra.mxu3 %v390_v36  ;;  %v4766_v36 = vld [vmem:[#allocation12 + $0x200] sm:$0xf] }
  0x75   :  { %1320 = vmatpush.bf16.msra.mxu1 %v5015_v59 }
  0x77   :  { %296 = vmatmul.bf16.gmra.mxu0 %v166_v39 }
  0x7a   :  { %345 = vmatmul.bf16.gmra.mxu1 %v166_v39  ;;  %v4767_v39 = vor.u32 %v6014_v37, %v4766_v36  ;;  %v6035_v36 = vld [vmem:[#allocation12 + $0x2b4] sm:$0xf0]  ;;  %v4982_v37 = vld [vmem:[#allocation12 + $0x3a8] sm:$0xf] }
  0x7c   :  { %1082 = vmatpush.bf16.msrb.mxu0 %v4767_v39  ;;  %v6067_v39 = vld [vmem:[#allocation12 + $0x3b4] sm:$0xf0] }
  0x7d   :  { %v4983_v40 = vor.u32 %v6067_v39, %v4982_v37  ;;  %v6059_v37 = vld [vmem:[#allocation12 + $0x374] sm:$0xf0] }
  0x82   :  { %525 = vmatmul.bf16.gmra.mxu2 %v391_v54 }
  0x83   :  { %574 = vmatmul.bf16.gmra.mxu3 %v391_v54  ;;  %v4886_v54 = vld [vmem:[#allocation12 + $0x2e8] sm:$0xf] }
  0x87   :  { %301 = vmatmul.bf16.gmra.mxu0 %v167_v57 }
  0x8a   :  { %350 = vmatmul.bf16.gmra.mxu1 %v167_v57  ;;  %v4887_v57 = vor.u32 %v6043_v55, %v4886_v54  ;;  %v6061_v54 = vld [vmem:[#allocation12 + $0x38c] sm:$0xf]  ;;  %v4843_v55 = vor.u32 %v6029_v52, %v4840_v53 }
  0x8b   :  { %v4971_v59 = vor.u32 %v6061_v54, %v4968_v56  ;;  %v4808_v56 = vld [vmem:[#allocation12 + $0x258] sm:$0xf0] }
  0x8c   :  { %1271 = vmatpush.bf16.msra.mxu0 %v4887_v57  ;;  %1372 = vmatpush.bf16.msra.mxu2 %v4843_v55  ;;  %v6021_v55 = vld [vmem:[#allocation12 + $0x24c] sm:$0xf] }
  0x8d   :  { %1421 = vmatpush.bf16.msra.mxu3 %v4971_v59  ;;  %v4811_v59 = vor.u32 %v6021_v55, %v4808_v56  ;;  %v4918_v55 = vld [vmem:[#allocation12 + $0x328] sm:$0xf] }
  0x92   :  { %530 = vmatmul.bf16.gmra.mxu2 %v392_v8 }
  0x93   :  { %579 = vmatmul.bf16.gmra.mxu3 %v392_v8  ;;  %v6039_v8 = vld [vmem:[#allocation12 + $0x2d4] sm:$0xf0] }
  0x94   :  { %v4871_v10 = vor.u32 %v6039_v8, %v4870_v7 }
  0x96   :  { %1272 = vmatpush.bf16.msra.mxu0 %v4871_v10 }
  0x97   :  { %306 = vmatmul.bf16.gmra.mxu0 %v168_v11 }
  0x9a   :  { %355 = vmatmul.bf16.gmra.mxu1 %v168_v11  ;;  %v6071_v11 = vld [vmem:[#allocation12 + $0x3d4] sm:$0xf0] }
  0x9b   :  { %v4999_v12 = vor.u32 %v6071_v11, %v4998_v9 }
  0x9d   :  { %1321 = vmatpush.bf16.msra.mxu1 %v4999_v12 }
  0xa1   :  { %1322 = vmatpush.bf16.msra.mxu1 %v4983_v40 }
  0xa2   :  { %535 = vmatmul.bf16.gmra.mxu2 %v393_v32 }
  0xa3   :  { %584 = vmatmul.bf16.gmra.mxu3 %v393_v32 }
  0xa7   :  { %311 = vmatmul.bf16.gmra.mxu0 %v169_v35 }
  0xaa   :  { %360 = vmatmul.bf16.gmra.mxu1 %v169_v35  ;;  %v4854_v35 = vld [vmem:[#allocation12 + $0x2a8] sm:$0xf] }
  0xab   :  { %v4855_v38 = vor.u32 %v6035_v36, %v4854_v35  ;;  %v4950_v35 = vld [vmem:[#allocation12 + $0x368] sm:$0xf] }
  0xad   :  { %1273 = vmatpush.bf16.msra.mxu0 %v4855_v38  ;;  %v4951_v38 = vor.u32 %v6059_v37, %v4950_v35  ;;  %v6049_v35 = vld [vmem:[#allocation12 + $0x32c] sm:$0xf]  ;;  %v4920_v37 = vld [vmem:[#allocation12 + $0x338] sm:$0xf0] }
  0xb1   :  { %1274 = vmatpush.bf16.msra.mxu0 %v4839_v1 }
  0xb2   :  { %540 = vmatmul.bf16.gmra.mxu2 %v394_v44 }
  0xb3   :  { %589 = vmatmul.bf16.gmra.mxu3 %v394_v44 }
  0xb7   :  { %316 = vmatmul.bf16.gmra.mxu0 %v170_v47 }
  0xba   :  { %365 = vmatmul.bf16.gmra.mxu1 %v170_v47 }
  0xc4   :  { %v6555_v60 = vpop.f32.mrf.mxu0 }
  0xc5   :  { %v506_v2 = vpop.f32.mrf.mxu2 }
  0xc6   :  { %v555_v6 = vpop.f32.mrf.mxu3  ;;  %v507_v18 = vadd.f32 %v506_v2, %v6559_v13  ;;  %v6063_v2 = vld [vmem:[#allocation12 + $0x394] sm:$0xf0] }
  0xc7   :  { %v6557_v3 = vpop.f32.mrf.mxu1  ;;  %v556_v21 = vadd.f32 %v555_v6, %v6561_v14  ;;  %v4967_v4 = vor.u32 %v6063_v2, %v4966_v0  ;;  %v4806_v2 = vld [vmem:[#allocation12 + $0x248] sm:$0xf] }
  0xc9   :  { %1323 = vmatpush.bf16.msra.mxu1 %v4967_v4  ;;  %v6023_v4 = vld [vmem:[#allocation12 + $0x254] sm:$0xf0] }
  0xcc   :  { %v6563_v15 = vpop.f32.mrf.mxu0 }
  0xcd   :  { %v508_v16 = vpop.f32.mrf.mxu2  ;;  %1324 = vmatpush.bf16.msra.mxu1 %v4951_v38 }
  0xce   :  { %v509_v19 = vadd.f32 %v508_v16, %v6559_v13  ;;  %v557_v20 = vpop.f32.mrf.mxu3 }
  0xcf   :  { %v6565_v17 = vpop.f32.mrf.mxu1  ;;  %v558_v22 = vadd.f32 %v557_v20, %v6561_v14  ;;  %v6025_v20 = vld [vmem:[#allocation12 + $0x26c] sm:$0xf] }
  0xd0   :  { %v6571_v23 = vpack.c.bf16 %v509_v19, %v507_v18 }
  0xd1   :  { %v6573_v24 = vpack.c.bf16 %v558_v22, %v556_v21  ;;  %v4824_v21 = vld [vmem:[#allocation12 + $0x278] sm:$0xf0]  ;;  %v6057_v22 = vld [vmem:[#allocation12 + $0x36c] sm:$0xf] }
  0xd2   :  { %1083 = vmatmul.bf16.vlgmr.msrb.gmra.mxu0 %v6571_v23  ;;  %1181 = vmatmul.bf16.vlgmr.msrb.gmra.mxu2 %v6571_v23  ;;  %v4827_v26 = vor.u32 %v6025_v20, %v4824_v21  ;;  %v4955_v30 = vor.u32 %v6057_v22, %v4952_v27 }
  0xd3   :  { %1132 = vmatmul.bf16.vlgmr.msrb.gmra.mxu1 %v6573_v24  ;;  %1230 = vmatmul.bf16.vlgmr.msrb.gmra.mxu3 %v6573_v24 }
  0xd4   :  { %v6579_v25 = vpop.f32.mrf.mxu0  ;;  %1373 = vmatpush.bf16.msra.mxu2 %v4827_v26  ;;  %1422 = vmatpush.bf16.msra.mxu3 %v4955_v30 }
  0xd5   :  { %v511_v31 = vpop.f32.mrf.mxu2 }
  0xd6   :  { %v560_v34 = vpop.f32.mrf.mxu3  ;;  %v512_v44 = vadd.f32 %v511_v31, %v6559_v13 }
  0xd7   :  { %v6581_v32 = vpop.f32.mrf.mxu1  ;;  %v561_v47 = vadd.f32 %v560_v34, %v6561_v14  ;;  %v6027_v34 = vld [vmem:[#allocation12 + $0x274] sm:$0xf0] }
  0xd8   :  { %v4823_v36 = vor.u32 %v6027_v34, %v4822_v33  ;;  %1374 = vmatpush.bf16.msra.mxu2 %v4811_v59  ;;  %v6017_v33 = vld [vmem:[#allocation12 + $0x22c] sm:$0xf]  ;;  %v4792_v34 = vld [vmem:[#allocation12 + $0x238] sm:$0xf0] }
  0xda   :  { %1275 = vmatpush.bf16.msra.mxu0 %v4823_v36  ;;  %v4795_v36 = vor.u32 %v6017_v33, %v4792_v34  ;;  %v6015_v33 = vld [vmem:[#allocation12 + $0x214] sm:$0xf0] }
  0xdc   :  { %v6583_v41 = vpop.f32.mrf.mxu0  ;;  %1375 = vmatpush.bf16.msra.mxu2 %v4795_v36 }
  0xdd   :  { %v513_v42 = vpop.f32.mrf.mxu2 }
  0xde   :  { %v514_v45 = vadd.f32 %v513_v42, %v6559_v13  ;;  %v562_v46 = vpop.f32.mrf.mxu3 }
  0xdf   :  { %v6585_v43 = vpop.f32.mrf.mxu1  ;;  %v563_v48 = vadd.f32 %v562_v46, %v6561_v14 }
  0xe0   :  { %v6591_v49 = vpack.c.bf16 %v514_v45, %v512_v44 }
  0xe1   :  { %v6593_v50 = vpack.c.bf16 %v563_v48, %v561_v47 }
  0xe2   :  { %1088 = vmatmul.bf16.gmra.mxu0 %v6591_v49  ;;  %1186 = vmatmul.bf16.gmra.mxu2 %v6591_v49 }
  0xe3   :  { %1137 = vmatmul.bf16.gmra.mxu1 %v6593_v50  ;;  %1235 = vmatmul.bf16.gmra.mxu3 %v6593_v50 }
  0xe4   :  { %v6599_v51 = vpop.f32.mrf.mxu0 }
  0xe5   :  { %v516_v57 = vpop.f32.mrf.mxu2 }
  0xe6   :  { %v565_v61 = vpop.f32.mrf.mxu3  ;;  %v517_v8 = vadd.f32 %v516_v57, %v6559_v13  ;;  %v6053_v57 = vld [vmem:[#allocation12 + $0x34c] sm:$0xf] }
  0xe7   :  { %v6601_v58 = vpop.f32.mrf.mxu1  ;;  %v566_v11 = vadd.f32 %v565_v61, %v6561_v14  ;;  %v4936_v61 = vld [vmem:[#allocation12 + $0x358] sm:$0xf0] }
  0xe8   :  { %v4939_v0 = vor.u32 %v6053_v57, %v4936_v61  ;;  %v6051_v57 = vld [vmem:[#allocation12 + $0x334] sm:$0xf0] }
  0xe9   :  { %v4919_v59 = vor.u32 %v6051_v57, %v4918_v55 }
  0xea   :  { %1423 = vmatpush.bf16.msra.mxu3 %v4939_v0 }
  0xec   :  { %v6603_v5 = vpop.f32.mrf.mxu0 }
  0xed   :  { %v518_v6 = vpop.f32.mrf.mxu2 }
  0xee   :  { %v519_v9 = vadd.f32 %v518_v6, %v6559_v13  ;;  %v567_v10 = vpop.f32.mrf.mxu3  ;;  %v4934_v6 = vld [vmem:[#allocation12 + $0x348] sm:$0xf] }
  0xef   :  { %v6605_v7 = vpop.f32.mrf.mxu1  ;;  %v568_v12 = vadd.f32 %v567_v10, %v6561_v14 }
  0xf0   :  { %v6611_v16 = vpack.c.bf16 %v519_v9, %v517_v8  ;;  %v4807_v8 = vor.u32 %v6023_v4, %v4806_v2  ;;  %v6055_v9 = vld [vmem:[#allocation12 + $0x354] sm:$0xf0] }
  0xf1   :  { %v6613_v18 = vpack.c.bf16 %v568_v12, %v566_v11  ;;  %v4935_v10 = vor.u32 %v6055_v9, %v4934_v6 }
  0xf2   :  { %1093 = vmatmul.bf16.gmra.mxu0 %v6611_v16  ;;  %1191 = vmatmul.bf16.gmra.mxu2 %v6611_v16 }
  0xf3   :  { %1142 = vmatmul.bf16.gmra.mxu1 %v6613_v18  ;;  %1240 = vmatmul.bf16.gmra.mxu3 %v6613_v18 }
  0xf4   :  { %v6619_v19 = vpop.f32.mrf.mxu0  ;;  %1276 = vmatpush.bf16.msra.mxu0 %v4807_v8  ;;  %1325 = vmatpush.bf16.msra.mxu1 %v4935_v10 }
  0xf5   :  { %v521_v28 = vpop.f32.mrf.mxu2 }
  0xf6   :  { %v570_v31 = vpop.f32.mrf.mxu3  ;;  %v522_v44 = vadd.f32 %v521_v28, %v6559_v13 }
  0xf7   :  { %v6621_v29 = vpop.f32.mrf.mxu1  ;;  %v571_v47 = vadd.f32 %v570_v31, %v6561_v14 }
  0xf8   :  { %1326 = vmatpush.bf16.msra.mxu1 %v4919_v59 }
  0xfc   :  { %v6623_v39 = vpop.f32.mrf.mxu0 }
  0xfd   :  { %v523_v40 = vpop.f32.mrf.mxu2 }
  0xfe   :  { %v524_v45 = vadd.f32 %v523_v40, %v6559_v13  ;;  %v572_v46 = vpop.f32.mrf.mxu3 }
  0xff   :  { %v6625_v42 = vpop.f32.mrf.mxu1  ;;  %v573_v48 = vadd.f32 %v572_v46, %v6561_v14 }
 0x100   :  { %v6631_v52 = vpack.c.bf16 %v524_v45, %v522_v44  ;;  %v4923_v44 = vor.u32 %v6049_v35, %v4920_v37  ;;  %v4902_v37 = vld [vmem:[#allocation12 + $0x308] sm:$0xf] }
 0x101   :  { %v6633_v53 = vpack.c.bf16 %v573_v48, %v571_v47  ;;  %v4790_v47 = vld [vmem:[#allocation12 + $0x228] sm:$0xf]  ;;  %v6019_v48 = vld [vmem:[#allocation12 + $0x234] sm:$0xf0] }
 0x102   :  { %1098 = vmatmul.bf16.gmra.mxu0 %v6631_v52  ;;  %1196 = vmatmul.bf16.gmra.mxu2 %v6631_v52  ;;  %v4791_v56 = vor.u32 %v6019_v48, %v4790_v47 }
 0x103   :  { %1147 = vmatmul.bf16.gmra.mxu1 %v6633_v53  ;;  %1245 = vmatmul.bf16.gmra.mxu3 %v6633_v53 }
 0x104   :  { %v6639_v54 = vpop.f32.mrf.mxu0  ;;  %1424 = vmatpush.bf16.msra.mxu3 %v4923_v44  ;;  %1277 = vmatpush.bf16.msra.mxu0 %v4791_v56 }
 0x105   :  { %v526_v62 = vpop.f32.mrf.mxu2 }
 0x106   :  { %v575_v1 = vpop.f32.mrf.mxu3  ;;  %v527_v21 = vadd.f32 %v526_v62, %v6559_v13 }
 0x107   :  { %v6641_v63 = vpop.f32.mrf.mxu1  ;;  %v576_v27 = vadd.f32 %v575_v1, %v6561_v14 }
 0x10c   :  { %v6643_v11 = vpop.f32.mrf.mxu0 }
 0x10d   :  { %v528_v12 = vpop.f32.mrf.mxu2 }
 0x10e   :  { %v529_v22 = vadd.f32 %v528_v12, %v6559_v13  ;;  %v577_v26 = vpop.f32.mrf.mxu3  ;;  %v6013_v12 = vld [vmem:[#allocation12 + $0x20c] sm:$0xf] }
 0x10f   :  { %v6645_v20 = vpop.f32.mrf.mxu1  ;;  %v578_v28 = vadd.f32 %v577_v26, %v6561_v14 }
 0x110   :  { %v6651_v30 = vpack.c.bf16 %v529_v22, %v527_v21  ;;  %v4776_v21 = vld [vmem:[#allocation12 + $0x218] sm:$0xf0]  ;;  %v6045_v22 = vld [vmem:[#allocation12 + $0x30c] sm:$0xf] }
 0x111   :  { %v6653_v31 = vpack.c.bf16 %v578_v28, %v576_v27  ;;  %v4779_v26 = vor.u32 %v6013_v12, %v4776_v21  ;;  %v4904_v27 = vld [vmem:[#allocation12 + $0x318] sm:$0xf0]  ;;  %v4774_v28 = vld [vmem:[#allocation12 + $0x208] sm:$0xf]  ;;  %v5136_v12 = vld [vmem:[#allocation12 + $0xf0] sm:$0xf0] }
 0x112   :  { %1103 = vmatmul.bf16.gmra.mxu0 %v6651_v30  ;;  %1201 = vmatmul.bf16.gmra.mxu2 %v6651_v30  ;;  %v4907_v35 = vor.u32 %v6045_v22, %v4904_v27  ;;  %v4775_v36 = vor.u32 %v6015_v33, %v4774_v28  ;;  %v6008_v21 = vld [vmem:[#allocation12 + $0x1e4] sm:$0xf]  ;;  %v5264_v27 = vld [vmem:[#allocation12 + $0x1f0] sm:$0xf0] }
 0x113   :  { %1152 = vmatmul.bf16.gmra.mxu1 %v6653_v31  ;;  %1250 = vmatmul.bf16.gmra.mxu3 %v6653_v31  ;;  %v5267_v33 = vor.u32 %v6008_v21, %v5264_v27  ;;  %v5972_v27 = vld [vmem:[#allocation12 + $0xc4] sm:$0xf] }
 0x114   :  { %v6659_v40 = vpop.f32.mrf.mxu0  ;;  %1376 = vmatpush.bf16.msra.mxu2 %v4779_v26  ;;  %1425 = vmatpush.bf16.msra.mxu3 %v4907_v35  ;;  %v5134_v35 = vld [vmem:[#allocation12 + $0xe0] sm:$0xf] }
 0x115   :  { %v531_v38 = vpop.f32.mrf.mxu2  ;;  %1278 = vmatpush.bf16.msra.mxu0 %v4775_v36  ;;  %v5978_v36 = vld [vmem:[#allocation12 + $0xec] sm:$0xf0] }
 0x116   :  { %v580_v45 = vpop.f32.mrf.mxu3  ;;  %v532_v62 = vadd.f32 %v531_v38, %v6559_v13  ;;  %v6047_v38 = vld [vmem:[#allocation12 + $0x314] sm:$0xf0] }
 0x117   :  { %v6661_v46 = vpop.f32.mrf.mxu1  ;;  %v581_v2 = vadd.f32 %v580_v45, %v6561_v14  ;;  %v4903_v45 = vor.u32 %v6047_v38, %v4902_v37  ;;  %v5135_v37 = vor.u32 %v5978_v36, %v5134_v35  ;;  %v5262_v38 = vld [vmem:[#allocation12 + $0x1e0] sm:$0xf]  ;;  %v5248_v35 = vld [vmem:[#allocation12 + $0x1d0] sm:$0xf0] }
 0x118   :  { %1934 = vmatpush.bf16.msrb.mxu3 %v5267_v33  ;;  %v5118_v36 = vld [vmem:[#allocation12 + $0xc0] sm:$0xf] }
 0x119   :  { %1327 = vmatpush.bf16.msra.mxu1 %v4903_v45  ;;  %1787 = vmatpush.bf16.msrb.mxu0 %v5135_v37  ;;  %v5974_v37 = vld [vmem:[#allocation12 + $0xcc] sm:$0xf0] }
 0x11c   :  { %v6667_v6 = vpop.f32.mrf.mxu0 }
 0x11d   :  { %v533_v61 = vpop.f32.mrf.mxu2 }
 0x11e   :  { %v534_v0 = vadd.f32 %v533_v61, %v6559_v13  ;;  %v582_v1 = vpop.f32.mrf.mxu3 }
 0x11f   :  { %v583_v4 = vadd.f32 %v582_v1, %v6561_v14  ;;  %v6671_v9 = vpop.f32.mrf.mxu1 }
 0x120   :  { %v6669_v8 = vpack.c.bf16 %v534_v0, %v532_v62 }
 0x121   :  { %v6673_v10 = vpack.c.bf16 %v583_v4, %v581_v2  ;;  %v5976_v4 = vld [vmem:[#allocation12 + $0xe4] sm:$0xf] }
 0x122   :  { %1108 = vmatmul.bf16.gmra.mxu0 %v6669_v8  ;;  %1206 = vmatmul.bf16.gmra.mxu2 %v6669_v8  ;;  %v5139_v26 = vor.u32 %v5976_v4, %v5136_v12 }
 0x123   :  { %1157 = vmatmul.bf16.gmra.mxu1 %v6673_v10  ;;  %1255 = vmatmul.bf16.gmra.mxu3 %v6673_v10 }
 0x124   :  { %v6679_v47 = vpop.f32.mrf.mxu0  ;;  %1885 = vmatpush.bf16.msrb.mxu2 %v5139_v26 }
 0x125   :  { %v536_v34 = vpop.f32.mrf.mxu2 }
 0x126   :  { %v585_v44 = vpop.f32.mrf.mxu3  ;;  %v537_v56 = vadd.f32 %v536_v34, %v6559_v13 }
 0x127   :  { %v6681_v48 = vpop.f32.mrf.mxu1  ;;  %v586_v61 = vadd.f32 %v585_v44, %v6561_v14  ;;  %v6010_v44 = vld [vmem:[#allocation12 + $0x1ec] sm:$0xf0] }
 0x128   :  { %v5263_v45 = vor.u32 %v6010_v44, %v5262_v38  ;;  %v5119_v44 = vor.u32 %v5974_v37, %v5118_v36 }
 0x12a   :  { %1836 = vmatpush.bf16.msrb.mxu1 %v5263_v45  ;;  %v5246_v45 = vld [vmem:[#allocation12 + $0x1c0] sm:$0xf]  ;;  %1788 = vmatpush.bf16.msrb.mxu0 %v5119_v44 }
 0x12c   :  { %v6695_v2 = vpop.f32.mrf.mxu0 }
 0x12d   :  { %v538_v55 = vpop.f32.mrf.mxu2 }
 0x12e   :  { %v539_v57 = vadd.f32 %v538_v55, %v6559_v13  ;;  %v587_v59 = vpop.f32.mrf.mxu3 }
 0x12f   :  { %v588_v62 = vadd.f32 %v587_v59, %v6561_v14  ;;  %v6697_v22 = vpop.f32.mrf.mxu1 }
 0x130   :  { %v6687_v0 = vpack.c.bf16 %v539_v57, %v537_v56 }
 0x131   :  { %v6689_v1 = vpack.c.bf16 %v588_v62, %v586_v61 }
 0x132   :  { %1113 = vmatmul.bf16.gmra.mxu0 %v6687_v0  ;;  %1211 = vmatmul.bf16.gmra.mxu2 %v6687_v0 }
 0x133   :  { %1162 = vmatmul.bf16.gmra.mxu1 %v6689_v1  ;;  %1260 = vmatmul.bf16.gmra.mxu3 %v6689_v1 }
 0x134   :  { %v6699_v55 = vpop.f32.mrf.mxu0 }
 0x135   :  { %v541_v28 = vpop.f32.mrf.mxu2 }
 0x136   :  { %v590_v34 = vpop.f32.mrf.mxu3  ;;  %v542_v57 = vadd.f32 %v541_v28, %v6559_v13  ;;  %v5120_v28 = vld [vmem:[#allocation12 + $0xd0] sm:$0xf0] }
 0x137   :  { %v6702_v59 = vpop.f32.mrf.mxu1  ;;  %v591_v4 = vadd.f32 %v590_v34, %v6561_v14  ;;  %v5123_v33 = vor.u32 %v5972_v27, %v5120_v28  ;;  %v5104_v27 = vld [vmem:[#allocation12 + $0xb0] sm:$0xf0]  ;;  %v6000_v28 = vld [vmem:[#allocation12 + $0x1a4] sm:$0xf] }
 0x139   :  { %1886 = vmatpush.bf16.msrb.mxu2 %v5123_v33  ;;  %v5232_v33 = vld [vmem:[#allocation12 + $0x1b0] sm:$0xf0] }
 0x13d   :  { %v543_v56 = vpop.f32.mrf.mxu2 }
 0x13e   :  { %v544_v61 = vadd.f32 %v543_v56, %v6559_v13  ;;  %v592_v62 = vpop.f32.mrf.mxu3  ;;  %v6004_v13 = vld [vmem:[#allocation12 + $0x1c4] sm:$0xf]  ;;  %v6006_v56 = vld [vmem:[#allocation12 + $0x1cc] sm:$0xf0] }
 0x13f   :  { %v593_v12 = vadd.f32 %v592_v62, %v6561_v14  ;;  %v5251_v34 = vor.u32 %v6004_v13, %v5248_v35  ;;  %v6715_v14 = vpop.f32.mrf.mxu0  ;;  %v6717_v38 = vpop.f32.mrf.mxu1 }
 0x140   :  { %v6707_v21 = vpack.c.bf16 %v544_v61, %v542_v57  ;;  %v5247_v57 = vor.u32 %v6006_v56, %v5246_v45  ;;  %v5102_v45 = vld [vmem:[#allocation12 + $0xa0] sm:$0xf]  ;;  %v5970_v56 = vld [vmem:[#allocation12 + $0xac] sm:$0xf0] }
 0x141   :  { %v6709_v26 = vpack.c.bf16 %v593_v12, %v591_v4  ;;  %1935 = vmatpush.bf16.msrb.mxu3 %v5251_v34  ;;  %v5968_v12 = vld [vmem:[#allocation12 + $0xa4] sm:$0xf]  ;;  %v5235_v34 = vor.u32 %v6000_v28, %v5232_v33 }
 0x142   :  { %1118 = vmatmul.bf16.gmra.mxu0 %v6707_v21  ;;  %1216 = vmatmul.bf16.gmra.mxu2 %v6707_v21  ;;  %v5107_v13 = vor.u32 %v5968_v12, %v5104_v27 }
 0x143   :  { %1167 = vmatmul.bf16.gmra.mxu1 %v6709_v26  ;;  %1265 = vmatmul.bf16.gmra.mxu3 %v6709_v26 }
 0x144   :  { %1837 = vmatpush.bf16.msrb.mxu1 %v5247_v57  ;;  %1887 = vmatpush.bf16.msrb.mxu2 %v5107_v13  ;;  %v5103_v57 = vor.u32 %v5970_v56, %v5102_v45  ;;  %v5216_v45 = vld [vmem:[#allocation12 + $0x190] sm:$0xf0] }
 0x145   :  { %1936 = vmatpush.bf16.msrb.mxu3 %v5235_v34  ;;  %v5964_v34 = vld [vmem:[#allocation12 + $0x84] sm:$0xf] }
 0x146   :  { %1789 = vmatpush.bf16.msrb.mxu0 %v5103_v57 }
 0x14f   :  { %v1084_v61 = vpop.f32.mrf.mxu0 }
 0x150   :  { %v1133_v62 = vpop.f32.mrf.mxu1 }
 0x151   :  { %v6719_v4 = vadd.f32 %v1133_v62, %v1084_v61  ;;  %v6002_v62 = vld [vmem:[#allocation12 + $0x1ac] sm:$0xf0] }
 0x152   :  { %1279 = vmatmul.bf16.vlgmr.msra.gmra.mxu0 %v6571_v23  ;;  %1377 = vmatmul.bf16.vlgmr.msra.gmra.mxu2 %v6571_v23 }
 0x153   :  { %7373 = vst [vmem:[#allocation21_spill] sm:$0xff] %v6719_v4  ;;  %1328 = vmatmul.bf16.vlgmr.msra.gmra.mxu1 %v6573_v24  ;;  %1426 = vmatmul.bf16.vlgmr.msra.gmra.mxu3 %v6573_v24  ;;  %v5230_v24 = vld [vmem:[#allocation12 + $0x1a0] sm:$0xf] }
 0x154   :  { %v5231_v4 = vor.u32 %v6002_v62, %v5230_v24 }
 0x155   :  { %v1182_v35 = vpop.f32.mrf.mxu2 }
 0x156   :  { %v1231_v36 = vpop.f32.mrf.mxu3  ;;  %1838 = vmatpush.bf16.msrb.mxu1 %v5231_v4 }
 0x157   :  { %v6725_v37 = vadd.f32 %v1231_v36, %v1182_v35  ;;  %v1086_v44 = vpop.f32.mrf.mxu0  ;;  %v5088_v36 = vld [vmem:[#allocation12 + $0x90] sm:$0xf0] }
 0x158   :  { %v1135_v23 = vpop.f32.mrf.mxu1  ;;  %v5091_v4 = vor.u32 %v5964_v34, %v5088_v36 }
 0x159   :  { %v6727_v61 = vadd.f32 %v1135_v23, %v1086_v44  ;;  %v5996_v44 = vld [vmem:[#allocation12 + $0x184] sm:$0xf] }
 0x15a   :  { %v5219_v23 = vor.u32 %v5996_v44, %v5216_v45  ;;  %1888 = vmatpush.bf16.msrb.mxu2 %v5091_v4 }
 0x15c   :  { %1937 = vmatpush.bf16.msrb.mxu3 %v5219_v23  ;;  %v5960_v23 = vld [vmem:[#allocation12 + $0x64] sm:$0xf] }
 0x15d   :  { %v1184_v12 = vpop.f32.mrf.mxu2 }
 0x15e   :  { %v1233_v27 = vpop.f32.mrf.mxu3 }
 0x15f   :  { %v6729_v28 = vadd.f32 %v1233_v27, %v1184_v12  ;;  %v1089_v13 = vpop.f32.mrf.mxu0  ;;  %v5086_v12 = vld [vmem:[#allocation12 + $0x80] sm:$0xf]  ;;  %v5966_v27 = vld [vmem:[#allocation12 + $0x8c] sm:$0xf0] }
 0x160   :  { %v1138_v33 = vpop.f32.mrf.mxu1 }
 0x161   :  { %7374 = vst [vmem:[#allocation22_spill] sm:$0xff] %v6729_v28  ;;  %v6731_v35 = vadd.f32 %v1138_v33, %v1089_v13  ;;  %v5087_v13 = vor.u32 %v5966_v27, %v5086_v12 }
 0x162   :  { %1284 = vmatmul.bf16.gmra.mxu0 %v6591_v49  ;;  %1382 = vmatmul.bf16.gmra.mxu2 %v6591_v49 }
 0x163   :  { %7375 = vst [vmem:[#allocation23_spill] sm:$0xff] %v6731_v35  ;;  %1333 = vmatmul.bf16.gmra.mxu1 %v6593_v50  ;;  %1431 = vmatmul.bf16.gmra.mxu3 %v6593_v50  ;;  %v5214_v50 = vld [vmem:[#allocation12 + $0x180] sm:$0xf]  ;;  %v5998_v35 = vld [vmem:[#allocation12 + $0x18c] sm:$0xf0] }
 0x164   :  { %1790 = vmatpush.bf16.msrb.mxu0 %v5087_v13  ;;  %v5215_v28 = vor.u32 %v5998_v35, %v5214_v50  ;;  %v5992_v35 = vld [vmem:[#allocation12 + $0x164] sm:$0xf] }
 0x165   :  { %v1187_v56 = vpop.f32.mrf.mxu2 }
 0x166   :  { %v1236_v57 = vpop.f32.mrf.mxu3  ;;  %1839 = vmatpush.bf16.msrb.mxu1 %v5215_v28 }
 0x167   :  { %v6737_v24 = vadd.f32 %v1236_v57, %v1187_v56  ;;  %v1091_v62 = vpop.f32.mrf.mxu0  ;;  %v5072_v57 = vld [vmem:[#allocation12 + $0x70] sm:$0xf0] }
 0x168   :  { %v1140_v49 = vpop.f32.mrf.mxu1  ;;  %v5075_v28 = vor.u32 %v5960_v23, %v5072_v57 }
 0x169   :  { %v6739_v33 = vadd.f32 %v1140_v49, %v1091_v62  ;;  %v5200_v62 = vld [vmem:[#allocation12 + $0x170] sm:$0xf0] }
 0x16a   :  { %v5203_v27 = vor.u32 %v5992_v35, %v5200_v62  ;;  %1889 = vmatpush.bf16.msrb.mxu2 %v5075_v28 }
 0x16c   :  { %1938 = vmatpush.bf16.msrb.mxu3 %v5203_v27  ;;  %v5956_v27 = vld [vmem:[#allocation12 + $0x44] sm:$0xf] }
 0x16d   :  { %v1189_v34 = vpop.f32.mrf.mxu2 }
 0x16e   :  { %v1238_v36 = vpop.f32.mrf.mxu3 }
 0x16f   :  { %v6741_v44 = vadd.f32 %v1238_v36, %v1189_v34  ;;  %v1094_v4 = vpop.f32.mrf.mxu0  ;;  %v5070_v34 = vld [vmem:[#allocation12 + $0x60] sm:$0xf]  ;;  %v5962_v36 = vld [vmem:[#allocation12 + $0x6c] sm:$0xf0] }
 0x170   :  { %v1143_v45 = vpop.f32.mrf.mxu1 }
 0x171   :  { %7376 = vst [vmem:[#allocation24_spill] sm:$0xff] %v6741_v44  ;;  %v6743_v56 = vadd.f32 %v1143_v45, %v1094_v4  ;;  %v5071_v4 = vor.u32 %v5962_v36, %v5070_v34 }
 0x172   :  { %1289 = vmatmul.bf16.gmra.mxu0 %v6611_v16  ;;  %1387 = vmatmul.bf16.gmra.mxu2 %v6611_v16 }
 0x173   :  { %7377 = vst [vmem:[#allocation25_spill] sm:$0xff] %v6743_v56  ;;  %1338 = vmatmul.bf16.gmra.mxu1 %v6613_v18  ;;  %1436 = vmatmul.bf16.gmra.mxu3 %v6613_v18  ;;  %v5198_v18 = vld [vmem:[#allocation12 + $0x160] sm:$0xf]  ;;  %v5994_v56 = vld [vmem:[#allocation12 + $0x16c] sm:$0xf0] }
 0x174   :  { %1791 = vmatpush.bf16.msrb.mxu0 %v5071_v4  ;;  %v5199_v44 = vor.u32 %v5994_v56, %v5198_v18  ;;  %v5988_v56 = vld [vmem:[#allocation12 + $0x144] sm:$0xf] }
 0x175   :  { %v1192_v12 = vpop.f32.mrf.mxu2 }
 0x176   :  { %v1241_v49 = vpop.f32.mrf.mxu3  ;;  %1840 = vmatpush.bf16.msrb.mxu1 %v5199_v44 }
 0x177   :  { %v6749_v13 = vadd.f32 %v1241_v49, %v1192_v12  ;;  %v1096_v50 = vpop.f32.mrf.mxu0  ;;  %v5056_v49 = vld [vmem:[#allocation12 + $0x50] sm:$0xf0] }
 0x178   :  { %v1145_v16 = vpop.f32.mrf.mxu1  ;;  %v5059_v44 = vor.u32 %v5956_v27, %v5056_v49 }
 0x179   :  { %v6751_v45 = vadd.f32 %v1145_v16, %v1096_v50  ;;  %v5184_v50 = vld [vmem:[#allocation12 + $0x150] sm:$0xf0] }
 0x17a   :  { %v5187_v36 = vor.u32 %v5988_v56, %v5184_v50  ;;  %1890 = vmatpush.bf16.msrb.mxu2 %v5059_v44 }
 0x17c   :  { %1939 = vmatpush.bf16.msrb.mxu3 %v5187_v36  ;;  %v5952_v36 = vld [vmem:[#allocation12 + $0x24] sm:$0xf] }
 0x17d   :  { %v1194_v23 = vpop.f32.mrf.mxu2 }
 0x17e   :  { %v1243_v57 = vpop.f32.mrf.mxu3 }
 0x17f   :  { %v6753_v35 = vadd.f32 %v1243_v57, %v1194_v23  ;;  %v1099_v28 = vpop.f32.mrf.mxu0  ;;  %v5054_v23 = vld [vmem:[#allocation12 + $0x40] sm:$0xf]  ;;  %v5958_v57 = vld [vmem:[#allocation12 + $0x4c] sm:$0xf0] }
 0x180   :  { %v1148_v62 = vpop.f32.mrf.mxu1 }
 0x181   :  { %7378 = vst [vmem:[#allocation26_spill] sm:$0xff] %v6753_v35  ;;  %v6755_v12 = vadd.f32 %v1148_v62, %v1099_v28  ;;  %v5055_v28 = vor.u32 %v5958_v57, %v5054_v23 }
 0x182   :  { %1294 = vmatmul.bf16.gmra.mxu0 %v6631_v52  ;;  %1392 = vmatmul.bf16.gmra.mxu2 %v6631_v52 }
 0x183   :  { %7379 = vst [vmem:[#allocation27_spill] sm:$0xff] %v6755_v12  ;;  %1343 = vmatmul.bf16.gmra.mxu1 %v6633_v53  ;;  %1441 = vmatmul.bf16.gmra.mxu3 %v6633_v53  ;;  %v5182_v53 = vld [vmem:[#allocation12 + $0x140] sm:$0xf]  ;;  %v5990_v12 = vld [vmem:[#allocation12 + $0x14c] sm:$0xf0] }
 0x184   :  { %1792 = vmatpush.bf16.msrb.mxu0 %v5055_v28  ;;  %v5183_v35 = vor.u32 %v5990_v12, %v5182_v53  ;;  %v5984_v12 = vld [vmem:[#allocation12 + $0x124] sm:$0xf] }
 0x185   :  { %v1197_v34 = vpop.f32.mrf.mxu2 }
 0x186   :  { %v1246_v16 = vpop.f32.mrf.mxu3  ;;  %1841 = vmatpush.bf16.msrb.mxu1 %v5183_v35 }
 0x187   :  { %v6761_v4 = vadd.f32 %v1246_v16, %v1197_v34  ;;  %v1101_v18 = vpop.f32.mrf.mxu0  ;;  %v5040_v16 = vld [vmem:[#allocation12 + $0x30] sm:$0xf0] }
 0x188   :  { %v1150_v52 = vpop.f32.mrf.mxu1  ;;  %v5043_v35 = vor.u32 %v5952_v36, %v5040_v16 }
 0x189   :  { %v6763_v62 = vadd.f32 %v1150_v52, %v1101_v18  ;;  %v5168_v18 = vld [vmem:[#allocation12 + $0x130] sm:$0xf0] }
 0x18a   :  { %v5171_v57 = vor.u32 %v5984_v12, %v5168_v18  ;;  %1891 = vmatpush.bf16.msrb.mxu2 %v5043_v35 }
 0x18c   :  { %1940 = vmatpush.bf16.msrb.mxu3 %v5171_v57  ;;  %v5948_v57 = vld [vmem:[#allocation12 + $0x4] sm:$0xf] }
 0x18d   :  { %v1199_v27 = vpop.f32.mrf.mxu2 }
 0x18e   :  { %v1248_v49 = vpop.f32.mrf.mxu3 }
 0x18f   :  { %v6765_v56 = vadd.f32 %v1248_v49, %v1199_v27  ;;  %v1104_v44 = vpop.f32.mrf.mxu0  ;;  %v5038_v27 = vld [vmem:[#allocation12 + $0x20] sm:$0xf]  ;;  %v5954_v49 = vld [vmem:[#allocation12 + $0x2c] sm:$0xf0] }
 0x190   :  { %v1153_v50 = vpop.f32.mrf.mxu1 }
 0x191   :  { %7380 = vst [vmem:[#allocation28_spill] sm:$0xff] %v6765_v56  ;;  %v6767_v34 = vadd.f32 %v1153_v50, %v1104_v44  ;;  %v5039_v44 = vor.u32 %v5954_v49, %v5038_v27 }
 0x192   :  { %1299 = vmatmul.bf16.gmra.mxu0 %v6651_v30  ;;  %1397 = vmatmul.bf16.gmra.mxu2 %v6651_v30 }
 0x193   :  { %7381 = vst [vmem:[#allocation29_spill] sm:$0xff] %v6767_v34  ;;  %1348 = vmatmul.bf16.gmra.mxu1 %v6653_v31  ;;  %1446 = vmatmul.bf16.gmra.mxu3 %v6653_v31  ;;  %v5166_v31 = vld [vmem:[#allocation12 + $0x120] sm:$0xf]  ;;  %v5986_v34 = vld [vmem:[#allocation12 + $0x12c] sm:$0xf0] }
 0x194   :  { %1793 = vmatpush.bf16.msrb.mxu0 %v5039_v44  ;;  %v5167_v56 = vor.u32 %v5986_v34, %v5166_v31  ;;  %v5980_v34 = vld [vmem:[#allocation12 + $0x104] sm:$0xf] }
 0x195   :  { %v1202_v23 = vpop.f32.mrf.mxu2 }
 0x196   :  { %v1251_v52 = vpop.f32.mrf.mxu3  ;;  %1842 = vmatpush.bf16.msrb.mxu1 %v5167_v56 }
 0x197   :  { %v6773_v28 = vadd.f32 %v1251_v52, %v1202_v23  ;;  %v1106_v53 = vpop.f32.mrf.mxu0  ;;  %v5024_v52 = vld [vmem:[#allocation12 + $0x10] sm:$0xf0] }
 0x198   :  { %v1155_v30 = vpop.f32.mrf.mxu1  ;;  %v5027_v56 = vor.u32 %v5948_v57, %v5024_v52 }
 0x199   :  { %v6775_v50 = vadd.f32 %v1155_v30, %v1106_v53  ;;  %v5152_v53 = vld [vmem:[#allocation12 + $0x110] sm:$0xf0] }
 0x19a   :  { %v5155_v49 = vor.u32 %v5980_v34, %v5152_v53  ;;  %1892 = vmatpush.bf16.msrb.mxu2 %v5027_v56 }
 0x19c   :  { %1941 = vmatpush.bf16.msrb.mxu3 %v5155_v49  ;;  %v5977_v49 = vld [vmem:[#allocation12 + $0xec] sm:$0xf] }
 0x19d   :  { %v1204_v36 = vpop.f32.mrf.mxu2 }
 0x19e   :  { %v1253_v16 = vpop.f32.mrf.mxu3 }
 0x19f   :  { %v6777_v12 = vadd.f32 %v1253_v16, %v1204_v36  ;;  %v1109_v35 = vpop.f32.mrf.mxu0  ;;  %v5022_v36 = vld [vmem:[#allocation12] sm:$0xf]  ;;  %v5950_v16 = vld [vmem:[#allocation12 + $0xc] sm:$0xf0] }
 0x1a0   :  { %v1158_v18 = vpop.f32.mrf.mxu1 }
 0x1a1   :  { %7382 = vst [vmem:[#allocation30_spill] sm:$0xff] %v6777_v12  ;;  %v6779_v23 = vadd.f32 %v1158_v18, %v1109_v35  ;;  %v5023_v35 = vor.u32 %v5950_v16, %v5022_v36 }
 0x1a2   :  { %1304 = vmatmul.bf16.gmra.mxu0 %v6669_v8  ;;  %1402 = vmatmul.bf16.gmra.mxu2 %v6669_v8 }
 0x1a3   :  { %7383 = vst [vmem:[#allocation31_spill] sm:$0xff] %v6779_v23  ;;  %1353 = vmatmul.bf16.gmra.mxu1 %v6673_v10  ;;  %1451 = vmatmul.bf16.gmra.mxu3 %v6673_v10  ;;  %v5150_v10 = vld [vmem:[#allocation12 + $0x100] sm:$0xf]  ;;  %v5982_v23 = vld [vmem:[#allocation12 + $0x10c] sm:$0xf0] }
 0x1a4   :  { %1794 = vmatpush.bf16.msrb.mxu0 %v5023_v35  ;;  %v5151_v12 = vor.u32 %v5982_v23, %v5150_v10  ;;  %v6009_v23 = vld [vmem:[#allocation12 + $0x1ec] sm:$0xf] }
 0x1a5   :  { %v1207_v27 = vpop.f32.mrf.mxu2 }
 0x1a6   :  { %v1256_v30 = vpop.f32.mrf.mxu3  ;;  %1843 = vmatpush.bf16.msrb.mxu1 %v5151_v12 }
 0x1a7   :  { %v6785_v44 = vadd.f32 %v1256_v30, %v1207_v27  ;;  %v1111_v31 = vpop.f32.mrf.mxu0  ;;  %v5144_v30 = vld [vmem:[#allocation12 + $0xf8] sm:$0xf0] }
 0x1a8   :  { %v1160_v8 = vpop.f32.mrf.mxu1  ;;  %v5147_v12 = vor.u32 %v5977_v49, %v5144_v30 }
 0x1a9   :  { %v6787_v18 = vadd.f32 %v1160_v8, %v1111_v31  ;;  %v5272_v31 = vld [vmem:[#allocation12 + $0x1f8] sm:$0xf0] }
 0x1aa   :  { %v5275_v16 = vor.u32 %v6009_v23, %v5272_v31  ;;  %2081 = vmatpush.bf16.msra.mxu2 %v5147_v12 }
 0x1ac   :  { %2130 = vmatpush.bf16.msra.mxu3 %v5275_v16  ;;  %v5973_v16 = vld [vmem:[#allocation12 + $0xcc] sm:$0xf] }
 0x1ad   :  { %v1209_v57 = vpop.f32.mrf.mxu2 }
 0x1ae   :  { %v1258_v52 = vpop.f32.mrf.mxu3 }
 0x1af   :  { %v6789_v34 = vadd.f32 %v1258_v52, %v1209_v57  ;;  %v1114_v56 = vpop.f32.mrf.mxu0  ;;  %v5142_v57 = vld [vmem:[#allocation12 + $0xe8] sm:$0xf]  ;;  %v5979_v52 = vld [vmem:[#allocation12 + $0xf4] sm:$0xf0] }
 0x1b0   :  { %v1163_v53 = vpop.f32.mrf.mxu1 }
 0x1b1   :  { %7384 = vst [vmem:[#allocation32_spill] sm:$0xff] %v6789_v34  ;;  %v6791_v27 = vadd.f32 %v1163_v53, %v1114_v56  ;;  %v5143_v56 = vor.u32 %v5979_v52, %v5142_v57  ;;  %v187_v57 = vld [vmem:[%s7365_s3] sm:$0x3] }
 0x1b2   :  { %1309 = vmatmul.bf16.gmra.mxu0 %v6687_v0  ;;  %1407 = vmatmul.bf16.gmra.mxu2 %v6687_v0 }
 0x1b3   :  { %7385 = vst [vmem:[#allocation33_spill] sm:$0xff] %v6791_v27  ;;  %1358 = vmatmul.bf16.gmra.mxu1 %v6689_v1  ;;  %1456 = vmatmul.bf16.gmra.mxu3 %v6689_v1  ;;  %v5270_v1 = vld [vmem:[#allocation12 + $0x1e8] sm:$0xf]  ;;  %v6011_v27 = vld [vmem:[#allocation12 + $0x1f4] sm:$0xf0] }
 0x1b4   :  { %1983 = vmatpush.bf16.msra.mxu0 %v5143_v56  ;;  %v5271_v34 = vor.u32 %v6011_v27, %v5270_v1  ;;  %v6005_v27 = vld [vmem:[#allocation12 + $0x1cc] sm:$0xf] }
 0x1b5   :  { %v1212_v36 = vpop.f32.mrf.mxu2 }
 0x1b6   :  { %v1261_v8 = vpop.f32.mrf.mxu3  ;;  %2032 = vmatpush.bf16.msra.mxu1 %v5271_v34 }
 0x1b7   :  { %v6797_v35 = vadd.f32 %v1261_v8, %v1212_v36  ;;  %v1116_v10 = vpop.f32.mrf.mxu0  ;;  %v5128_v8 = vld [vmem:[#allocation12 + $0xd8] sm:$0xf0] }
 0x1b8   :  { %v1165_v0 = vpop.f32.mrf.mxu1  ;;  %v5131_v34 = vor.u32 %v5973_v16, %v5128_v8  ;;  %v6816_v16 = vperm.slane %v187_v57, 1 }
 0x1b9   :  { %v6799_v53 = vadd.f32 %v1165_v0, %v1116_v10  ;;  %v5256_v10 = vld [vmem:[#allocation12 + $0x1d8] sm:$0xf0] }
 0x1ba   :  { %v5259_v0 = vor.u32 %v6005_v27, %v5256_v10  ;;  %2082 = vmatpush.bf16.msra.mxu2 %v5131_v34 }
 0x1bc   :  { %2131 = vmatpush.bf16.msra.mxu3 %v5259_v0 }
 0x1bd   :  { %v1214_v49 = vpop.f32.mrf.mxu2 }
 0x1be   :  { %v1263_v30 = vpop.f32.mrf.mxu3 }
 0x1bf   :  { %v6801_v23 = vadd.f32 %v1263_v30, %v1214_v49  ;;  %v1119_v12 = vpop.f32.mrf.mxu0  ;;  %v5126_v49 = vld [vmem:[#allocation12 + $0xc8] sm:$0xf]  ;;  %v5975_v30 = vld [vmem:[#allocation12 + $0xd4] sm:$0xf0] }
 0x1c0   :  { %v1168_v31 = vpop.f32.mrf.mxu1 }
 0x1c1   :  { %7386 = vst [vmem:[#allocation34_spill] sm:$0xff] %v6801_v23  ;;  %v6803_v36 = vadd.f32 %v1168_v31, %v1119_v12  ;;  %v5127_v31 = vor.u32 %v5975_v30, %v5126_v49  ;;  %v6007_v23 = vld [vmem:[#allocation12 + $0x1d4] sm:$0xf0] }
 0x1c2   :  { %1314 = vmatmul.bf16.gmra.mxu0 %v6707_v21  ;;  %1412 = vmatmul.bf16.gmra.mxu2 %v6707_v21 }
 0x1c3   :  { %7387 = vst [vmem:[#allocation35_spill] sm:$0xff] %v6803_v36  ;;  %1363 = vmatmul.bf16.gmra.mxu1 %v6709_v26  ;;  %1461 = vmatmul.bf16.gmra.mxu3 %v6709_v26  ;;  %v6814_v26 = vperm.slane %v187_v57, 0  ;;  %v5254_v36 = vld [vmem:[#allocation12 + $0x1c8] sm:$0xf]  ;;  %v334_v57 = vadd.f32 %v6565_v17, %v6816_v16  ;;  %v6001_v17 = vld [vmem:[#allocation12 + $0x1ac] sm:$0xf] }
 0x1c4   :  { %1984 = vmatpush.bf16.msra.mxu0 %v5127_v31  ;;  %v5255_v27 = vor.u32 %v6007_v23, %v5254_v36  ;;  %v5240_v31 = vld [vmem:[#allocation12 + $0x1b8] sm:$0xf0] }
 0x1c5   :  { %v1217_v52 = vpop.f32.mrf.mxu2  ;;  %v283_v34 = vadd.f32 %v6555_v60, %v6814_v26  ;;  %v285_v10 = vadd.f32 %v6563_v15, %v6814_v26  ;;  %v5112_v15 = vld [vmem:[#allocation12 + $0xb8] sm:$0xf0] }
 0x1c6   :  { %v1266_v56 = vpop.f32.mrf.mxu3  ;;  %2033 = vmatpush.bf16.msra.mxu1 %v5255_v27 }
 0x1c7   :  { %v6812_v1 = vadd.f32 %v1266_v56, %v1217_v52  ;;  %v1121_v21 = vpop.f32.mrf.mxu0  ;;  %v332_v52 = vadd.f32 %v6557_v3, %v6816_v16  ;;  %v6830_v30 = vpack.c.bf16 %v285_v10, %v283_v34  ;;  %v5969_v3 = vld [vmem:[#allocation12 + $0xac] sm:$0xf]  ;;  %v5243_v34 = vor.u32 %v6001_v17, %v5240_v31 }
 0x1c8   :  { %v1170_v12 = vpop.f32.mrf.mxu1  ;;  %v337_v17 = vadd.f32 %v6581_v32, %v6816_v16  ;;  %v5965_v32 = vld [vmem:[#allocation12 + $0x8c] sm:$0xf] }
 0x1c9   :  { %7388 = vst [vmem:[#allocation36_spill] sm:$0xff] %v6812_v1  ;;  %v6818_v8 = vadd.f32 %v1170_v12, %v1121_v21  ;;  %v6832_v36 = vpack.c.bf16 %v334_v57, %v332_v52  ;;  %v5115_v12 = vor.u32 %v5969_v3, %v5112_v15  ;;  %2132 = vmatpush.bf16.msra.mxu3 %v5243_v34 }
 0x1ca   :  { %v288_v3 = vadd.f32 %v6579_v25, %v6814_v26  ;;  %v290_v15 = vadd.f32 %v6583_v41, %v6814_v26  ;;  %v5096_v41 = vld [vmem:[#allocation12 + $0x98] sm:$0xf0] }
 0x1cb   :  { %7389 = vst [vmem:[#allocation37_spill] sm:$0xff] %v6818_v8  ;;  %2083 = vmatpush.bf16.msra.mxu2 %v5115_v12  ;;  %v6003_v8 = vld [vmem:[#allocation12 + $0x1b4] sm:$0xf0]  ;;  %v339_v12 = vadd.f32 %v6585_v43, %v6816_v16  ;;  %v5997_v43 = vld [vmem:[#allocation12 + $0x18c] sm:$0xf] }
 0x1cd   :  { %v1219_v0 = vpop.f32.mrf.mxu2 }
 0x1ce   :  { %v1268_v56 = vpop.f32.mrf.mxu3 }
 0x1cf   :  { %v6828_v21 = vadd.f32 %v1268_v56, %v1219_v0  ;;  %v1280_v49 = vpop.f32.mrf.mxu0  ;;  %v5110_v0 = vld [vmem:[#allocation12 + $0xa8] sm:$0xf]  ;;  %v5971_v56 = vld [vmem:[#allocation12 + $0xb4] sm:$0xf0] }
 0x1d0   :  { %v1329_v23 = vpop.f32.mrf.mxu1 }
 0x1d1   :  { %7390 = vst [vmem:[#allocation38_spill] sm:$0xff] %v6828_v21  ;;  %v6834_v60 = vadd.f32 %v1329_v23, %v1280_v49  ;;  %v5111_v23 = vor.u32 %v5971_v56, %v5110_v0  ;;  %v5238_v21 = vld [vmem:[#allocation12 + $0x1a8] sm:$0xf]  ;;  %v5224_v0 = vld [vmem:[#allocation12 + $0x198] sm:$0xf0] }
 0x1d2   :  { %1795 = vmatmul.bf16.vlgmr.msrb.gmra.mxu0 %v6830_v30  ;;  %1893 = vmatmul.bf16.vlgmr.msrb.gmra.mxu2 %v6830_v30  ;;  %v5239_v1 = vor.u32 %v6003_v8, %v5238_v21  ;;  %v6856_v21 = vpack.c.bf16 %v339_v12, %v337_v17  ;;  %v5094_v17 = vld [vmem:[#allocation12 + $0x88] sm:$0xf]  ;;  %v5967_v12 = vld [vmem:[#allocation12 + $0x94] sm:$0xf0] }
 0x1d3   :  { %7391 = vst [vmem:[#allocation39_spill] sm:$0xff] %v6834_v60  ;;  %1844 = vmatmul.bf16.vlgmr.msrb.gmra.mxu1 %v6832_v36  ;;  %1942 = vmatmul.bf16.vlgmr.msrb.gmra.mxu3 %v6832_v36 }
 0x1d4   :  { %1985 = vmatpush.bf16.msra.mxu0 %v5111_v23  ;;  %2034 = vmatpush.bf16.msra.mxu1 %v5239_v1  ;;  %v5099_v1 = vor.u32 %v5965_v32, %v5096_v41  ;;  %v293_v32 = vadd.f32 %v6599_v51, %v6814_v26  ;;  %v295_v41 = vadd.f32 %v6603_v5, %v6814_v26  ;;  %v5080_v5 = vld [vmem:[#allocation12 + $0x78] sm:$0xf0] }
 0x1d5   :  { %v1378_v27 = vpop.f32.mrf.mxu2 }
 0x1d6   :  { %v1427_v10 = vpop.f32.mrf.mxu3  ;;  %2084 = vmatpush.bf16.msra.mxu2 %v5099_v1  ;;  %v344_v1 = vadd.f32 %v6605_v7, %v6816_v16  ;;  %v5993_v7 = vld [vmem:[#allocation12 + $0x16c] sm:$0xf] }
 0x1d7   :  { %v6840_v52 = vadd.f32 %v1427_v10, %v1378_v27  ;;  %v1282_v57 = vpop.f32.mrf.mxu0 }
 0x1d8   :  { %v1331_v49 = vpop.f32.mrf.mxu1 }
 0x1d9   :  { %v6842_v60 = vadd.f32 %v1331_v49, %v1282_v57  ;;  %v6854_v57 = vpack.c.bf16 %v290_v15, %v288_v3  ;;  %v5227_v49 = vor.u32 %v5997_v43, %v5224_v0  ;;  %v342_v43 = vadd.f32 %v6601_v58, %v6816_v16  ;;  %v5961_v58 = vld [vmem:[#allocation12 + $0x6c] sm:$0xf] }
 0x1db   :  { %2133 = vmatpush.bf16.msra.mxu3 %v5227_v49 }
 0x1dd   :  { %v1380_v31 = vpop.f32.mrf.mxu2 }
 0x1de   :  { %v1429_v27 = vpop.f32.mrf.mxu3 }
 0x1df   :  { %v6852_v34 = vadd.f32 %v1429_v27, %v1380_v31  ;;  %v1285_v10 = vpop.f32.mrf.mxu0  ;;  %v5095_v27 = vor.u32 %v5967_v12, %v5094_v17  ;;  %v6880_v17 = vpack.c.bf16 %v344_v1, %v342_v43  ;;  %v5208_v12 = vld [vmem:[#allocation12 + $0x178] sm:$0xf0]  ;;  %v5078_v43 = vld [vmem:[#allocation12 + $0x68] sm:$0xf]  ;;  %v5963_v1 = vld [vmem:[#allocation12 + $0x74] sm:$0xf0] }
 0x1e0   :  { %v1334_v8 = vpop.f32.mrf.mxu1 }
 0x1e1   :  { %7392 = vst [vmem:[#allocation40_spill] sm:$0xff] %v6852_v34  ;;  %v6858_v25 = vadd.f32 %v1334_v8, %v1285_v10  ;;  %v5222_v8 = vld [vmem:[#allocation12 + $0x188] sm:$0xf]  ;;  %1986 = vmatpush.bf16.msra.mxu0 %v5095_v27  ;;  %v5211_v27 = vor.u32 %v5993_v7, %v5208_v12  ;;  %v347_v7 = vadd.f32 %v6621_v29, %v6816_v16  ;;  %v5957_v29 = vld [vmem:[#allocation12 + $0x4c] sm:$0xf] }
 0x1e2   :  { %1800 = vmatmul.bf16.gmra.mxu0 %v6854_v57  ;;  %1898 = vmatmul.bf16.gmra.mxu2 %v6854_v57 }
 0x1e3   :  { %7393 = vst [vmem:[#allocation41_spill] sm:$0xff] %v6858_v25  ;;  %1849 = vmatmul.bf16.gmra.mxu1 %v6856_v21  ;;  %1947 = vmatmul.bf16.gmra.mxu3 %v6856_v21  ;;  %v5999_v25 = vld [vmem:[#allocation12 + $0x194] sm:$0xf0] }
 0x1e4   :  { %v5223_v34 = vor.u32 %v5999_v25, %v5222_v8  ;;  %2134 = vmatpush.bf16.msra.mxu3 %v5211_v27 }
 0x1e5   :  { %v1383_v56 = vpop.f32.mrf.mxu2 }
 0x1e6   :  { %v1432_v23 = vpop.f32.mrf.mxu3  ;;  %2035 = vmatpush.bf16.msra.mxu1 %v5223_v34  ;;  %v5083_v34 = vor.u32 %v5961_v58, %v5080_v5  ;;  %v298_v58 = vadd.f32 %v6619_v19, %v6814_v26  ;;  %v300_v5 = vadd.f32 %v6623_v39, %v6814_v26  ;;  %v5064_v39 = vld [vmem:[#allocation12 + $0x58] sm:$0xf0] }
 0x1e7   :  { %v6864_v3 = vadd.f32 %v1432_v23, %v1383_v56  ;;  %v1287_v15 = vpop.f32.mrf.mxu0 }
 0x1e8   :  { %v1336_v31 = vpop.f32.mrf.mxu1  ;;  %2085 = vmatpush.bf16.msra.mxu2 %v5083_v34  ;;  %v349_v34 = vadd.f32 %v6625_v42, %v6816_v16  ;;  %v5989_v42 = vld [vmem:[#allocation12 + $0x14c] sm:$0xf] }
 0x1e9   :  { %v6866_v10 = vadd.f32 %v1336_v31, %v1287_v15  ;;  %v6878_v15 = vpack.c.bf16 %v295_v41, %v293_v32 }
 0x1ed   :  { %v1385_v0 = vpop.f32.mrf.mxu2 }
 0x1ee   :  { %v1434_v56 = vpop.f32.mrf.mxu3 }
 0x1ef   :  { %v6876_v49 = vadd.f32 %v1434_v56, %v1385_v0  ;;  %v1290_v23 = vpop.f32.mrf.mxu0  ;;  %v5079_v56 = vor.u32 %v5963_v1, %v5078_v43  ;;  %v6904_v43 = vpack.c.bf16 %v349_v34, %v347_v7  ;;  %v5192_v1 = vld [vmem:[#allocation12 + $0x158] sm:$0xf0]  ;;  %v5062_v7 = vld [vmem:[#allocation12 + $0x48] sm:$0xf]  ;;  %v5959_v34 = vld [vmem:[#allocation12 + $0x54] sm:$0xf0] }
 0x1f0   :  { %v1339_v25 = vpop.f32.mrf.mxu1 }
 0x1f1   :  { %7394 = vst [vmem:[#allocation42_spill] sm:$0xff] %v6876_v49  ;;  %v6882_v51 = vadd.f32 %v1339_v25, %v1290_v23  ;;  %v5206_v25 = vld [vmem:[#allocation12 + $0x168] sm:$0xf]  ;;  %1987 = vmatpush.bf16.msra.mxu0 %v5079_v56  ;;  %v5195_v56 = vor.u32 %v5989_v42, %v5192_v1  ;;  %v352_v42 = vadd.f32 %v6641_v63, %v6816_v16  ;;  %v5953_v63 = vld [vmem:[#allocation12 + $0x2c] sm:$0xf] }
 0x1f2   :  { %1805 = vmatmul.bf16.gmra.mxu0 %v6878_v15  ;;  %1903 = vmatmul.bf16.gmra.mxu2 %v6878_v15 }
 0x1f3   :  { %7395 = vst [vmem:[#allocation43_spill] sm:$0xff] %v6882_v51  ;;  %1854 = vmatmul.bf16.gmra.mxu1 %v6880_v17  ;;  %1952 = vmatmul.bf16.gmra.mxu3 %v6880_v17  ;;  %v5995_v51 = vld [vmem:[#allocation12 + $0x174] sm:$0xf0] }
 0x1f4   :  { %v5207_v49 = vor.u32 %v5995_v51, %v5206_v25  ;;  %2135 = vmatpush.bf16.msra.mxu3 %v5195_v56 }
 0x1f5   :  { %v1388_v31 = vpop.f32.mrf.mxu2 }
 0x1f6   :  { %v1437_v8 = vpop.f32.mrf.mxu3  ;;  %2036 = vmatpush.bf16.msra.mxu1 %v5207_v49  ;;  %v5067_v49 = vor.u32 %v5957_v29, %v5064_v39  ;;  %v303_v29 = vadd.f32 %v6639_v54, %v6814_v26  ;;  %v305_v39 = vadd.f32 %v6643_v11, %v6814_v26  ;;  %v5048_v11 = vld [vmem:[#allocation12 + $0x38] sm:$0xf0] }
 0x1f7   :  { %v6888_v32 = vadd.f32 %v1437_v8, %v1388_v31  ;;  %v1292_v41 = vpop.f32.mrf.mxu0 }
 0x1f8   :  { %v1341_v0 = vpop.f32.mrf.mxu1  ;;  %2086 = vmatpush.bf16.msra.mxu2 %v5067_v49  ;;  %v354_v49 = vadd.f32 %v6645_v20, %v6816_v16  ;;  %v5985_v20 = vld [vmem:[#allocation12 + $0x12c] sm:$0xf] }
 0x1f9   :  { %v6890_v23 = vadd.f32 %v1341_v0, %v1292_v41  ;;  %v6902_v41 = vpack.c.bf16 %v300_v5, %v298_v58 }
 0x1fd   :  { %v1390_v12 = vpop.f32.mrf.mxu2 }
 0x1fe   :  { %v1439_v31 = vpop.f32.mrf.mxu3 }
 0x1ff   :  { %v6900_v27 = vadd.f32 %v1439_v31, %v1390_v12  ;;  %v1295_v8 = vpop.f32.mrf.mxu0  ;;  %v5063_v31 = vor.u32 %v5959_v34, %v5062_v7  ;;  %v6928_v7 = vpack.c.bf16 %v354_v49, %v352_v42  ;;  %v5176_v34 = vld [vmem:[#allocation12 + $0x138] sm:$0xf0]  ;;  %v5046_v42 = vld [vmem:[#allocation12 + $0x28] sm:$0xf]  ;;  %v5955_v49 = vld [vmem:[#allocation12 + $0x34] sm:$0xf0] }
 0x200   :  { %v1344_v51 = vpop.f32.mrf.mxu1 }
 0x201   :  { %7396 = vst [vmem:[#allocation44_spill] sm:$0xff] %v6900_v27  ;;  %v6906_v19 = vadd.f32 %v1344_v51, %v1295_v8  ;;  %v5190_v51 = vld [vmem:[#allocation12 + $0x148] sm:$0xf]  ;;  %1988 = vmatpush.bf16.msra.mxu0 %v5063_v31  ;;  %v5179_v31 = vor.u32 %v5985_v20, %v5176_v34  ;;  %v357_v20 = vadd.f32 %v6661_v46, %v6816_v16  ;;  %v5949_v46 = vld [vmem:[#allocation12 + $0xc] sm:$0xf] }
 0x202   :  { %1810 = vmatmul.bf16.gmra.mxu0 %v6902_v41  ;;  %1908 = vmatmul.bf16.gmra.mxu2 %v6902_v41 }
 0x203   :  { %7397 = vst [vmem:[#allocation45_spill] sm:$0xff] %v6906_v19  ;;  %1859 = vmatmul.bf16.gmra.mxu1 %v6904_v43  ;;  %1957 = vmatmul.bf16.gmra.mxu3 %v6904_v43  ;;  %v5991_v19 = vld [vmem:[#allocation12 + $0x154] sm:$0xf0] }
 0x204   :  { %v5191_v27 = vor.u32 %v5991_v19, %v5190_v51  ;;  %2136 = vmatpush.bf16.msra.mxu3 %v5179_v31 }
 0x205   :  { %v1393_v0 = vpop.f32.mrf.mxu2 }
 0x206   :  { %v1442_v25 = vpop.f32.mrf.mxu3  ;;  %2037 = vmatpush.bf16.msra.mxu1 %v5191_v27  ;;  %v5051_v27 = vor.u32 %v5953_v63, %v5048_v11  ;;  %v308_v63 = vadd.f32 %v6659_v40, %v6814_v26  ;;  %v310_v11 = vadd.f32 %v6667_v6, %v6814_v26  ;;  %v5032_v6 = vld [vmem:[#allocation12 + $0x18] sm:$0xf0] }
 0x207   :  { %v6912_v58 = vadd.f32 %v1442_v25, %v1393_v0  ;;  %v1297_v5 = vpop.f32.mrf.mxu0 }
 0x208   :  { %v1346_v12 = vpop.f32.mrf.mxu1  ;;  %2087 = vmatpush.bf16.msra.mxu2 %v5051_v27  ;;  %v359_v27 = vadd.f32 %v6671_v9, %v6816_v16  ;;  %v5981_v9 = vld [vmem:[#allocation12 + $0x10c] sm:$0xf] }
 0x209   :  { %v6914_v8 = vadd.f32 %v1346_v12, %v1297_v5  ;;  %v6926_v5 = vpack.c.bf16 %v305_v39, %v303_v29 }
 0x20d   :  { %v1395_v1 = vpop.f32.mrf.mxu2 }
 0x20e   :  { %v1444_v0 = vpop.f32.mrf.mxu3 }
 0x20f   :  { %v6924_v56 = vadd.f32 %v1444_v0, %v1395_v1  ;;  %v1300_v25 = vpop.f32.mrf.mxu0  ;;  %v5047_v0 = vor.u32 %v5955_v49, %v5046_v42  ;;  %v6952_v42 = vpack.c.bf16 %v359_v27, %v357_v20  ;;  %v5160_v49 = vld [vmem:[#allocation12 + $0x118] sm:$0xf0]  ;;  %v5030_v20 = vld [vmem:[#allocation12 + $0x8] sm:$0xf]  ;;  %v5951_v27 = vld [vmem:[#allocation12 + $0x14] sm:$0xf0] }
 0x210   :  { %v1349_v19 = vpop.f32.mrf.mxu1 }
 0x211   :  { %7398 = vst [vmem:[#allocation46_spill] sm:$0xff] %v6924_v56  ;;  %v6930_v54 = vadd.f32 %v1349_v19, %v1300_v25  ;;  %v5174_v19 = vld [vmem:[#allocation12 + $0x128] sm:$0xf]  ;;  %1989 = vmatpush.bf16.msra.mxu0 %v5047_v0  ;;  %v5163_v0 = vor.u32 %v5981_v9, %v5160_v49  ;;  %v362_v9 = vadd.f32 %v6681_v48, %v6816_v16 }
 0x212   :  { %1815 = vmatmul.bf16.gmra.mxu0 %v6926_v5  ;;  %1913 = vmatmul.bf16.gmra.mxu2 %v6926_v5 }
 0x213   :  { %7399 = vst [vmem:[#allocation47_spill] sm:$0xff] %v6930_v54  ;;  %1864 = vmatmul.bf16.gmra.mxu1 %v6928_v7  ;;  %1962 = vmatmul.bf16.gmra.mxu3 %v6928_v7  ;;  %v5987_v54 = vld [vmem:[#allocation12 + $0x134] sm:$0xf0] }
 0x214   :  { %v5175_v56 = vor.u32 %v5987_v54, %v5174_v19  ;;  %2137 = vmatpush.bf16.msra.mxu3 %v5163_v0 }
 0x215   :  { %v1398_v12 = vpop.f32.mrf.mxu2 }
 0x216   :  { %v1447_v51 = vpop.f32.mrf.mxu3  ;;  %2038 = vmatpush.bf16.msra.mxu1 %v5175_v56  ;;  %v5035_v56 = vor.u32 %v5949_v46, %v5032_v6  ;;  %v313_v46 = vadd.f32 %v6679_v47, %v6814_v26  ;;  %v315_v6 = vadd.f32 %v6695_v2, %v6814_v26 }
 0x217   :  { %v6936_v29 = vadd.f32 %v1447_v51, %v1398_v12  ;;  %v1302_v39 = vpop.f32.mrf.mxu0 }
 0x218   :  { %v1351_v1 = vpop.f32.mrf.mxu1  ;;  %2088 = vmatpush.bf16.msra.mxu2 %v5035_v56  ;;  %v364_v56 = vadd.f32 %v6697_v22, %v6816_v16 }
 0x219   :  { %v6938_v25 = vadd.f32 %v1351_v1, %v1302_v39  ;;  %v6950_v39 = vpack.c.bf16 %v310_v11, %v308_v63 }
 0x21d   :  { %v1400_v34 = vpop.f32.mrf.mxu2 }
 0x21e   :  { %v1449_v12 = vpop.f32.mrf.mxu3 }
 0x21f   :  { %v6948_v31 = vadd.f32 %v1449_v12, %v1400_v34  ;;  %v1305_v51 = vpop.f32.mrf.mxu0  ;;  %v5031_v12 = vor.u32 %v5951_v27, %v5030_v20  ;;  %v6976_v20 = vpack.c.bf16 %v364_v56, %v362_v9 }
 0x220   :  { %v1354_v54 = vpop.f32.mrf.mxu1 }
 0x221   :  { %7400 = vst [vmem:[#allocation48_spill] sm:$0xff] %v6948_v31  ;;  %v6954_v40 = vadd.f32 %v1354_v54, %v1305_v51  ;;  %v5158_v54 = vld [vmem:[#allocation12 + $0x108] sm:$0xf]  ;;  %1990 = vmatpush.bf16.msra.mxu0 %v5031_v12  ;;  %v318_v12 = vadd.f32 %v6699_v55, %v6814_v26 }
 0x222   :  { %1820 = vmatmul.bf16.gmra.mxu0 %v6950_v39  ;;  %1918 = vmatmul.bf16.gmra.mxu2 %v6950_v39 }
 0x223   :  { %7401 = vst [vmem:[#allocation49_spill] sm:$0xff] %v6954_v40  ;;  %1869 = vmatmul.bf16.gmra.mxu1 %v6952_v42  ;;  %1967 = vmatmul.bf16.gmra.mxu3 %v6952_v42  ;;  %v5983_v40 = vld [vmem:[#allocation12 + $0x114] sm:$0xf0] }
 0x224   :  { %v5159_v31 = vor.u32 %v5983_v40, %v5158_v54  ;;  %v320_v54 = vadd.f32 %v6715_v14, %v6814_v26 }
 0x225   :  { %v1403_v1 = vpop.f32.mrf.mxu2 }
 0x226   :  { %v1452_v19 = vpop.f32.mrf.mxu3  ;;  %2039 = vmatpush.bf16.msra.mxu1 %v5159_v31 }
 0x227   :  { %v6960_v63 = vadd.f32 %v1452_v19, %v1403_v1  ;;  %v1307_v11 = vpop.f32.mrf.mxu0 }
 0x228   :  { %v1356_v34 = vpop.f32.mrf.mxu1 }
 0x229   :  { %v6962_v51 = vadd.f32 %v1356_v34, %v1307_v11  ;;  %v6974_v11 = vpack.c.bf16 %v315_v6, %v313_v46  ;;  %v367_v46 = vadd.f32 %v6702_v59, %v6816_v16  ;;  %v369_v6 = vadd.f32 %v6717_v38, %v6816_v16  ;;  %v6227_v59 = vld [vmem:[#allocation14 + $0xb8] sm:$0xff] }
 0x22a   :  { %4500 = vmatpush.bf16.msrb.mxu2 %v6227_v59 }
 0x22d   :  { %v1405_v49 = vpop.f32.mrf.mxu2 }
 0x22e   :  { %v1454_v1 = vpop.f32.mrf.mxu3 }
 0x22f   :  { %v6972_v0 = vadd.f32 %v1454_v1, %v1405_v49  ;;  %v1310_v19 = vpop.f32.mrf.mxu0 }
 0x230   :  { %v1359_v40 = vpop.f32.mrf.mxu1 }
 0x231   :  { %v6978_v47 = vadd.f32 %v1359_v40, %v1310_v19  ;;  %v6998_v19 = vpack.c.bf16 %v320_v54, %v318_v12  ;;  %v6235_v12 = vld [vmem:[#allocation14 + $0xf8] sm:$0xff] }
 0x232   :  { %1825 = vmatmul.bf16.gmra.mxu0 %v6974_v11  ;;  %1923 = vmatmul.bf16.gmra.mxu2 %v6974_v11  ;;  %v6219_v54 = vld [vmem:[#allocation14 + $0x78] sm:$0xff] }
 0x233   :  { %1874 = vmatmul.bf16.gmra.mxu1 %v6976_v20  ;;  %1972 = vmatmul.bf16.gmra.mxu3 %v6976_v20 }
 0x234   :  { %4549 = vmatpush.bf16.msrb.mxu3 %v6235_v12  ;;  %4451 = vmatpush.bf16.msrb.mxu1 %v6219_v54 }
 0x235   :  { %v1408_v48 = vpop.f32.mrf.mxu2 }
 0x236   :  { %v1457_v2 = vpop.f32.mrf.mxu3 }
 0x237   :  { %v6984_v22 = vadd.f32 %v1457_v2, %v1408_v48  ;;  %v1312_v31 = vpop.f32.mrf.mxu0  ;;  %v7000_v48 = vpack.c.bf16 %v369_v6, %v367_v46 }
 0x238   :  { %v1361_v27 = vpop.f32.mrf.mxu1 }
 0x239   :  { %7402 = vst [vmem:[#allocation50_spill] sm:$0xff] %v6984_v22  ;;  %v6986_v34 = vadd.f32 %v1361_v27, %v1312_v31  ;;  %v6211_v27 = vld [vmem:[#allocation14 + $0x38] sm:$0xff] }
 0x23a   :  { %4402 = vmatpush.bf16.msrb.mxu0 %v6211_v27 }
 0x23d   :  { %v1410_v9 = vpop.f32.mrf.mxu2 }
 0x23e   :  { %v1459_v56 = vpop.f32.mrf.mxu3 }
 0x23f   :  { %v6996_v49 = vadd.f32 %v1459_v56, %v1410_v9  ;;  %v1315_v1 = vpop.f32.mrf.mxu0 }
 0x240   :  { %v1364_v40 = vpop.f32.mrf.mxu1 }
 0x241   :  { %7403 = vst [vmem:[#allocation51_spill] sm:$0xff] %v6996_v49  ;;  %v7002_v55 = vadd.f32 %v1364_v40, %v1315_v1  ;;  %v7408_v1 = vld [vmem:[#allocation21_spill] sm:$0xff] }
 0x242   :  { %1830 = vmatmul.bf16.gmra.mxu0 %v6998_v19  ;;  %1928 = vmatmul.bf16.gmra.mxu2 %v6998_v19 }
 0x243   :  { %7404 = vst [vmem:[#allocation52_spill] sm:$0xff] %v7002_v55  ;;  %1879 = vmatmul.bf16.gmra.mxu1 %v7000_v48  ;;  %1977 = vmatmul.bf16.gmra.mxu3 %v7000_v48 }
 0x245   :  { %v1413_v14 = vpop.f32.mrf.mxu2 }
 0x246   :  { %v1462_v38 = vpop.f32.mrf.mxu3 }
 0x247   :  { %v7008_v26 = vadd.f32 %v1462_v38, %v1413_v14  ;;  %v1317_v16 = vpop.f32.mrf.mxu0  ;;  %v6226_v38 = vld [vmem:[#allocation14 + $0xb0] sm:$0xff] }
 0x248   :  { %v1366_v2 = vpop.f32.mrf.mxu1  ;;  %4501 = vmatpush.bf16.msrb.mxu2 %v6226_v38 }
 0x249   :  { %7405 = vst [vmem:[#allocation53_spill] sm:$0xff] %v7008_v26  ;;  %v7010_v31 = vadd.f32 %v1366_v2, %v1317_v16  ;;  %v7022_v16 = vld [vmem:[%s7369_s7] sm:$0xf] }
 0x24b   :  { %7406 = vst [vmem:[#allocation54_spill] sm:$0xff] %v7010_v31 }
 0x24d   :  { %v1415_v46 = vpop.f32.mrf.mxu2 }
 0x24e   :  { %v1464_v6 = vpop.f32.mrf.mxu3 }
 0x24f   :  { %v7012_v9 = vadd.f32 %v1464_v6, %v1415_v46  ;;  %v1796_v56 = vpop.f32.mrf.mxu0  ;;  %v7026_v46 = vperm.slane %v7022_v16, 0 }
 0x250   :  { %v1797_v40 = vadd.f32 %v1796_v56, %v7408_v1  ;;  %v1845_v59 = vpop.f32.mrf.mxu1  ;;  %v6210_v1 = vld [vmem:[#allocation14 + $0x30] sm:$0xff] }
 0x251   :  { %7407 = vst [vmem:[#allocation55_spill] sm:$0xff] %v7012_v9  ;;  %4403 = vmatpush.bf16.msrb.mxu0 %v6210_v1 }
 0x252   :  { %v1846_v14 = vadd.f32 %v1845_v59, %v1797_v40  ;;  %1991 = vmatmul.bf16.vlgmr.msra.gmra.mxu0 %v6830_v30  ;;  %2089 = vmatmul.bf16.vlgmr.msra.gmra.mxu2 %v6830_v30  ;;  %v6234_v40 = vld [vmem:[#allocation14 + $0xf0] sm:$0xff] }
 0x253   :  { %2040 = vmatmul.bf16.vlgmr.msra.gmra.mxu1 %v6832_v36  ;;  %2138 = vmatmul.bf16.vlgmr.msra.gmra.mxu3 %v6832_v36 }
 0x254   :  { %v7030_v59 = vadd.f32 %v7026_v46, %v1846_v14  ;;  %4550 = vmatpush.bf16.msrb.mxu3 %v6234_v40 }
 0x255   :  { %v1894_v2 = vpop.f32.mrf.mxu2 }
 0x256   :  { %v1895_v27 = vadd.f32 %v1894_v2, %v6725_v37  ;;  %v1943_v12 = vpop.f32.mrf.mxu3  ;;  %v6218_v37 = vld [vmem:[#allocation14 + $0x70] sm:$0xff]  ;;  %v7036_v2 = vperm.slane %v7022_v16, 1 }
 0x257   :  { %v1798_v54 = vpop.f32.mrf.mxu0  ;;  %4452 = vmatpush.bf16.msrb.mxu1 %v6218_v37  ;;  %v6217_v37 = vld [vmem:[#allocation14 + $0x68] sm:$0xff] }
 0x258   :  { %v1944_v30 = vadd.f32 %v1943_v12, %v1895_v27  ;;  %v1799_v6 = vadd.f32 %v1798_v54, %v6727_v61  ;;  %v1847_v56 = vpop.f32.mrf.mxu1  ;;  %v7409_v27 = vld [vmem:[#allocation22_spill] sm:$0xff] }
 0x25a   :  { %v1848_v36 = vadd.f32 %v1847_v56, %v1799_v6  ;;  %v7410_v56 = vld [vmem:[#allocation23_spill] sm:$0xff]  ;;  %v7043_v1 = vadd.f32 %v7036_v2, %v1944_v30 }
 0x25b   :  { %4453 = vmatpush.bf16.msrb.mxu1 %v6217_v37  ;;  %v6224_v37 = vld [vmem:[#allocation14 + $0xa0] sm:$0xff] }
 0x25c   :  { %v7033_v9 = vadd.f32 %v7026_v46, %v1848_v36 }
 0x25d   :  { %v1896_v38 = vpop.f32.mrf.mxu2 }
 0x25e   :  { %v1897_v12 = vadd.f32 %v1896_v38, %v7409_v27  ;;  %v1945_v54 = vpop.f32.mrf.mxu3  ;;  %v6225_v38 = vld [vmem:[#allocation14 + $0xa8] sm:$0xff] }
 0x25f   :  { %v1801_v6 = vpop.f32.mrf.mxu0  ;;  %4502 = vmatpush.bf16.msrb.mxu2 %v6225_v38 }
 0x260   :  { %v1946_v14 = vadd.f32 %v1945_v54, %v1897_v12  ;;  %v1802_v26 = vadd.f32 %v1801_v6, %v7410_v56  ;;  %v1850_v36 = vpop.f32.mrf.mxu1 }
 0x262   :  { %v7046_v40 = vadd.f32 %v7036_v2, %v1946_v14  ;;  %v1851_v31 = vadd.f32 %v1850_v36, %v1802_v26  ;;  %1996 = vmatmul.bf16.gmra.mxu0 %v6854_v57  ;;  %2094 = vmatmul.bf16.gmra.mxu2 %v6854_v57  ;;  %v6209_v57 = vld [vmem:[#allocation14 + $0x28] sm:$0xff] }
 0x263   :  { %2045 = vmatmul.bf16.gmra.mxu1 %v6856_v21  ;;  %2143 = vmatmul.bf16.gmra.mxu3 %v6856_v21  ;;  %v6233_v36 = vld [vmem:[#allocation14 + $0xe8] sm:$0xff] }
 0x264   :  { %v7057_v61 = vadd.f32 %v7026_v46, %v1851_v31  ;;  %4404 = vmatpush.bf16.msrb.mxu0 %v6209_v57  ;;  %4551 = vmatpush.bf16.msrb.mxu3 %v6233_v36 }
 0x265   :  { %v1899_v27 = vpop.f32.mrf.mxu2  ;;  %4503 = vmatpush.bf16.msrb.mxu2 %v6224_v37 }
 0x266   :  { %v1900_v30 = vadd.f32 %v1899_v27, %v6737_v24  ;;  %v1948_v12 = vpop.f32.mrf.mxu3  ;;  %v7411_v27 = vld [vmem:[#allocation24_spill] sm:$0xff] }
 0x267   :  { %v1803_v54 = vpop.f32.mrf.mxu0 }
 0x268   :  { %v1949_v6 = vadd.f32 %v1948_v12, %v1900_v30  ;;  %v1804_v26 = vadd.f32 %v1803_v54, %v6739_v33  ;;  %v1852_v14 = vpop.f32.mrf.mxu1  ;;  %v7412_v54 = vld [vmem:[#allocation25_spill] sm:$0xff] }
 0x26a   :  { %v1853_v56 = vadd.f32 %v1852_v14, %v1804_v26  ;;  %v7067_v14 = vadd.f32 %v7036_v2, %v1949_v6 }
 0x26c   :  { %v7060_v21 = vadd.f32 %v7026_v46, %v1853_v56 }
 0x26d   :  { %v1901_v24 = vpop.f32.mrf.mxu2 }
 0x26e   :  { %v1902_v38 = vadd.f32 %v1901_v24, %v7411_v27  ;;  %v1950_v55 = vpop.f32.mrf.mxu3 }
 0x26f   :  { %v1806_v30 = vpop.f32.mrf.mxu0 }
 0x270   :  { %v1951_v12 = vadd.f32 %v1950_v55, %v1902_v38  ;;  %v1807_v26 = vadd.f32 %v1806_v30, %v7412_v54  ;;  %v1855_v31 = vpop.f32.mrf.mxu1  ;;  %v6216_v55 = vld [vmem:[#allocation14 + $0x60] sm:$0xff] }
 0x271   :  { %4454 = vmatpush.bf16.msrb.mxu1 %v6216_v55  ;;  %v6223_v55 = vld [vmem:[#allocation14 + $0x98] sm:$0xff] }
 0x272   :  { %v7070_v56 = vadd.f32 %v7036_v2, %v1951_v12  ;;  %v1856_v57 = vadd.f32 %v1855_v31, %v1807_v26  ;;  %2001 = vmatmul.bf16.gmra.mxu0 %v6878_v15  ;;  %2099 = vmatmul.bf16.gmra.mxu2 %v6878_v15  ;;  %v6208_v15 = vld [vmem:[#allocation14 + $0x20] sm:$0xff] }
 0x273   :  { %2050 = vmatmul.bf16.gmra.mxu1 %v6880_v17  ;;  %2148 = vmatmul.bf16.gmra.mxu3 %v6880_v17  ;;  %v6232_v26 = vld [vmem:[#allocation14 + $0xe0] sm:$0xff] }
 0x274   :  { %v7081_v31 = vadd.f32 %v7026_v46, %v1856_v57  ;;  %4405 = vmatpush.bf16.msrb.mxu0 %v6208_v15  ;;  %4552 = vmatpush.bf16.msrb.mxu3 %v6232_v26 }
 0x275   :  { %v1904_v36 = vpop.f32.mrf.mxu2  ;;  %4504 = vmatpush.bf16.msrb.mxu2 %v6223_v55 }
 0x276   :  { %v1905_v6 = vadd.f32 %v1904_v36, %v6749_v13  ;;  %v1953_v24 = vpop.f32.mrf.mxu3  ;;  %v7413_v36 = vld [vmem:[#allocation26_spill] sm:$0xff] }
 0x277   :  { %v1808_v27 = vpop.f32.mrf.mxu0 }
 0x278   :  { %v1954_v38 = vadd.f32 %v1953_v24, %v1905_v6  ;;  %v1809_v30 = vadd.f32 %v1808_v27, %v6751_v45  ;;  %v1857_v12 = vpop.f32.mrf.mxu1  ;;  %v7414_v27 = vld [vmem:[#allocation27_spill] sm:$0xff] }
 0x27a   :  { %v1858_v54 = vadd.f32 %v1857_v12, %v1809_v30  ;;  %v7091_v12 = vadd.f32 %v7036_v2, %v1954_v38 }
 0x27c   :  { %v7084_v17 = vadd.f32 %v7026_v46, %v1858_v54 }
 0x27d   :  { %v1906_v13 = vpop.f32.mrf.mxu2 }
 0x27e   :  { %v1907_v37 = vadd.f32 %v1906_v13, %v7413_v36  ;;  %v1955_v33 = vpop.f32.mrf.mxu3 }
 0x27f   :  { %v1811_v6 = vpop.f32.mrf.mxu0 }
 0x280   :  { %v1956_v24 = vadd.f32 %v1955_v33, %v1907_v37  ;;  %v1812_v30 = vadd.f32 %v1811_v6, %v7414_v27  ;;  %v1860_v57 = vpop.f32.mrf.mxu1  ;;  %v6215_v33 = vld [vmem:[#allocation14 + $0x58] sm:$0xff] }
 0x281   :  { %4455 = vmatpush.bf16.msrb.mxu1 %v6215_v33  ;;  %v6222_v33 = vld [vmem:[#allocation14 + $0x90] sm:$0xff] }
 0x282   :  { %v7094_v54 = vadd.f32 %v7036_v2, %v1956_v24  ;;  %v1861_v15 = vadd.f32 %v1860_v57, %v1812_v30  ;;  %2006 = vmatmul.bf16.gmra.mxu0 %v6902_v41  ;;  %2104 = vmatmul.bf16.gmra.mxu2 %v6902_v41  ;;  %v6207_v41 = vld [vmem:[#allocation14 + $0x18] sm:$0xff] }
 0x283   :  { %2055 = vmatmul.bf16.gmra.mxu1 %v6904_v43  ;;  %2153 = vmatmul.bf16.gmra.mxu3 %v6904_v43  ;;  %v6231_v30 = vld [vmem:[#allocation14 + $0xd8] sm:$0xff] }
 0x284   :  { %v7105_v57 = vadd.f32 %v7026_v46, %v1861_v15  ;;  %4406 = vmatpush.bf16.msrb.mxu0 %v6207_v41  ;;  %4553 = vmatpush.bf16.msrb.mxu3 %v6231_v30 }
 0x285   :  { %v1909_v26 = vpop.f32.mrf.mxu2  ;;  %4505 = vmatpush.bf16.msrb.mxu2 %v6222_v33 }
 0x286   :  { %v1910_v38 = vadd.f32 %v1909_v26, %v6761_v4  ;;  %v1958_v13 = vpop.f32.mrf.mxu3  ;;  %v7415_v26 = vld [vmem:[#allocation28_spill] sm:$0xff] }
 0x287   :  { %v1813_v36 = vpop.f32.mrf.mxu0 }
 0x288   :  { %v1959_v37 = vadd.f32 %v1958_v13, %v1910_v38  ;;  %v1814_v6 = vadd.f32 %v1813_v36, %v6763_v62  ;;  %v1862_v24 = vpop.f32.mrf.mxu1  ;;  %v7416_v36 = vld [vmem:[#allocation29_spill] sm:$0xff] }
 0x28a   :  { %v1863_v27 = vadd.f32 %v1862_v24, %v1814_v6  ;;  %v7115_v24 = vadd.f32 %v7036_v2, %v1959_v37 }
 0x28c   :  { %v7108_v43 = vadd.f32 %v7026_v46, %v1863_v27 }
 0x28d   :  { %v1911_v4 = vpop.f32.mrf.mxu2 }
 0x28e   :  { %v1912_v55 = vadd.f32 %v1911_v4, %v7415_v26  ;;  %v1960_v45 = vpop.f32.mrf.mxu3 }
 0x28f   :  { %v1816_v38 = vpop.f32.mrf.mxu0 }
 0x290   :  { %v1961_v13 = vadd.f32 %v1960_v45, %v1912_v55  ;;  %v1817_v6 = vadd.f32 %v1816_v38, %v7416_v36  ;;  %v1865_v15 = vpop.f32.mrf.mxu1  ;;  %v6214_v45 = vld [vmem:[#allocation14 + $0x50] sm:$0xff] }
 0x291   :  { %4456 = vmatpush.bf16.msrb.mxu1 %v6214_v45  ;;  %v6221_v45 = vld [vmem:[#allocation14 + $0x88] sm:$0xff] }
 0x292   :  { %v7118_v27 = vadd.f32 %v7036_v2, %v1961_v13  ;;  %v1866_v41 = vadd.f32 %v1865_v15, %v1817_v6  ;;  %2011 = vmatmul.bf16.gmra.mxu0 %v6926_v5  ;;  %2109 = vmatmul.bf16.gmra.mxu2 %v6926_v5  ;;  %v6206_v5 = vld [vmem:[#allocation14 + $0x10] sm:$0xff] }
 0x293   :  { %2060 = vmatmul.bf16.gmra.mxu1 %v6928_v7  ;;  %2158 = vmatmul.bf16.gmra.mxu3 %v6928_v7  ;;  %v6230_v6 = vld [vmem:[#allocation14 + $0xd0] sm:$0xff] }
 0x294   :  { %v7129_v15 = vadd.f32 %v7026_v46, %v1866_v41  ;;  %4407 = vmatpush.bf16.msrb.mxu0 %v6206_v5  ;;  %4554 = vmatpush.bf16.msrb.mxu3 %v6230_v6 }
 0x295   :  { %v1914_v30 = vpop.f32.mrf.mxu2  ;;  %4506 = vmatpush.bf16.msrb.mxu2 %v6221_v45  ;;  %v7419_v45 = vld [vmem:[#allocation32_spill] sm:$0xff] }
 0x296   :  { %v1915_v37 = vadd.f32 %v1914_v30, %v6773_v28  ;;  %v1963_v4 = vpop.f32.mrf.mxu3  ;;  %v7417_v30 = vld [vmem:[#allocation30_spill] sm:$0xff] }
 0x297   :  { %v1818_v26 = vpop.f32.mrf.mxu0 }
 0x298   :  { %v1964_v55 = vadd.f32 %v1963_v4, %v1915_v37  ;;  %v1819_v38 = vadd.f32 %v1818_v26, %v6775_v50  ;;  %v1867_v13 = vpop.f32.mrf.mxu1  ;;  %v7418_v26 = vld [vmem:[#allocation31_spill] sm:$0xff] }
 0x29a   :  { %v1868_v36 = vadd.f32 %v1867_v13, %v1819_v38  ;;  %v7139_v13 = vadd.f32 %v7036_v2, %v1964_v55 }
 0x29c   :  { %v7132_v7 = vadd.f32 %v7026_v46, %v1868_v36 }
 0x29d   :  { %v1916_v28 = vpop.f32.mrf.mxu2 }
 0x29e   :  { %v1917_v33 = vadd.f32 %v1916_v28, %v7417_v30  ;;  %v1965_v62 = vpop.f32.mrf.mxu3 }
 0x29f   :  { %v1821_v37 = vpop.f32.mrf.mxu0 }
 0x2a0   :  { %v1966_v4 = vadd.f32 %v1965_v62, %v1917_v33  ;;  %v1822_v38 = vadd.f32 %v1821_v37, %v7418_v26  ;;  %v1870_v41 = vpop.f32.mrf.mxu1  ;;  %v7420_v62 = vld [vmem:[#allocation33_spill] sm:$0xff] }
 0x2a2   :  { %v7142_v36 = vadd.f32 %v7036_v2, %v1966_v4  ;;  %v1871_v5 = vadd.f32 %v1870_v41, %v1822_v38  ;;  %2016 = vmatmul.bf16.gmra.mxu0 %v6950_v39  ;;  %2114 = vmatmul.bf16.gmra.mxu2 %v6950_v39  ;;  %v6205_v39 = vld [vmem:[#allocation14 + $0x8] sm:$0xff] }
 0x2a3   :  { %2065 = vmatmul.bf16.gmra.mxu1 %v6952_v42  ;;  %2163 = vmatmul.bf16.gmra.mxu3 %v6952_v42  ;;  %v6229_v38 = vld [vmem:[#allocation14 + $0xc8] sm:$0xff] }
 0x2a4   :  { %v6213_v41 = vld [vmem:[#allocation14 + $0x48] sm:$0xff]  ;;  %v7153_v42 = vadd.f32 %v7026_v46, %v1871_v5  ;;  %4408 = vmatpush.bf16.msrb.mxu0 %v6205_v39  ;;  %4555 = vmatpush.bf16.msrb.mxu3 %v6229_v38 }
 0x2a5   :  { %v1919_v6 = vpop.f32.mrf.mxu2  ;;  %4457 = vmatpush.bf16.msrb.mxu1 %v6213_v41  ;;  %v6220_v41 = vld [vmem:[#allocation14 + $0x80] sm:$0xff] }
 0x2a6   :  { %v1920_v55 = vadd.f32 %v1919_v6, %v6785_v44  ;;  %v1968_v28 = vpop.f32.mrf.mxu3  ;;  %4507 = vmatpush.bf16.msrb.mxu2 %v6220_v41  ;;  %v7425_v41 = vld [vmem:[#allocation38_spill] sm:$0xff] }
 0x2a7   :  { %v1823_v30 = vpop.f32.mrf.mxu0 }
 0x2a8   :  { %v1969_v33 = vadd.f32 %v1968_v28, %v1920_v55  ;;  %v1824_v37 = vadd.f32 %v1823_v30, %v6787_v18  ;;  %v1872_v4 = vpop.f32.mrf.mxu1  ;;  %v6204_v28 = vld [vmem:[#allocation14] sm:$0xff] }
 0x2a9   :  { %v6212_v18 = vld [vmem:[#allocation14 + $0x40] sm:$0xff]  ;;  %4409 = vmatpush.bf16.msrb.mxu0 %v6204_v28 }
 0x2aa   :  { %v1873_v26 = vadd.f32 %v1872_v4, %v1824_v37  ;;  %4458 = vmatpush.bf16.msrb.mxu1 %v6212_v18 }
 0x2ac   :  { %v7156_v50 = vadd.f32 %v7026_v46, %v1873_v26  ;;  %v7163_v26 = vadd.f32 %v7036_v2, %v1969_v33 }
 0x2ad   :  { %v1921_v44 = vpop.f32.mrf.mxu2 }
 0x2ae   :  { %v1922_v6 = vadd.f32 %v1921_v44, %v7419_v45  ;;  %v1970_v55 = vpop.f32.mrf.mxu3 }
 0x2af   :  { %v1826_v37 = vpop.f32.mrf.mxu0 }
 0x2b0   :  { %v1971_v4 = vadd.f32 %v1970_v55, %v1922_v6  ;;  %v1827_v5 = vadd.f32 %v1826_v37, %v7420_v62  ;;  %v1875_v49 = vpop.f32.mrf.mxu1 }
 0x2b2   :  { %v7166_v39 = vadd.f32 %v7036_v2, %v1971_v4  ;;  %v1876_v38 = vadd.f32 %v1875_v49, %v1827_v5  ;;  %2021 = vmatmul.bf16.gmra.mxu0 %v6974_v11  ;;  %2119 = vmatmul.bf16.gmra.mxu2 %v6974_v11  ;;  %v6228_v11 = vld [vmem:[#allocation14 + $0xc0] sm:$0xff]  ;;  %v7421_v5 = vld [vmem:[#allocation34_spill] sm:$0xff] }
 0x2b3   :  { %2070 = vmatmul.bf16.gmra.mxu1 %v6976_v20  ;;  %2168 = vmatmul.bf16.gmra.mxu3 %v6976_v20 }
 0x2b4   :  { %v7177_v37 = vadd.f32 %v7026_v46, %v1876_v38  ;;  %4556 = vmatpush.bf16.msrb.mxu3 %v6228_v11  ;;  %v7423_v11 = vld [vmem:[#allocation36_spill] sm:$0xff] }
 0x2b5   :  { %v1924_v44 = vpop.f32.mrf.mxu2 }
 0x2b6   :  { %v1925_v33 = vadd.f32 %v1924_v44, %v6797_v35  ;;  %v1973_v45 = vpop.f32.mrf.mxu3 }
 0x2b7   :  { %v1828_v6 = vpop.f32.mrf.mxu0 }
 0x2b8   :  { %v1974_v55 = vadd.f32 %v1973_v45, %v1925_v33  ;;  %v1829_v49 = vadd.f32 %v1828_v6, %v6799_v53  ;;  %v1877_v28 = vpop.f32.mrf.mxu1  ;;  %v7422_v53 = vld [vmem:[#allocation35_spill] sm:$0xff] }
 0x2ba   :  { %v1878_v18 = vadd.f32 %v1877_v28, %v1829_v49  ;;  %v7187_v49 = vadd.f32 %v7036_v2, %v1974_v55 }
 0x2bc   :  { %v7180_v20 = vadd.f32 %v7026_v46, %v1878_v18 }
 0x2bd   :  { %v1926_v4 = vpop.f32.mrf.mxu2 }
 0x2be   :  { %v1927_v62 = vadd.f32 %v1926_v4, %v7421_v5  ;;  %v1975_v35 = vpop.f32.mrf.mxu3 }
 0x2bf   :  { %v1831_v44 = vpop.f32.mrf.mxu0 }
 0x2c0   :  { %v1976_v33 = vadd.f32 %v1975_v35, %v1927_v62  ;;  %v1832_v45 = vadd.f32 %v1831_v44, %v7422_v53  ;;  %v1880_v6 = vpop.f32.mrf.mxu1  ;;  %v7424_v44 = vld [vmem:[#allocation37_spill] sm:$0xff] }
 0x2c2   :  { %v7190_v38 = vadd.f32 %v7036_v2, %v1976_v33  ;;  %v1881_v28 = vadd.f32 %v1880_v6, %v1832_v45  ;;  %2026 = vmatmul.bf16.gmra.mxu0 %v6998_v19  ;;  %2124 = vmatmul.bf16.gmra.mxu2 %v6998_v19 }
 0x2c3   :  { %2075 = vmatmul.bf16.gmra.mxu1 %v7000_v48  ;;  %2173 = vmatmul.bf16.gmra.mxu3 %v7000_v48 }
 0x2c4   :  { %v7201_v6 = vadd.f32 %v7026_v46, %v1881_v28  ;;  %v7428_v28 = vld [vmem:[#allocation39_spill] sm:$0xff] }
 0x2c5   :  { %v1929_v18 = vpop.f32.mrf.mxu2 }
 0x2c6   :  { %v1930_v4 = vadd.f32 %v1929_v18, %v7423_v11  ;;  %v1978_v55 = vpop.f32.mrf.mxu3 }
 0x2c7   :  { %v1833_v5 = vpop.f32.mrf.mxu0 }
 0x2c8   :  { %v1979_v35 = vadd.f32 %v1978_v55, %v1930_v4  ;;  %v1834_v33 = vadd.f32 %v1833_v5, %v7424_v44  ;;  %v1882_v53 = vpop.f32.mrf.mxu1 }
 0x2ca   :  { %v1883_v45 = vadd.f32 %v1882_v53, %v1834_v33  ;;  %v7210_v55 = vadd.f32 %v7036_v2, %v1979_v35 }
 0x2cc   :  { %v7204_v19 = vadd.f32 %v7026_v46, %v1883_v45  ;;  %v7426_v46 = vpack.c.bf16 %v7033_v9, %v7030_v59 }
 0x2cd   :  { %v1931_v48 = vpop.f32.mrf.mxu2 }
 0x2ce   :  { %v1932_v30 = vadd.f32 %v1931_v48, %v7425_v41  ;;  %v1980_v62 = vpop.f32.mrf.mxu3  ;;  %v7427_v41 = vpack.c.bf16 %v7046_v40, %v7043_v1 }
 0x2cf   :  { %v1992_v11 = vpop.f32.mrf.mxu0 }
 0x2d0   :  { %v1981_v22 = vadd.f32 %v1980_v62, %v1932_v30  ;;  %v2041_v4 = vpop.f32.mrf.mxu1  ;;  %v1993_v44 = vadd.f32 %v1992_v11, %v7428_v28 }
 0x2d2   :  { %v7213_v5 = vadd.f32 %v7036_v2, %v1981_v22  ;;  %4410 = vmatmul.bf16.vlgmr.msrb.gmra.mxu0 %v7426_v46  ;;  %v2042_v53 = vadd.f32 %v2041_v4, %v1993_v44  ;;  %v7225_v22 = vperm.slane %v7022_v16, 2  ;;  %v7232_v46 = vperm.slane %v7022_v16, 3  ;;  %v7429_v4 = vld [vmem:[#allocation40_spill] sm:$0xff] }
 0x2d3   :  { %4459 = vmatmul.bf16.vlgmr.msrb.gmra.mxu1 %v7427_v41  ;;  %v7431_v16 = vpack.c.bf16 %v7070_v56, %v7067_v14 }
 0x2d4   :  { %v2191_v1 = vadd.f32 %v7225_v22, %v2042_v53  ;;  %v7432_v53 = vld [vmem:[#allocation41_spill] sm:$0xff] }
 0x2d5   :  { %v2090_v62 = vpop.f32.mrf.mxu2 }
 0x2d6   :  { %v2139_v33 = vpop.f32.mrf.mxu3  ;;  %v2091_v59 = vadd.f32 %v2090_v62, %v6840_v52 }
 0x2d7   :  { %v1994_v35 = vpop.f32.mrf.mxu0 }
 0x2d8   :  { %v1995_v2 = vadd.f32 %v1994_v35, %v6842_v60  ;;  %v2043_v9 = vpop.f32.mrf.mxu1  ;;  %v2140_v11 = vadd.f32 %v2139_v33, %v2091_v59  ;;  %v7430_v35 = vpack.c.bf16 %v7060_v21, %v7057_v61 }
 0x2da   :  { %v2044_v45 = vadd.f32 %v2043_v9, %v1995_v2  ;;  %v2192_v52 = vadd.f32 %v7232_v46, %v2140_v11 }
 0x2dc   :  { %v2195_v40 = vadd.f32 %v7225_v22, %v2044_v45 }
 0x2dd   :  { %v2092_v48 = vpop.f32.mrf.mxu2 }
 0x2de   :  { %v4112_v41 = vpack.c.bf16 %v2195_v40, %v2191_v1  ;;  %v2093_v28 = vadd.f32 %v2092_v48, %v7429_v4  ;;  %v2141_v44 = vpop.f32.mrf.mxu3 }
 0x2df   :  { %v1997_v30 = vpop.f32.mrf.mxu0 }
 0x2e0   :  { %v2142_v18 = vadd.f32 %v2141_v44, %v2093_v28  ;;  %v2046_v60 = vpop.f32.mrf.mxu1  ;;  %4508 = vmatmul.bf16.vlgmr.msrb.gmra.mxu2 %v4112_v41  ;;  %v1998_v2 = vadd.f32 %v1997_v30, %v7432_v53  ;;  %v7433_v41 = vld [vmem:[#allocation42_spill] sm:$0xff] }
 0x2e2   :  { %v2196_v62 = vadd.f32 %v7232_v46, %v2142_v18  ;;  %4415 = vmatmul.bf16.gmra.mxu0 %v7430_v35  ;;  %v2047_v1 = vadd.f32 %v2046_v60, %v1998_v2  ;;  %v7435_v35 = vpack.c.bf16 %v7094_v54, %v7091_v12 }
 0x2e3   :  { %4464 = vmatmul.bf16.gmra.mxu1 %v7431_v16  ;;  %v7436_v16 = vld [vmem:[#allocation43_spill] sm:$0xff] }
 0x2e4   :  { %v4113_v33 = vpack.c.bf16 %v2196_v62, %v2192_v52  ;;  %v2199_v61 = vadd.f32 %v7225_v22, %v2047_v1 }
 0x2e5   :  { %v2095_v9 = vpop.f32.mrf.mxu2 }
 0x2e6   :  { %v2144_v59 = vpop.f32.mrf.mxu3  ;;  %4557 = vmatmul.bf16.vlgmr.msrb.gmra.mxu3 %v4113_v33  ;;  %v2096_v18 = vadd.f32 %v2095_v9, %v6864_v3  ;;  %v7434_v3 = vpack.c.bf16 %v7084_v17, %v7081_v31 }
 0x2e7   :  { %v1999_v45 = vpop.f32.mrf.mxu0 }
 0x2e8   :  { %v2000_v40 = vadd.f32 %v1999_v45, %v6866_v10  ;;  %v2048_v48 = vpop.f32.mrf.mxu1  ;;  %v2145_v56 = vadd.f32 %v2144_v59, %v2096_v18 }
 0x2ea   :  { %v2049_v11 = vadd.f32 %v2048_v48, %v2000_v40  ;;  %v2200_v10 = vadd.f32 %v7232_v46, %v2145_v56 }
 0x2ec   :  { %v2203_v21 = vadd.f32 %v7225_v22, %v2049_v11  ;;  %v7437_v11 = vld [vmem:[#allocation44_spill] sm:$0xff] }
 0x2ed   :  { %v2097_v14 = vpop.f32.mrf.mxu2 }
 0x2ee   :  { %v2098_v4 = vadd.f32 %v2097_v14, %v7433_v41  ;;  %v2146_v30 = vpop.f32.mrf.mxu3  ;;  %v4116_v28 = vpack.c.bf16 %v2203_v21, %v2199_v61 }
 0x2ef   :  { %v2002_v44 = vpop.f32.mrf.mxu0 }
 0x2f0   :  { %v2147_v52 = vadd.f32 %v2146_v30, %v2098_v4  ;;  %v2051_v62 = vpop.f32.mrf.mxu1  ;;  %4513 = vmatmul.bf16.gmra.mxu2 %v4116_v28  ;;  %v2003_v33 = vadd.f32 %v2002_v44, %v7436_v16  ;;  %v7439_v28 = vpack.c.bf16 %v7118_v27, %v7115_v24  ;;  %v7440_v44 = vld [vmem:[#allocation45_spill] sm:$0xff] }
 0x2f2   :  { %v2204_v60 = vadd.f32 %v7232_v46, %v2147_v52  ;;  %4420 = vmatmul.bf16.gmra.mxu0 %v7434_v3  ;;  %v2052_v45 = vadd.f32 %v2051_v62, %v2003_v33 }
 0x2f3   :  { %4469 = vmatmul.bf16.gmra.mxu1 %v7435_v35 }
 0x2f4   :  { %v4117_v53 = vpack.c.bf16 %v2204_v60, %v2200_v10  ;;  %v2207_v31 = vadd.f32 %v7225_v22, %v2052_v45 }
 0x2f5   :  { %v2100_v2 = vpop.f32.mrf.mxu2 }
 0x2f6   :  { %v2149_v9 = vpop.f32.mrf.mxu3  ;;  %4562 = vmatmul.bf16.gmra.mxu3 %v4117_v53  ;;  %v2101_v48 = vadd.f32 %v2100_v2, %v6888_v32  ;;  %v7438_v32 = vpack.c.bf16 %v7108_v43, %v7105_v57 }
 0x2f7   :  { %v2004_v59 = vpop.f32.mrf.mxu0 }
 0x2f8   :  { %v2005_v1 = vadd.f32 %v2004_v59, %v6890_v23  ;;  %v2053_v40 = vpop.f32.mrf.mxu1  ;;  %v2150_v54 = vadd.f32 %v2149_v9, %v2101_v48  ;;  %v7441_v9 = vld [vmem:[#allocation46_spill] sm:$0xff] }
 0x2fa   :  { %v2054_v18 = vadd.f32 %v2053_v40, %v2005_v1  ;;  %v2208_v23 = vadd.f32 %v7232_v46, %v2150_v54 }
 0x2fc   :  { %v2211_v17 = vadd.f32 %v7225_v22, %v2054_v18 }
 0x2fd   :  { %v2102_v12 = vpop.f32.mrf.mxu2 }
 0x2fe   :  { %v2103_v61 = vadd.f32 %v2102_v12, %v7437_v11  ;;  %v2151_v21 = vpop.f32.mrf.mxu3  ;;  %v4120_v14 = vpack.c.bf16 %v2211_v17, %v2207_v31  ;;  %v7443_v17 = vpack.c.bf16 %v7142_v36, %v7139_v13  ;;  %v7444_v12 = vld [vmem:[#allocation47_spill] sm:$0xff] }
 0x2ff   :  { %v2007_v56 = vpop.f32.mrf.mxu0 }
 0x300   :  { %v2152_v41 = vadd.f32 %v2151_v21, %v2103_v61  ;;  %v2056_v4 = vpop.f32.mrf.mxu1  ;;  %4518 = vmatmul.bf16.gmra.mxu2 %v4120_v14  ;;  %v2008_v52 = vadd.f32 %v2007_v56, %v7440_v44 }
 0x302   :  { %v2212_v30 = vadd.f32 %v7232_v46, %v2152_v41  ;;  %4425 = vmatmul.bf16.gmra.mxu0 %v7438_v32  ;;  %v2057_v35 = vadd.f32 %v2056_v4, %v2008_v52  ;;  %v7445_v32 = vld [vmem:[#allocation48_spill] sm:$0xff] }
 0x303   :  { %4474 = vmatmul.bf16.gmra.mxu1 %v7439_v28 }
 0x304   :  { %v4121_v62 = vpack.c.bf16 %v2212_v30, %v2208_v23  ;;  %v2215_v57 = vadd.f32 %v7225_v22, %v2057_v35  ;;  %v7447_v35 = vpack.c.bf16 %v7166_v39, %v7163_v26 }
 0x305   :  { %v2105_v10 = vpop.f32.mrf.mxu2 }
 0x306   :  { %v2154_v60 = vpop.f32.mrf.mxu3  ;;  %4567 = vmatmul.bf16.gmra.mxu3 %v4121_v62  ;;  %v2106_v53 = vadd.f32 %v2105_v10, %v6912_v58  ;;  %v7442_v58 = vpack.c.bf16 %v7132_v7, %v7129_v15 }
 0x307   :  { %v2009_v3 = vpop.f32.mrf.mxu0 }
 0x308   :  { %v2010_v16 = vadd.f32 %v2009_v3, %v6914_v8  ;;  %v2058_v33 = vpop.f32.mrf.mxu1  ;;  %v2155_v27 = vadd.f32 %v2154_v60, %v2106_v53 }
 0x30a   :  { %v2059_v2 = vadd.f32 %v2058_v33, %v2010_v16  ;;  %v2216_v8 = vadd.f32 %v7232_v46, %v2155_v27  ;;  %v7448_v16 = vld [vmem:[#allocation49_spill] sm:$0xff] }
 0x30c   :  { %v2219_v43 = vadd.f32 %v7225_v22, %v2059_v2 }
 0x30d   :  { %v2107_v24 = vpop.f32.mrf.mxu2 }
 0x30e   :  { %v2108_v59 = vadd.f32 %v2107_v24, %v7441_v9  ;;  %v2156_v45 = vpop.f32.mrf.mxu3  ;;  %v4124_v1 = vpack.c.bf16 %v2219_v43, %v2215_v57 }
 0x30f   :  { %v2012_v40 = vpop.f32.mrf.mxu0 }
 0x310   :  { %v2157_v48 = vadd.f32 %v2156_v45, %v2108_v59  ;;  %v2061_v18 = vpop.f32.mrf.mxu1  ;;  %4523 = vmatmul.bf16.gmra.mxu2 %v4124_v1  ;;  %v2013_v54 = vadd.f32 %v2012_v40, %v7444_v12 }
 0x312   :  { %v2220_v31 = vadd.f32 %v7232_v46, %v2157_v48  ;;  %4430 = vmatmul.bf16.gmra.mxu0 %v7442_v58  ;;  %v2062_v56 = vadd.f32 %v2061_v18, %v2013_v54 }
 0x313   :  { %4479 = vmatmul.bf16.gmra.mxu1 %v7443_v17  ;;  %v7450_v17 = vpack.c.bf16 %v7190_v38, %v7187_v49 }
 0x314   :  { %v4125_v11 = vpack.c.bf16 %v2220_v31, %v2216_v8  ;;  %v2223_v15 = vadd.f32 %v7225_v22, %v2062_v56 }
 0x315   :  { %v2110_v61 = vpop.f32.mrf.mxu2 }
 0x316   :  { %v2159_v21 = vpop.f32.mrf.mxu3  ;;  %4572 = vmatmul.bf16.gmra.mxu3 %v4125_v11  ;;  %v2111_v23 = vadd.f32 %v2110_v61, %v6936_v29  ;;  %v7446_v29 = vpack.c.bf16 %v7156_v50, %v7153_v42 }
 0x317   :  { %v2014_v14 = vpop.f32.mrf.mxu0 }
 0x318   :  { %v2015_v41 = vadd.f32 %v2014_v14, %v6938_v25  ;;  %v2063_v4 = vpop.f32.mrf.mxu1  ;;  %v2160_v36 = vadd.f32 %v2159_v21, %v2111_v23 }
 0x31a   :  { %v2064_v30 = vadd.f32 %v2063_v4, %v2015_v41  ;;  %v2224_v25 = vadd.f32 %v7232_v46, %v2160_v36  ;;  %v7451_v41 = vld [vmem:[#allocation50_spill] sm:$0xff] }
 0x31c   :  { %v2227_v7 = vadd.f32 %v7225_v22, %v2064_v30  ;;  %v7452_v30 = vld [vmem:[#allocation51_spill] sm:$0xff] }
 0x31d   :  { %v2112_v13 = vpop.f32.mrf.mxu2 }
 0x31e   :  { %v2113_v28 = vadd.f32 %v2112_v13, %v7445_v32  ;;  %v2161_v44 = vpop.f32.mrf.mxu3  ;;  %v4128_v52 = vpack.c.bf16 %v2227_v7, %v2223_v15 }
 0x31f   :  { %v2017_v62 = vpop.f32.mrf.mxu0 }
 0x320   :  { %v2162_v10 = vadd.f32 %v2161_v44, %v2113_v28  ;;  %v2066_v60 = vpop.f32.mrf.mxu1  ;;  %4528 = vmatmul.bf16.gmra.mxu2 %v4128_v52  ;;  %v2018_v33 = vadd.f32 %v2017_v62, %v7448_v16  ;;  %v7453_v44 = vpack.c.bf16 %v7204_v19, %v7201_v6  ;;  %v7454_v52 = vpack.c.bf16 %v7213_v5, %v7210_v55  ;;  %v7455_v62 = vld [vmem:[#allocation52_spill] sm:$0xff]  ;;  %v7456_v16 = vld [vmem:[#allocation54_spill] sm:$0xff] }
 0x322   :  { %v2228_v3 = vadd.f32 %v7232_v46, %v2162_v10  ;;  %4435 = vmatmul.bf16.gmra.mxu0 %v7446_v29  ;;  %v2067_v24 = vadd.f32 %v2066_v60, %v2018_v33 }
 0x323   :  { %4484 = vmatmul.bf16.gmra.mxu1 %v7447_v35 }
 0x324   :  { %v4129_v53 = vpack.c.bf16 %v2228_v3, %v2224_v25  ;;  %v2231_v50 = vadd.f32 %v7225_v22, %v2067_v24  ;;  %v7458_v24 = vld [vmem:[#allocation55_spill] sm:$0xff] }
 0x325   :  { %v2115_v2 = vpop.f32.mrf.mxu2 }
 0x326   :  { %v2164_v57 = vpop.f32.mrf.mxu3  ;;  %4577 = vmatmul.bf16.gmra.mxu3 %v4129_v53  ;;  %v2116_v59 = vadd.f32 %v2115_v2, %v6960_v63  ;;  %v7449_v63 = vpack.c.bf16 %v7180_v20, %v7177_v37  ;;  %v7457_v2 = vld [vmem:[#allocation53_spill] sm:$0xff] }
 0x327   :  { %v2019_v43 = vpop.f32.mrf.mxu0 }
 0x328   :  { %v2020_v27 = vadd.f32 %v2019_v43, %v6962_v51  ;;  %v2068_v9 = vpop.f32.mrf.mxu1  ;;  %v2165_v39 = vadd.f32 %v2164_v57, %v2116_v59 }
 0x32a   :  { %v2069_v45 = vadd.f32 %v2068_v9, %v2020_v27  ;;  %v2232_v51 = vadd.f32 %v7232_v46, %v2165_v39 }
 0x32c   :  { %v2235_v42 = vadd.f32 %v7225_v22, %v2069_v45 }
 0x32d   :  { %v2117_v26 = vpop.f32.mrf.mxu2 }
 0x32e   :  { %v2118_v1 = vadd.f32 %v2117_v26, %v6972_v0  ;;  %v2166_v40 = vpop.f32.mrf.mxu3  ;;  %v4132_v48 = vpack.c.bf16 %v2235_v42, %v2231_v50 }
 0x32f   :  { %v2022_v18 = vpop.f32.mrf.mxu0 }
 0x330   :  { %v2167_v8 = vadd.f32 %v2166_v40, %v2118_v1  ;;  %v2071_v31 = vpop.f32.mrf.mxu1  ;;  %4533 = vmatmul.bf16.gmra.mxu2 %v4132_v48  ;;  %v2023_v0 = vadd.f32 %v2022_v18, %v6978_v47 }
 0x332   :  { %v2236_v58 = vadd.f32 %v7232_v46, %v2167_v8  ;;  %4440 = vmatmul.bf16.gmra.mxu0 %v7449_v63  ;;  %v2072_v21 = vadd.f32 %v2071_v31, %v2023_v0 }
 0x333   :  { %4489 = vmatmul.bf16.gmra.mxu1 %v7450_v17 }
 0x334   :  { %v4133_v12 = vpack.c.bf16 %v2236_v58, %v2232_v51  ;;  %v2239_v37 = vadd.f32 %v7225_v22, %v2072_v21 }
 0x335   :  { %v2120_v54 = vpop.f32.mrf.mxu2 }
 0x336   :  { %v2169_v11 = vpop.f32.mrf.mxu3  ;;  %4582 = vmatmul.bf16.gmra.mxu3 %v4133_v12  ;;  %v2121_v4 = vadd.f32 %v2120_v54, %v7451_v41 }
 0x337   :  { %v2024_v61 = vpop.f32.mrf.mxu0 }
 0x338   :  { %v2025_v14 = vadd.f32 %v2024_v61, %v6986_v34  ;;  %v2073_v56 = vpop.f32.mrf.mxu1  ;;  %v2170_v38 = vadd.f32 %v2169_v11, %v2121_v4 }
 0x33a   :  { %v2074_v23 = vadd.f32 %v2073_v56, %v2025_v14  ;;  %v2240_v34 = vadd.f32 %v7232_v46, %v2170_v38 }
 0x33c   :  { %v2243_v20 = vadd.f32 %v7225_v22, %v2074_v23 }
 0x33d   :  { %v2122_v49 = vpop.f32.mrf.mxu2 }
 0x33e   :  { %v2123_v47 = vadd.f32 %v2122_v49, %v7452_v30  ;;  %v2171_v15 = vpop.f32.mrf.mxu3  ;;  %v4136_v7 = vpack.c.bf16 %v2243_v20, %v2239_v37 }
 0x33f   :  { %v2027_v13 = vpop.f32.mrf.mxu0 }
 0x340   :  { %v2172_v36 = vadd.f32 %v2171_v15, %v2123_v47  ;;  %v2076_v32 = vpop.f32.mrf.mxu1  ;;  %4538 = vmatmul.bf16.gmra.mxu2 %v4136_v7  ;;  %v2028_v10 = vadd.f32 %v2027_v13, %v7455_v62 }
 0x342   :  { %v2244_v28 = vadd.f32 %v7232_v46, %v2172_v36  ;;  %4445 = vmatmul.bf16.gmra.mxu0 %v7453_v44  ;;  %v2077_v35 = vadd.f32 %v2076_v32, %v2028_v10 }
 0x343   :  { %4494 = vmatmul.bf16.gmra.mxu1 %v7454_v52 }
 0x344   :  { %v4137_v60 = vpack.c.bf16 %v2244_v28, %v2240_v34  ;;  %v2247_v6 = vadd.f32 %v7225_v22, %v2077_v35 }
 0x345   :  { %v2125_v25 = vpop.f32.mrf.mxu2 }
 0x346   :  { %v2174_v3 = vpop.f32.mrf.mxu3  ;;  %4587 = vmatmul.bf16.gmra.mxu3 %v4137_v60  ;;  %v2126_v57 = vadd.f32 %v2125_v25, %v7457_v2 }
 0x347   :  { %v2029_v29 = vpop.f32.mrf.mxu0 }
 0x348   :  { %v2030_v33 = vadd.f32 %v2029_v29, %v7456_v16  ;;  %v2078_v53 = vpop.f32.mrf.mxu1  ;;  %v2175_v5 = vadd.f32 %v2174_v3, %v2126_v57 }
 0x34a   :  { %v2079_v43 = vadd.f32 %v2078_v53, %v2030_v33  ;;  %v2248_v26 = vadd.f32 %v7232_v46, %v2175_v5 }
 0x34c   :  { %v2251_v19 = vadd.f32 %v7225_v22, %v2079_v43  ;;  %v7338_v22 = vld [vmem:[%s7371_s9] ss:$0 sm:$0xff]  ;;  %s6466_s9 = smov [#allocation15]  }
 0x34d   :  { %v2127_v55 = vpop.f32.mrf.mxu2  ;;  %s4618_s11 = sshll.u32 %s6466_s9, 4  ;;  %s4619_s11 = int_to_ptr.vmem [resolvable:$true] %s4618_s11 }
 0x34e   :  { %v2128_v27 = vadd.f32 %v2127_v55, %v7458_v24  ;;  %v4140_v9 = vpack.c.bf16 %v2251_v19, %v2247_v6  ;;  %v2176_v59 = vpop.f32.mrf.mxu3 }
 0x34f   :  { %v4411_v45 = vpop.f32.mrf.mxu0 }
 0x350   :  { %v2177_v50 = vadd.f32 %v2176_v59, %v2128_v27  ;;  %v4460_v42 = vpop.f32.mrf.mxu1  ;;  %4543 = vmatmul.bf16.gmra.mxu2 %v4140_v9  ;;  %v4412_v31 = vadd.f32 %v7338_v22, %v4411_v45 }
 0x352   :  { %v2252_v39 = vadd.f32 %v7232_v46, %v2177_v50  ;;  %v4461_v58 = vadd.f32 %v4460_v42, %v4412_v31 }
 0x354   :  { %v4141_v1 = vpack.c.bf16 %v2252_v39, %v2248_v26 }
 0x356   :  { %4592 = vmatmul.bf16.gmra.mxu3 %v4141_v1 }
 0x357   :  { %v4413_v40 = vpop.f32.mrf.mxu0 }
 0x358   :  { %v4462_v48 = vpop.f32.mrf.mxu1  ;;  %v4414_v46 = vadd.f32 %v7338_v22, %v4413_v40 }
 0x35a   :  { %v4463_v61 = vadd.f32 %v4462_v48, %v4414_v46 }
 0x35f   :  { %v4416_v18 = vpop.f32.mrf.mxu0 }
 0x360   :  { %v4465_v8 = vpop.f32.mrf.mxu1  ;;  %v4417_v4 = vadd.f32 %v7338_v22, %v4416_v18 }
 0x362   :  { %v4466_v20 = vadd.f32 %v4465_v8, %v4417_v4 }
 0x363   :  { %v4509_v51 = vpop.f32.mrf.mxu2 }
 0x364   :  { %v4510_v17 = vadd.f32 %v4509_v51, %v4461_v58 }
 0x367   :  { %v4418_v63 = vpop.f32.mrf.mxu0 }
 0x368   :  { %v4467_v0 = vpop.f32.mrf.mxu1  ;;  %v4419_v15 = vadd.f32 %v7338_v22, %v4418_v63 }
 0x369   :  { %v4558_v12 = vpop.f32.mrf.mxu3 }
 0x36a   :  { %v4559_v54 = vadd.f32 %v4558_v12, %v4510_v17  ;;  %v4468_v36 = vadd.f32 %v4467_v0, %v4419_v15 }
 0x36b   :  { %v4511_v11 = vpop.f32.mrf.mxu2 }
 0x36c   :  { %4598 = vst [vmem:[#allocation15] sm:$0xff] %v4559_v54  ;;  %v4512_v14 = vadd.f32 %v4511_v11, %v4463_v61 }
 0x36f   :  { %v4421_v21 = vpop.f32.mrf.mxu0 }
 0x370   :  { %v4470_v56 = vpop.f32.mrf.mxu1  ;;  %v4422_v44 = vadd.f32 %v7338_v22, %v4421_v21 }
 0x371   :  { %v4560_v41 = vpop.f32.mrf.mxu3 }
 0x372   :  { %v4561_v23 = vadd.f32 %v4560_v41, %v4512_v14  ;;  %v4471_v60 = vadd.f32 %v4470_v56, %v4422_v44 }
 0x373   :  { %v4514_v37 = vpop.f32.mrf.mxu2 }
 0x374   :  { %4599 = vst [vmem:[#allocation15 + $0x8] sm:$0xff] %v4561_v23  ;;  %v4515_v38 = vadd.f32 %v4514_v37, %v4466_v20 }
 0x377   :  { %v4423_v49 = vpop.f32.mrf.mxu0 }
 0x378   :  { %v4472_v30 = vpop.f32.mrf.mxu1  ;;  %v4424_v35 = vadd.f32 %v7338_v22, %v4423_v49 }
 0x379   :  { %v4563_v47 = vpop.f32.mrf.mxu3 }
 0x37a   :  { %v4564_v7 = vadd.f32 %v4563_v47, %v4515_v38  ;;  %v4473_v2 = vadd.f32 %v4472_v30, %v4424_v35 }
 0x37b   :  { %v4516_v13 = vpop.f32.mrf.mxu2 }
 0x37c   :  { %4600 = vst [vmem:[#allocation15 + $0x10] sm:$0xff] %v4564_v7  ;;  %v4517_v34 = vadd.f32 %v4516_v13, %v4468_v36 }
 0x37f   :  { %v4426_v32 = vpop.f32.mrf.mxu0 }
 0x380   :  { %v4475_v62 = vpop.f32.mrf.mxu1  ;;  %v4427_v19 = vadd.f32 %v7338_v22, %v4426_v32 }
 0x381   :  { %v4565_v28 = vpop.f32.mrf.mxu3 }
 0x382   :  { %v4566_v52 = vadd.f32 %v4565_v28, %v4517_v34  ;;  %v4476_v24 = vadd.f32 %v4475_v62, %v4427_v19 }
 0x383   :  { %v4519_v10 = vpop.f32.mrf.mxu2 }
 0x384   :  { %4601 = vst [vmem:[#allocation15 + $0x18] sm:$0xff] %v4566_v52  ;;  %v4520_v3 = vadd.f32 %v4519_v10, %v4471_v60 }
 0x387   :  { %v4428_v25 = vpop.f32.mrf.mxu0 }
 0x388   :  { %v4477_v53 = vpop.f32.mrf.mxu1  ;;  %v4429_v45 = vadd.f32 %v7338_v22, %v4428_v25 }
 0x389   :  { %v4568_v29 = vpop.f32.mrf.mxu3 }
 0x38a   :  { %v4569_v16 = vadd.f32 %v4568_v29, %v4520_v3  ;;  %v4478_v39 = vadd.f32 %v4477_v53, %v4429_v45 }
 0x38b   :  { %v4521_v33 = vpop.f32.mrf.mxu2 }
 0x38c   :  { %4602 = vst [vmem:[#allocation15 + $0x20] sm:$0xff] %v4569_v16  ;;  %v4522_v57 = vadd.f32 %v4521_v33, %v4473_v2 }
 0x38f   :  { %v4431_v43 = vpop.f32.mrf.mxu0 }
 0x390   :  { %v4480_v27 = vpop.f32.mrf.mxu1  ;;  %v4432_v18 = vadd.f32 %v7338_v22, %v4431_v43 }
 0x391   :  { %v4570_v6 = vpop.f32.mrf.mxu3 }
 0x392   :  { %v4571_v55 = vadd.f32 %v4570_v6, %v4522_v57  ;;  %v4481_v58 = vadd.f32 %v4480_v27, %v4432_v18 }
 0x393   :  { %v4524_v5 = vpop.f32.mrf.mxu2 }
 0x394   :  { %4603 = vst [vmem:[#allocation15 + $0x28] sm:$0xff] %v4571_v55  ;;  %v4525_v9 = vadd.f32 %v4524_v5, %v4476_v24 }
 0x397   :  { %v4433_v42 = vpop.f32.mrf.mxu0 }
 0x398   :  { %v4482_v40 = vpop.f32.mrf.mxu1  ;;  %v4434_v0 = vadd.f32 %v7338_v22, %v4433_v42 }
 0x399   :  { %v4573_v59 = vpop.f32.mrf.mxu3 }
 0x39a   :  { %v4574_v50 = vadd.f32 %v4573_v59, %v4525_v9  ;;  %v4483_v11 = vadd.f32 %v4482_v40, %v4434_v0 }
 0x39b   :  { %v4526_v26 = vpop.f32.mrf.mxu2 }
 0x39c   :  { %4604 = vst [vmem:[#allocation15 + $0x30] sm:$0xff] %v4574_v50  ;;  %v4527_v1 = vadd.f32 %v4526_v26, %v4478_v39 }
 0x39f   :  { %v4436_v51 = vpop.f32.mrf.mxu0 }
 0x3a0   :  { %v4485_v46 = vpop.f32.mrf.mxu1  ;;  %v4437_v56 = vadd.f32 %v7338_v22, %v4436_v51 }
 0x3a1   :  { %v4575_v48 = vpop.f32.mrf.mxu3 }
 0x3a2   :  { %v4576_v8 = vadd.f32 %v4575_v48, %v4527_v1  ;;  %v4486_v37 = vadd.f32 %v4485_v46, %v4437_v56 }
 0x3a3   :  { %v4529_v31 = vpop.f32.mrf.mxu2 }
 0x3a4   :  { %4605 = vst [vmem:[#allocation15 + $0x38] sm:$0xff] %v4576_v8  ;;  %v4530_v63 = vadd.f32 %v4529_v31, %v4481_v58 }
 0x3a7   :  { %v4438_v61 = vpop.f32.mrf.mxu0 }
 0x3a8   :  { %v4487_v23 = vpop.f32.mrf.mxu1  ;;  %v4439_v30 = vadd.f32 %v7338_v22, %v4438_v61 }
 0x3a9   :  { %v4578_v17 = vpop.f32.mrf.mxu3 }
 0x3aa   :  { %v4579_v12 = vadd.f32 %v4578_v17, %v4530_v63  ;;  %v4488_v7 = vadd.f32 %v4487_v23, %v4439_v30 }
 0x3ab   :  { %v4531_v54 = vpop.f32.mrf.mxu2 }
 0x3ac   :  { %4606 = vst [vmem:[#allocation15 + $0x40] sm:$0xff] %v4579_v12  ;;  %v4532_v21 = vadd.f32 %v4531_v54, %v4483_v11 }
 0x3af   :  { %v4441_v49 = vpop.f32.mrf.mxu0 }
 0x3b0   :  { %v4490_v13 = vpop.f32.mrf.mxu1  ;;  %v4442_v34 = vadd.f32 %v7338_v22, %v4441_v49 }
 0x3b1   :  { %v4580_v14 = vpop.f32.mrf.mxu3 }
 0x3b2   :  { %v4581_v41 = vadd.f32 %v4580_v14, %v4532_v21  ;;  %v4491_v62 = vadd.f32 %v4490_v13, %v4442_v34 }
 0x3b3   :  { %v4534_v4 = vpop.f32.mrf.mxu2 }
 0x3b4   :  { %4607 = vst [vmem:[#allocation15 + $0x48] sm:$0xff] %v4581_v41  ;;  %v4535_v20 = vadd.f32 %v4534_v4, %v4486_v37 }
 0x3b7   :  { %v4443_v44 = vpop.f32.mrf.mxu0 }
 0x3b8   :  { %v4492_v60 = vpop.f32.mrf.mxu1  ;;  %v4444_v3 = vadd.f32 %v7338_v22, %v4443_v44 }
 0x3b9   :  { %v4583_v38 = vpop.f32.mrf.mxu3 }
 0x3ba   :  { %v4584_v47 = vadd.f32 %v4583_v38, %v4535_v20  ;;  %v4493_v33 = vadd.f32 %v4492_v60, %v4444_v3 }
 0x3bb   :  { %v4536_v15 = vpop.f32.mrf.mxu2 }
 0x3bc   :  { %4608 = vst [vmem:[#allocation15 + $0x50] sm:$0xff] %v4584_v47  ;;  %v4537_v36 = vadd.f32 %v4536_v15, %v4488_v7 }
 0x3bf   :  { %v4446_v16 = vpop.f32.mrf.mxu0 }
 0x3c0   :  { %v4447_v57 = vadd.f32 %v7338_v22, %v4446_v16  ;;  %v4495_v6 = vpop.f32.mrf.mxu1 }
 0x3c1   :  { %v4585_v32 = vpop.f32.mrf.mxu3 }
 0x3c2   :  { %v4586_v28 = vadd.f32 %v4585_v32, %v4537_v36  ;;  %v4496_v55 = vadd.f32 %v4495_v6, %v4447_v57 }
 0x3c3   :  { %v4539_v52 = vpop.f32.mrf.mxu2 }
 0x3c4   :  { %4609 = vst [vmem:[#allocation15 + $0x58] sm:$0xff] %v4586_v28  ;;  %v4540_v10 = vadd.f32 %v4539_v52, %v4491_v62 }
 0x3c7   :  { %v4448_v5 = vpop.f32.mrf.mxu0 }
 0x3c8   :  { %v4449_v9 = vadd.f32 %v7338_v22, %v4448_v5  ;;  %v4497_v45 = vpop.f32.mrf.mxu1 }
 0x3c9   :  { %v4588_v25 = vpop.f32.mrf.mxu3 }
 0x3ca   :  { %v4589_v29 = vadd.f32 %v4588_v25, %v4540_v10  ;;  %v4498_v42 = vadd.f32 %v4497_v45, %v4449_v9 }
 0x3cb   :  { %v4541_v35 = vpop.f32.mrf.mxu2 }
 0x3cc   :  { %4610 = vst [vmem:[#allocation15 + $0x60] sm:$0xff] %v4589_v29  ;;  %v4542_v53 = vadd.f32 %v4541_v35, %v4493_v33 }
 0x3d1   :  { %v4590_v2 = vpop.f32.mrf.mxu3 }
 0x3d2   :  { %v4591_v43 = vadd.f32 %v4590_v2, %v4542_v53 }
 0x3d3   :  { %v4544_v19 = vpop.f32.mrf.mxu2 }
 0x3d4   :  { %4611 = vst [vmem:[#allocation15 + $0x68] sm:$0xff] %v4591_v43  ;;  %v4545_v24 = vadd.f32 %v4544_v19, %v4496_v55 }
 0x3d9   :  { %v4593_v27 = vpop.f32.mrf.mxu3 }
 0x3da   :  { %v4594_v59 = vadd.f32 %v4593_v27, %v4545_v24 }
 0x3db   :  { %v4546_v50 = vpop.f32.mrf.mxu2 }
 0x3dc   :  { %4612 = vst [vmem:[#allocation15 + $0x70] sm:$0xff] %v4594_v59  ;;  %v4547_v26 = vadd.f32 %v4546_v50, %v4498_v42 }
 0x3e1   :  { %v4595_v39 = vpop.f32.mrf.mxu3 }
 0x3e2   :  { %v4596_v1 = vadd.f32 %v4595_v39, %v4547_v26 }
 0x3e4   :  { %4613 = vst [vmem:[#allocation15 + $0x78] sm:$0xff] %v4596_v1 }
 0x3e5   :  { %4626 = dma.vmem_to_hbm [thread:$0]  %s4619_s11, 2048, %s4621_s14, [#allocation5], %s6454_s21, %s6454_s21, %s6455_s22  }
 0x3e6   :  { %6451 = dma.done.wait [#allocation5], 2048  }
 0x3e7   :  { %6452 = vsyncadd [#allocation5], 4294965248 }
 0x3e8   :  { %4631 = vsyncpa [#allocation4], 1 }
 0x3e9   :  { %4632 = vsyncpa [#allocation7], 1 }
 0x3ea   :  { %4633 = vsyncpa [#allocation10], 1 }
 0x3eb   :  { %4634 = vsyncpa [#allocation13], 1 }
 0x3ec   :  { %4635 = vsyncpa [#allocation5], 1 }

</bundles_post_ra>
